<compile_context>
chip_gen: v5e
topology: v5e:2x2
jax: 0.10.0
libtpu: 0.0.40
codegen_flags: <defaults>
</compile_context>

<pallas_src>
import functools

import numpy as np
import jax
import jax.numpy as jnp
from jax.experimental import pallas as pl
from jax.experimental.pallas import tpu as pltpu


def _round_up(x, m):
    return pl.cdiv(x, m) * m


def _tile_bytes(rows, cols, itemsize):
    """Bytes one (rows, cols) 2-D slab occupies in VMEM ((8,128)-tiled layout)."""
    return _round_up(max(int(rows), 1), 8) * _round_up(max(int(cols), 1), 128) * itemsize


def _est_vmem_bytes(bs, T, F, H, K, s_pad, t_out, w_bytes):
    """Rough per-grid-step VMEM footprint for batch-block size `bs` (bytes)."""
    l_max = T + 3 + 2 * (K // 2)          # longest replicate-padded time length
    kc = K * H
    io = 2 * bs * _tile_bytes(T, F, 4) + 2 * bs * _tile_bytes(t_out, s_pad, 4)
    wts = 2 * (_tile_bytes(K * F, H, w_bytes) + 2 * _tile_bytes(kc, H, w_bytes)
               + _tile_bytes(kc, s_pad, w_bytes)
               + 4 * _tile_bytes(1, max(H, s_pad), 4))
    act = bs * _tile_bytes(l_max, H, 4)              # f32 activations / padded copies
    col = _tile_bytes(bs * l_max, kc, w_bytes)       # im2col slab (compute dtype)
    return io + wts + 3 * act + 2 * col


def _conv_layer(h, wt, b, *, pad, ksize, out_start, out_len, apply_relu):
    """One replicate-padded Conv1d layer on a time-major block.

    h:  (B, L, C_in) float32 activations.
    wt: (K*C_in, C_out) weights, row index = k*C_in + c_in (bf16 or f32).
    b:  (1, C_out) float32 bias.
    Computes output positions [out_start, out_start + out_len) of the full conv.
    Returns (B, out_len, C_out) float32.
    """
    B, L, C = h.shape
    C_out = wt.shape[1]
    hc = h.astype(wt.dtype)                               # MXU compute dtype
    # replicate ('edge') padding along time (sublane axis)
    first = jnp.broadcast_to(hc[:, :1, :], (B, pad, C))
    last = jnp.broadcast_to(hc[:, L - 1:, :], (B, pad, C))
    hp = jnp.concatenate([first, hc, last], axis=1)       # (B, L + 2*pad, C)
    # im2col for the requested output window: K sublane-shifted views -> lanes
    col = jnp.concatenate(
        [hp[:, out_start + k: out_start + k + out_len, :] for k in range(ksize)],
        axis=2)                                           # (B, out_len, K*C)
    # fold the batch into M: one large 2-D MXU matmul, f32 accumulation
    col2d = col.reshape(B * out_len, ksize * C)
    out2d = jnp.dot(col2d, wt, preferred_element_type=jnp.float32)
    out2d = out2d + b                                     # (B*out_len, C_out) f32
    if apply_relu:
        out2d = jnp.maximum(out2d, 0.0)
    return out2d.reshape(B, out_len, C_out)


def _convnet_kernel(x_ref, w1_ref, b1_ref, w2_ref, b2_ref, w3_ref, b3_ref,
                    w4_ref, b4_ref, out_ref, *, pad, ksize, num_out_times):
    h = x_ref[...]                                        # (B, T, F) f32
    l = h.shape[1]
    for w_ref, b_ref in ((w1_ref, b1_ref), (w2_ref, b2_ref), (w3_ref, b3_ref)):
        l_out = l + 2 * pad - ksize + 1
        h = _conv_layer(h, w_ref[...], b_ref[...], pad=pad, ksize=ksize,
                        out_start=0, out_len=l_out, apply_relu=True)
        l = l_out
    # Layer 4: compute only the trailing window that is actually returned, so the
    # store is exactly the matmul output (no tail slice, T x less work if t_out=1).
    l_out = l + 2 * pad - ksize + 1
    h = _conv_layer(h, w4_ref[...], b4_ref[...], pad=pad, ksize=ksize,
                    out_start=l_out - num_out_times, out_len=num_out_times,
                    apply_relu=False)
    out_ref[...] = h.astype(out_ref.dtype)


def conv_classifier_forward(x, params, kernel_size, return_all=True, *,
                            block_samples=128, compute_dtype=jnp.bfloat16,
                            vmem_budget_bytes=24 << 20):
    """Pallas ConvClassifier.forward (logit space, no final activation).

    x: (num_samples, num_features, num_times) float32.
    params: 4 x (w, b) with torch Conv1d layouts w=(C_out, C_in, K), b=(C_out,).
    """
    if kernel_size % 2 != 0:
        raise ValueError("Odd kernel size")
    (w1, b1), (w2, b2), (w3, b3), (w4, b4) = params
    N, F, T = x.shape
    S = w4.shape[0]
    H = w1.shape[0]
    K = kernel_size
    pad = K // 2
    t_out = T if return_all else 1

    # Lane-friendlier logit width (zero-padded weights/bias, sliced off after).
    # Full lane density (128) only when the stored output is tiny (t_out == 1);
    # otherwise round to 8 to bound the extra HBM writeback.
    S_pad = _round_up(S, 128) if t_out == 1 else max(8, _round_up(S, 8))

    # (C_out, C_in, K) -> (K*C_in, C_out): lane-dense contraction layout for im2col
    def prep_w(w, c_out_pad):
        c_out, c_in, k = w.shape
        wt = jnp.transpose(w, (2, 1, 0)).reshape(k * c_in, c_out)
        if c_out_pad != c_out:
            wt = jnp.concatenate(
                [wt, jnp.zeros((k * c_in, c_out_pad - c_out), wt.dtype)], axis=1)
        return wt.astype(compute_dtype)

    def prep_b(b, c_out_pad):
        bb = b.astype(jnp.float32).reshape(1, -1)
        if c_out_pad != b.shape[0]:
            bb = jnp.concatenate(
                [bb, jnp.zeros((1, c_out_pad - b.shape[0]), jnp.float32)], axis=1)
        return bb

    wt1, wt2, wt3 = (prep_w(w, w.shape[0]) for w in (w1, w2, w3))
    wt4 = prep_w(w4, S_pad)
    bb1, bb2, bb3 = (prep_b(b, b.shape[0]) for b in (b1, b2, b3))
    bb4 = prep_b(b4, S_pad)

    # Batch-block size: large enough to fill the MXU (M = bs*L_out), small enough
    # for >= ~8 grid steps (v7x megacore) and for the VMEM budget (v7x: 64 MiB).
    w_bytes = np.dtype(compute_dtype).itemsize
    bs = min(max(1, int(block_samples)), max(8, int(pl.cdiv(N, 8))))
    while bs > 8 and _est_vmem_bytes(bs, T, F, H, K, S_pad, t_out, w_bytes) > vmem_budget_bytes:
        bs = (bs + 1) // 2
    n_pad = int(pl.cdiv(N, bs)) * bs
    est = _est_vmem_bytes(bs, T, F, H, K, S_pad, t_out, w_bytes)
    vmem_limit = int(min(48 << 20, max(32 << 20, 2 * est)))

    # time-major input; pad the batch up to a multiple of the block size
    x_tm = jnp.transpose(x, (0, 2, 1)).astype(jnp.float32)       # (N, T, F)
    if n_pad != N:
        x_tm = jnp.concatenate(
            [x_tm, jnp.zeros((n_pad - N, T, F), x_tm.dtype)], axis=0)

    kernel = functools.partial(_convnet_kernel, pad=pad, ksize=K,
                               num_out_times=t_out)

    def _wspec(a):                                  # whole (2-D) array per step
        return pl.BlockSpec(a.shape, lambda i: (0, 0))

    # advisory cost estimate for the XLA scheduler
    flops = 0
    l = T
    for ci, co in ((F, H), (H, H), (H, H)):
        l_out = l + 2 * pad - K + 1
        flops += 2 * n_pad * l_out * K * ci * co
        l = l_out
    flops += 2 * n_pad * t_out * K * H * S_pad
    bytes_accessed = (int(x_tm.size) * 4 + n_pad * t_out * S_pad * 4
                      + sum(int(w.size) for w in (wt1, wt2, wt3, wt4)) * w_bytes)
    cost = pl.CostEstimate(flops=int(flops), transcendentals=0,
                           bytes_accessed=int(bytes_accessed))

    out_tm = pl.pallas_call(
        kernel,
        out_shape=jax.ShapeDtypeStruct((n_pad, t_out, S_pad), jnp.float32),
        grid=(n_pad // bs,),
        in_specs=[pl.BlockSpec((bs, T, F), lambda i: (i, 0, 0)),
                  _wspec(wt1), _wspec(bb1), _wspec(wt2), _wspec(bb2),
                  _wspec(wt3), _wspec(bb3), _wspec(wt4), _wspec(bb4)],
        out_specs=pl.BlockSpec((bs, t_out, S_pad), lambda i: (i, 0, 0)),
        compiler_params=pltpu.CompilerParams(
            dimension_semantics=("parallel",),
            vmem_limit_bytes=vmem_limit),
        cost_estimate=cost,
    )(x_tm, wt1, bb1, wt2, bb2, wt3, bb3, wt4, bb4)

    out = jnp.transpose(out_tm[:N, :, :S], (0, 2, 1))            # (N, S, t_out)
    if return_all:
        return out
    return out[:, :, 0]


def init_params(key, feature_size, num_states, hidden_size, kernel_size):
    """Deterministic Conv1d-style init (uniform +/- 1/sqrt(fan_in))."""
    dims = [(hidden_size, feature_size), (hidden_size, hidden_size),
            (hidden_size, hidden_size), (num_states, hidden_size)]
    params = []
    for c_out, c_in in dims:
        kw, kb, key = jax.random.split(key, 3)
        bound = 1.0 / (c_in * kernel_size) ** 0.5
        w = jax.random.uniform(kw, (c_out, c_in, kernel_size), jnp.float32,
                               -bound, bound)
        b = jax.random.uniform(kb, (c_out,), jnp.float32, -bound, bound)
        params.append((w, b))
    return params


def ref_forward(x, params, kernel_size):
    """Pure-JAX reference matching PyTorch Conv1d(padding_mode='replicate')."""
    pad = kernel_size // 2
    h = x
    for i, (w, b) in enumerate(params):
        hp = jnp.pad(h, ((0, 0), (0, 0), (pad, pad)), mode="edge")
        h = jax.lax.conv_general_dilated(
            hp, w, window_strides=(1,), padding="VALID",
            dimension_numbers=("NCH", "OIH", "NCH"))
        h = h + b[None, :, None]
        if i < len(params) - 1:
            h = jnp.maximum(h, 0.0)
    T = x.shape[2]
    return h[:, :, -T:]


if __name__ == "__main__":
    key = jax.random.PRNGKey(0)
    kx, kp = jax.random.split(key)

    # small shapes implied by the module: (num_samples, num_features, num_times)
    N, F, T = 16, 4, 16
    H, S, K = 32, 3, 4          # hidden_size, num_states, kernel_size (even)

    x = jax.random.normal(kx, (N, F, T), dtype=jnp.float32)
    params = init_params(kp, F, S, H, K)
    ref = ref_forward(x, params, K)

    # exact-math path (f32 MXU) — tight check against the XLA conv reference
    out_f32 = jax.block_until_ready(
        conv_classifier_forward(x, params, K, compute_dtype=jnp.float32))
    assert out_f32.shape == (N, S, T)
    assert jnp.allclose(out_f32, ref, atol=1e-4, rtol=1e-4), "f32 kernel mismatch"

    # default bf16-weight / f32-accumulate path — loose check (bf16 rounding
    # compounds over 4 conv layers vs. the fp32 reference)
    out_bf16 = jax.block_until_ready(conv_classifier_forward(x, params, K))
    assert out_bf16.shape == (N, S, T)
    assert jnp.allclose(out_bf16, ref, atol=1e-1, rtol=1e-1), "bf16 kernel mismatch"

    # ragged batch (exercises batch padding) + return_all=False (last step only)
    out_last = jax.block_until_ready(
        conv_classifier_forward(x[:13], params, K, return_all=False,
                                compute_dtype=jnp.float32))
    assert out_last.shape == (13, S)
    assert jnp.allclose(out_last, ref[:13, :, -1], atol=1e-4, rtol=1e-4), \
        "return_all=False mismatch"

    print("KERNEL_OK")
</pallas_src>

<mosaic_0001>
module attributes {stable_mosaic.version = 11 : i64} {
  func.func @_convnet_kernel(%arg0: i32, %arg1: memref<8x16x4xf32, #tpu.memory_space<vmem>>, %arg2: memref<16x32xf32, #tpu.memory_space<vmem>>, %arg3: memref<1x32xf32, #tpu.memory_space<vmem>>, %arg4: memref<128x32xf32, #tpu.memory_space<vmem>>, %arg5: memref<1x32xf32, #tpu.memory_space<vmem>>, %arg6: memref<128x32xf32, #tpu.memory_space<vmem>>, %arg7: memref<1x32xf32, #tpu.memory_space<vmem>>, %arg8: memref<128x8xf32, #tpu.memory_space<vmem>>, %arg9: memref<1x8xf32, #tpu.memory_space<vmem>>, %arg10: memref<8x16x8xf32, #tpu.memory_space<vmem>>) attributes {dimension_semantics = [#tpu.dimension_semantics<parallel>], iteration_bounds = array<i64: 2>, scalar_prefetch = 0 : i64, scratch_operands = 0 : i64, tpu.core_type = #tpu.core_type<tc>, window_params = [{transform_indices = @transform_0, window_bounds = array<i64: 8, 16, 4>}, {pipeline_mode = #tpu.pipeline_mode<synchronous>, transform_indices = @transform_1, window_bounds = array<i64: 16, 32>}, {pipeline_mode = #tpu.pipeline_mode<synchronous>, transform_indices = @transform_2, window_bounds = array<i64: 1, 32>}, {pipeline_mode = #tpu.pipeline_mode<synchronous>, transform_indices = @transform_3, window_bounds = array<i64: 128, 32>}, {pipeline_mode = #tpu.pipeline_mode<synchronous>, transform_indices = @transform_4, window_bounds = array<i64: 1, 32>}, {pipeline_mode = #tpu.pipeline_mode<synchronous>, transform_indices = @transform_5, window_bounds = array<i64: 128, 32>}, {pipeline_mode = #tpu.pipeline_mode<synchronous>, transform_indices = @transform_6, window_bounds = array<i64: 1, 32>}, {pipeline_mode = #tpu.pipeline_mode<synchronous>, transform_indices = @transform_7, window_bounds = array<i64: 128, 8>}, {pipeline_mode = #tpu.pipeline_mode<synchronous>, transform_indices = @transform_8, window_bounds = array<i64: 1, 8>}, {transform_indices = @transform_9, window_bounds = array<i64: 8, 16, 8>}]} {
    %c0 = arith.constant 0 : index
    %c0_0 = arith.constant 0 : index
    %c0_1 = arith.constant 0 : index
    %0 = vector.load %arg1[%c0, %c0_0, %c0_1] : memref<8x16x4xf32, #tpu.memory_space<vmem>>, vector<8x16x4xf32>
    %c0_2 = arith.constant 0 : index
    %c0_3 = arith.constant 0 : index
    %1 = vector.load %arg2[%c0_2, %c0_3] : memref<16x32xf32, #tpu.memory_space<vmem>>, vector<16x32xf32>
    %c0_4 = arith.constant 0 : index
    %c0_5 = arith.constant 0 : index
    %2 = vector.load %arg3[%c0_4, %c0_5] : memref<1x32xf32, #tpu.memory_space<vmem>>, vector<1x32xf32>
    %3 = vector.extract_strided_slice %0 {offsets = [0, 0, 0], sizes = [8, 1, 4], strides = [1, 1, 1]} : vector<8x16x4xf32> to vector<8x1x4xf32>
    %4 = vector.shape_cast %3 : vector<8x1x4xf32> to vector<8x1x4xf32>
    %5 = vector.broadcast %4 : vector<8x1x4xf32> to vector<8x2x4xf32>
    %6 = vector.extract_strided_slice %0 {offsets = [0, 15, 0], sizes = [8, 1, 4], strides = [1, 1, 1]} : vector<8x16x4xf32> to vector<8x1x4xf32>
    %7 = vector.shape_cast %6 : vector<8x1x4xf32> to vector<8x1x4xf32>
    %8 = vector.broadcast %7 : vector<8x1x4xf32> to vector<8x2x4xf32>
    %9 = tpu.concatenate %5, %0, %8 in 1 : vector<8x2x4xf32>, vector<8x16x4xf32>, vector<8x2x4xf32> -> vector<8x20x4xf32>
    %10 = vector.extract_strided_slice %9 {offsets = [0, 0, 0], sizes = [8, 17, 4], strides = [1, 1, 1]} : vector<8x20x4xf32> to vector<8x17x4xf32>
    %11 = vector.extract_strided_slice %9 {offsets = [0, 1, 0], sizes = [8, 17, 4], strides = [1, 1, 1]} : vector<8x20x4xf32> to vector<8x17x4xf32>
    %12 = vector.extract_strided_slice %9 {offsets = [0, 2, 0], sizes = [8, 17, 4], strides = [1, 1, 1]} : vector<8x20x4xf32> to vector<8x17x4xf32>
    %13 = vector.extract_strided_slice %9 {offsets = [0, 3, 0], sizes = [8, 17, 4], strides = [1, 1, 1]} : vector<8x20x4xf32> to vector<8x17x4xf32>
    %14 = tpu.concatenate %10, %11, %12, %13 in 2 : vector<8x17x4xf32>, vector<8x17x4xf32>, vector<8x17x4xf32>, vector<8x17x4xf32> -> vector<8x17x16xf32>
    %15 = vector.shape_cast %14 : vector<8x17x16xf32> to vector<136x16xf32>
    %cst = arith.constant dense<0.000000e+00> : vector<136x32xf32>
    %16 = tpu.matmul %15, %1, %cst {dimension_numbers = #tpu.dot_dimension_numbers<[1], [0], [0], [1], [0, 0, 1, 1], [], []>} : vector<136x16xf32>, vector<16x32xf32>, vector<136x32xf32> -> vector<136x32xf32>
    %17 = vector.broadcast %2 : vector<1x32xf32> to vector<136x32xf32>
    %18 = arith.addf %16, %17 : vector<136x32xf32>
    %cst_6 = arith.constant 0.000000e+00 : f32
    %19 = vector.broadcast %cst_6 : f32 to vector<136x32xf32>
    %20 = arith.maximumf %18, %19 : vector<136x32xf32>
    %21 = vector.shape_cast %20 : vector<136x32xf32> to vector<8x17x32xf32>
    %c0_7 = arith.constant 0 : index
    %c0_8 = arith.constant 0 : index
    %22 = vector.load %arg4[%c0_7, %c0_8] : memref<128x32xf32, #tpu.memory_space<vmem>>, vector<128x32xf32>
    %c0_9 = arith.constant 0 : index
    %c0_10 = arith.constant 0 : index
    %23 = vector.load %arg5[%c0_9, %c0_10] : memref<1x32xf32, #tpu.memory_space<vmem>>, vector<1x32xf32>
    %24 = vector.extract_strided_slice %21 {offsets = [0, 0, 0], sizes = [8, 1, 32], strides = [1, 1, 1]} : vector<8x17x32xf32> to vector<8x1x32xf32>
    %25 = vector.shape_cast %24 : vector<8x1x32xf32> to vector<8x1x32xf32>
    %26 = vector.broadcast %25 : vector<8x1x32xf32> to vector<8x2x32xf32>
    %27 = vector.extract_strided_slice %21 {offsets = [0, 16, 0], sizes = [8, 1, 32], strides = [1, 1, 1]} : vector<8x17x32xf32> to vector<8x1x32xf32>
    %28 = vector.shape_cast %27 : vector<8x1x32xf32> to vector<8x1x32xf32>
    %29 = vector.broadcast %28 : vector<8x1x32xf32> to vector<8x2x32xf32>
    %30 = tpu.concatenate %26, %21, %29 in 1 : vector<8x2x32xf32>, vector<8x17x32xf32>, vector<8x2x32xf32> -> vector<8x21x32xf32>
    %31 = vector.extract_strided_slice %30 {offsets = [0, 0, 0], sizes = [8, 18, 32], strides = [1, 1, 1]} : vector<8x21x32xf32> to vector<8x18x32xf32>
    %32 = vector.extract_strided_slice %30 {offsets = [0, 1, 0], sizes = [8, 18, 32], strides = [1, 1, 1]} : vector<8x21x32xf32> to vector<8x18x32xf32>
    %33 = vector.extract_strided_slice %30 {offsets = [0, 2, 0], sizes = [8, 18, 32], strides = [1, 1, 1]} : vector<8x21x32xf32> to vector<8x18x32xf32>
    %34 = vector.extract_strided_slice %30 {offsets = [0, 3, 0], sizes = [8, 18, 32], strides = [1, 1, 1]} : vector<8x21x32xf32> to vector<8x18x32xf32>
    %35 = tpu.concatenate %31, %32, %33, %34 in 2 : vector<8x18x32xf32>, vector<8x18x32xf32>, vector<8x18x32xf32>, vector<8x18x32xf32> -> vector<8x18x128xf32>
    %36 = vector.shape_cast %35 : vector<8x18x128xf32> to vector<144x128xf32>
    %cst_11 = arith.constant dense<0.000000e+00> : vector<144x32xf32>
    %37 = tpu.matmul %36, %22, %cst_11 {dimension_numbers = #tpu.dot_dimension_numbers<[1], [0], [0], [1], [0, 0, 1, 1], [], []>} : vector<144x128xf32>, vector<128x32xf32>, vector<144x32xf32> -> vector<144x32xf32>
    %38 = vector.broadcast %23 : vector<1x32xf32> to vector<144x32xf32>
    %39 = arith.addf %37, %38 : vector<144x32xf32>
    %cst_12 = arith.constant 0.000000e+00 : f32
    %40 = vector.broadcast %cst_12 : f32 to vector<144x32xf32>
    %41 = arith.maximumf %39, %40 : vector<144x32xf32>
    %42 = vector.shape_cast %41 : vector<144x32xf32> to vector<8x18x32xf32>
    %c0_13 = arith.constant 0 : index
    %c0_14 = arith.constant 0 : index
    %43 = vector.load %arg6[%c0_13, %c0_14] : memref<128x32xf32, #tpu.memory_space<vmem>>, vector<128x32xf32>
    %c0_15 = arith.constant 0 : index
    %c0_16 = arith.constant 0 : index
    %44 = vector.load %arg7[%c0_15, %c0_16] : memref<1x32xf32, #tpu.memory_space<vmem>>, vector<1x32xf32>
    %45 = vector.extract_strided_slice %42 {offsets = [0, 0, 0], sizes = [8, 1, 32], strides = [1, 1, 1]} : vector<8x18x32xf32> to vector<8x1x32xf32>
    %46 = vector.shape_cast %45 : vector<8x1x32xf32> to vector<8x1x32xf32>
    %47 = vector.broadcast %46 : vector<8x1x32xf32> to vector<8x2x32xf32>
    %48 = vector.extract_strided_slice %42 {offsets = [0, 17, 0], sizes = [8, 1, 32], strides = [1, 1, 1]} : vector<8x18x32xf32> to vector<8x1x32xf32>
    %49 = vector.shape_cast %48 : vector<8x1x32xf32> to vector<8x1x32xf32>
    %50 = vector.broadcast %49 : vector<8x1x32xf32> to vector<8x2x32xf32>
    %51 = tpu.concatenate %47, %42, %50 in 1 : vector<8x2x32xf32>, vector<8x18x32xf32>, vector<8x2x32xf32> -> vector<8x22x32xf32>
    %52 = vector.extract_strided_slice %51 {offsets = [0, 0, 0], sizes = [8, 19, 32], strides = [1, 1, 1]} : vector<8x22x32xf32> to vector<8x19x32xf32>
    %53 = vector.extract_strided_slice %51 {offsets = [0, 1, 0], sizes = [8, 19, 32], strides = [1, 1, 1]} : vector<8x22x32xf32> to vector<8x19x32xf32>
    %54 = vector.extract_strided_slice %51 {offsets = [0, 2, 0], sizes = [8, 19, 32], strides = [1, 1, 1]} : vector<8x22x32xf32> to vector<8x19x32xf32>
    %55 = vector.extract_strided_slice %51 {offsets = [0, 3, 0], sizes = [8, 19, 32], strides = [1, 1, 1]} : vector<8x22x32xf32> to vector<8x19x32xf32>
    %56 = tpu.concatenate %52, %53, %54, %55 in 2 : vector<8x19x32xf32>, vector<8x19x32xf32>, vector<8x19x32xf32>, vector<8x19x32xf32> -> vector<8x19x128xf32>
    %57 = vector.shape_cast %56 : vector<8x19x128xf32> to vector<152x128xf32>
    %cst_17 = arith.constant dense<0.000000e+00> : vector<152x32xf32>
    %58 = tpu.matmul %57, %43, %cst_17 {dimension_numbers = #tpu.dot_dimension_numbers<[1], [0], [0], [1], [0, 0, 1, 1], [], []>} : vector<152x128xf32>, vector<128x32xf32>, vector<152x32xf32> -> vector<152x32xf32>
    %59 = vector.broadcast %44 : vector<1x32xf32> to vector<152x32xf32>
    %60 = arith.addf %58, %59 : vector<152x32xf32>
    %cst_18 = arith.constant 0.000000e+00 : f32
    %61 = vector.broadcast %cst_18 : f32 to vector<152x32xf32>
    %62 = arith.maximumf %60, %61 : vector<152x32xf32>
    %63 = vector.shape_cast %62 : vector<152x32xf32> to vector<8x19x32xf32>
    %c0_19 = arith.constant 0 : index
    %c0_20 = arith.constant 0 : index
    %64 = vector.load %arg8[%c0_19, %c0_20] : memref<128x8xf32, #tpu.memory_space<vmem>>, vector<128x8xf32>
    %c0_21 = arith.constant 0 : index
    %c0_22 = arith.constant 0 : index
    %65 = vector.load %arg9[%c0_21, %c0_22] : memref<1x8xf32, #tpu.memory_space<vmem>>, vector<1x8xf32>
    %66 = vector.extract_strided_slice %63 {offsets = [0, 0, 0], sizes = [8, 1, 32], strides = [1, 1, 1]} : vector<8x19x32xf32> to vector<8x1x32xf32>
    %67 = vector.shape_cast %66 : vector<8x1x32xf32> to vector<8x1x32xf32>
    %68 = vector.broadcast %67 : vector<8x1x32xf32> to vector<8x2x32xf32>
    %69 = vector.extract_strided_slice %63 {offsets = [0, 18, 0], sizes = [8, 1, 32], strides = [1, 1, 1]} : vector<8x19x32xf32> to vector<8x1x32xf32>
    %70 = vector.shape_cast %69 : vector<8x1x32xf32> to vector<8x1x32xf32>
    %71 = vector.broadcast %70 : vector<8x1x32xf32> to vector<8x2x32xf32>
    %72 = tpu.concatenate %68, %63, %71 in 1 : vector<8x2x32xf32>, vector<8x19x32xf32>, vector<8x2x32xf32> -> vector<8x23x32xf32>
    %73 = vector.extract_strided_slice %72 {offsets = [0, 4, 0], sizes = [8, 16, 32], strides = [1, 1, 1]} : vector<8x23x32xf32> to vector<8x16x32xf32>
    %74 = vector.extract_strided_slice %72 {offsets = [0, 5, 0], sizes = [8, 16, 32], strides = [1, 1, 1]} : vector<8x23x32xf32> to vector<8x16x32xf32>
    %75 = vector.extract_strided_slice %72 {offsets = [0, 6, 0], sizes = [8, 16, 32], strides = [1, 1, 1]} : vector<8x23x32xf32> to vector<8x16x32xf32>
    %76 = vector.extract_strided_slice %72 {offsets = [0, 7, 0], sizes = [8, 16, 32], strides = [1, 1, 1]} : vector<8x23x32xf32> to vector<8x16x32xf32>
    %77 = tpu.concatenate %73, %74, %75, %76 in 2 : vector<8x16x32xf32>, vector<8x16x32xf32>, vector<8x16x32xf32>, vector<8x16x32xf32> -> vector<8x16x128xf32>
    %78 = vector.shape_cast %77 : vector<8x16x128xf32> to vector<128x128xf32>
    %cst_23 = arith.constant dense<0.000000e+00> : vector<128x8xf32>
    %79 = tpu.matmul %78, %64, %cst_23 {dimension_numbers = #tpu.dot_dimension_numbers<[1], [0], [0], [1], [0, 0, 1, 1], [], []>} : vector<128x128xf32>, vector<128x8xf32>, vector<128x8xf32> -> vector<128x8xf32>
    %80 = vector.broadcast %65 : vector<1x8xf32> to vector<128x8xf32>
    %81 = arith.addf %79, %80 : vector<128x8xf32>
    %82 = vector.shape_cast %81 : vector<128x8xf32> to vector<8x16x8xf32>
    %c0_24 = arith.constant 0 : index
    %c0_25 = arith.constant 0 : index
    %c0_26 = arith.constant 0 : index
    %83 = vector.load %arg10[%c0_24, %c0_25, %c0_26] : memref<8x16x8xf32, #tpu.memory_space<vmem>>, vector<8x16x8xf32>
    tpu.vector_store %arg10[%c0_24, %c0_25, %c0_26], %82 {strides = array<i32>} : memref<8x16x8xf32, #tpu.memory_space<vmem>>, vector<8x16x8xf32>,
    return
  }
  func.func @transform_0(%arg0: i32) -> (i32, i32, i32) {
    %c0_i32 = arith.constant 0 : i32
    %c0_i32_0 = arith.constant 0 : i32
    %c0_i32_1 = arith.constant 0 : i32
    return %arg0, %c0_i32, %c0_i32_0 : i32, i32, i32
  }
  func.func @transform_1(%arg0: i32) -> (i32, i32) {
    %c0_i32 = arith.constant 0 : i32
    %c0_i32_0 = arith.constant 0 : i32
    %c0_i32_1 = arith.constant 0 : i32
    return %c0_i32, %c0_i32_0 : i32, i32
  }
  func.func @transform_2(%arg0: i32) -> (i32, i32) {
    %c0_i32 = arith.constant 0 : i32
    %c0_i32_0 = arith.constant 0 : i32
    %c0_i32_1 = arith.constant 0 : i32
    return %c0_i32, %c0_i32_0 : i32, i32
  }
  func.func @transform_3(%arg0: i32) -> (i32, i32) {
    %c0_i32 = arith.constant 0 : i32
    %c0_i32_0 = arith.constant 0 : i32
    %c0_i32_1 = arith.constant 0 : i32
    return %c0_i32, %c0_i32_0 : i32, i32
  }
  func.func @transform_4(%arg0: i32) -> (i32, i32) {
    %c0_i32 = arith.constant 0 : i32
    %c0_i32_0 = arith.constant 0 : i32
    %c0_i32_1 = arith.constant 0 : i32
    return %c0_i32, %c0_i32_0 : i32, i32
  }
  func.func @transform_5(%arg0: i32) -> (i32, i32) {
    %c0_i32 = arith.constant 0 : i32
    %c0_i32_0 = arith.constant 0 : i32
    %c0_i32_1 = arith.constant 0 : i32
    return %c0_i32, %c0_i32_0 : i32, i32
  }
  func.func @transform_6(%arg0: i32) -> (i32, i32) {
    %c0_i32 = arith.constant 0 : i32
    %c0_i32_0 = arith.constant 0 : i32
    %c0_i32_1 = arith.constant 0 : i32
    return %c0_i32, %c0_i32_0 : i32, i32
  }
  func.func @transform_7(%arg0: i32) -> (i32, i32) {
    %c0_i32 = arith.constant 0 : i32
    %c0_i32_0 = arith.constant 0 : i32
    %c0_i32_1 = arith.constant 0 : i32
    return %c0_i32, %c0_i32_0 : i32, i32
  }
  func.func @transform_8(%arg0: i32) -> (i32, i32) {
    %c0_i32 = arith.constant 0 : i32
    %c0_i32_0 = arith.constant 0 : i32
    %c0_i32_1 = arith.constant 0 : i32
    return %c0_i32, %c0_i32_0 : i32, i32
  }
  func.func @transform_9(%arg0: i32) -> (i32, i32, i32) {
    %c0_i32 = arith.constant 0 : i32
    %c0_i32_0 = arith.constant 0 : i32
    %c0_i32_1 = arith.constant 0 : i32
    return %arg0, %c0_i32, %c0_i32_0 : i32, i32, i32
  }
}

</mosaic_0001>

<bundles_post_ra>
// kernel: tpu_custom_call.1
= control target key start
LH: loop header
LB: loop body
LE: loop exit
PB: predicated region body
PF: predicated region fallthrough
CT: control target
= control target key end

     0   :  { %s4902_s30 = smov 0   ;;  %s7232_s0 = inlined_call_operand.vmem [shape: f32[16,16,4], index: 0, kind: input, shape index: {}]   ;;  %s7233_s1 = inlined_call_operand.vmem [shape: f32[16,32], index: 1, kind: input, shape index: {}]   ;;  %s7234_s2 = inlined_call_operand.vmem [shape: f32[1,32], index: 2, kind: input, shape index: {}]   ;;  %s7235_s3 = inlined_call_operand.vmem [shape: f32[128,32], index: 3, kind: input, shape index: {}]   ;;  %s7236_s4 = inlined_call_operand.vmem [shape: f32[1,32], index: 4, kind: input, shape index: {}]   ;;  %s7237_s5 = inlined_call_operand.vmem [shape: f32[128,32], index: 5, kind: input, shape index: {}]   ;;  %s7238_s6 = inlined_call_operand.vmem [shape: f32[1,32], index: 6, kind: input, shape index: {}]   ;;  %s7239_s7 = inlined_call_operand.vmem [shape: f32[128,8], index: 7, kind: input, shape index: {}]   ;;  %s7240_s8 = inlined_call_operand.vmem [shape: f32[1,8], index: 8, kind: input, shape index: {}]   ;;  %s7241_s9 = inlined_call_operand.vmem [shape: f32[16,16,8], index: 9, kind: output, shape index: {}]  }
   0x1 LB: > { %s4605_s10 = sadd.s32 4294967295, %s4844_s30   ;;  %p4609_p0 = scmp.ge.s32.totalorder %s4844_s30, 1  ;;  %s4844_s30 = sphi %s4902_s30, %s19_s30  }
   0x2   : > { %p289_p1 = scmp.lt.s32.totalorder %s4844_s30, 3 }
   0x4   : > { %p290_p2 = pnand %p4609_p0, %p289_p1 }
   0x5   : > { %s4610_s11 = sshll.u32 (!%p290_p2), %s4605_s10, 3  ;;  %s4846_s16 = smov (!%p290_p2), 12  }
   0x6   : > { %293 = sbr.rel (%p290_p2) target bundleno = 1867 (0x74b), region = 56  ;;  %p328_p3 = scmp.lt.s32.totalorder (!%p290_p2), %s4610_s11, 15 }
   0x7   : > { %s4847_s17 = smov (!%p290_p2), 4   ;;  %s4848_s18 = smov (!%p290_p2), 8  }
   0x8   : > { %s4849_s25 = smov (!%p290_p2), 96   ;;  %s4850_s26 = smov (!%p290_p2), 64  }
   0x9   : > { %s4851_s27 = smov (!%p290_p2), 32  }
   0xb   : > { %s7245_s11 = smov (!%p328_p3, %s4610_s11), 15  ;;  %vm392_vm0 = vcmask 1041408   ;;  %vm699_vm1 = vcmask 1044480   ;;  %vm473_vm2 = vcmask 1046528   ;;  %vm586_vm3 = vcmask 1045504  }
   0xc   : > { %s4635_s12 = sshll.u32 %s7245_s11, 4  ;;  %vm812_vm4 = vcmask 31744   ;;  %vm837_vm5 = vcmask 64512   ;;  %vm862_vm6 = vcmask 97280   ;;  %vm1186_vm7 = vcmask 130048  }
   0xd   : > { %s4918_s15 = scalar_lea.vmem %s7232_s0, %s4635_s12  ;;  %vm1690_vm8 = vcmask 1042432   ;;  %vm2051_vm9 = vcmask 261120   ;;  %vm2076_vm10 = vcmask 523264   ;;  %vm2101_vm11 = vcmask 785408   ;;  %s7136_s28 = scalar_lea.vmem %s7241_s9, %s4635_s12 }
   0xe   : > { %v341_v0 = vld [vmem:[%s4918_s15] sm:$0xff]  ;;  %v342_v1 = vld [vmem:[%s4918_s15 + $0x8] sm:$0xff]  ;;  %v343_v12 = vld [vmem:[%s4918_s15 + $0x10] sm:$0xff]  ;;  %vm2657_vm12 = vcmask 1043456  }
   0xf   : > { %v360_v2 = vperm.slane %v341_v0, 0  ;;  %v393_v3 = vrot.slane %v341_v0, 6  ;;  %v394_v4 = vrot.slane %v342_v1, 6  ;;  %v368_v5 = vperm.slane %v342_v1, 7  ;;  %v344_v13 = vld [vmem:[%s4918_s15 + $0x18] sm:$0xff]  ;;  %v345_v42 = vld [vmem:[%s4918_s15 + $0x20] sm:$0xff] }
  0x10   : > { %v396_v17 = vrot.slane %v343_v12, 6  ;;  %v397_v18 = vrot.slane %v344_v13, 6  ;;  %v361_v23 = vperm.slane %v343_v12, 0  ;;  %v369_v39 = vperm.slane %v344_v13, 7  ;;  %v346_v43 = vld [vmem:[%s4918_s15 + $0x28] sm:$0xff] }
  0x11   : > { %v4923_v6 = vsel %vm392_vm0, %v393_v3, %v394_v4  ;;  %v4926_v7 = vsel %vm392_vm0, %v360_v2, %v393_v3  ;;  %v4935_v14 = vsel %vm392_vm0, %v394_v4, %v368_v5  ;;  %v362_v46 = vperm.slane %v345_v42, 0  ;;  %v347_v2 = vld [vmem:[%s4918_s15 + $0x30] sm:$0xff]  ;;  %v348_v3 = vld [vmem:[%s4918_s15 + $0x38] sm:$0xff] }
  0x12   : > { %v700_v8 = vrot.slane %v4926_v7, 3  ;;  %v701_v9 = vrot.slane %v4923_v6, 3  ;;  %v474_v10 = vrot.slane %v4926_v7, 1  ;;  %v475_v11 = vrot.slane %v4923_v6, 1 }
  0x13   : > { %v477_v19 = vrot.slane %v4935_v14, 1  ;;  %v587_v20 = vrot.slane %v4926_v7, 2  ;;  %v588_v21 = vrot.slane %v4923_v6, 2  ;;  %v590_v22 = vrot.slane %v4935_v14, 2 }
  0x14   : > { %v702_v15 = vsel %vm699_vm1, %v700_v8, %v701_v9  ;;  %v476_v16 = vsel %vm473_vm2, %v474_v10, %v475_v11  ;;  %v4950_v27 = vsel %vm392_vm0, %v396_v17, %v397_v18  ;;  %v703_v28 = vrot.slane %v4935_v14, 3 }
  0x15   : > { %740 = vrot.lane.b32.xlu1 %v702_v15, %s4846_s16  ;;  %514 = vrot.lane.b32.xlu0 %v476_v16, %s4847_s17  ;;  %v591_v24 = vsel %vm586_vm3, %v588_v21, %v590_v22  ;;  %v478_v25 = vsel %vm473_vm2, %v475_v11, %v477_v19  ;;  %v589_v26 = vsel %vm586_vm3, %v587_v20, %v588_v21  ;;  %v593_v30 = vrot.slane %v4950_v27, 2 }
  0x16   : > { %629 = vrot.lane.b32.xlu2 %v591_v24, %s4848_s18  ;;  %v4954_v29 = vsel %vm392_vm0, %v361_v23, %v396_v17  ;;  %v480_v33 = vrot.slane %v4950_v27, 1  ;;  %v704_v34 = vsel %vm699_vm1, %v701_v9, %v703_v28  ;;  %v706_v38 = vrot.slane %v4950_v27, 3 }
  0x17   : > { %v592_v31 = vrot.slane %v4954_v29, 2  ;;  %v479_v32 = vrot.slane %v4954_v29, 1  ;;  %v705_v37 = vrot.slane %v4954_v29, 3  ;;  %v4973_v41 = vsel %vm392_vm0, %v397_v18, %v369_v39 }
  0x18   : > { %v595_v44 = vrot.slane %v4973_v41, 2  ;;  %v482_v45 = vrot.slane %v4973_v41, 1  ;;  %v399_v47 = vrot.slane %v345_v42, 6  ;;  %v400_v48 = vrot.slane %v346_v43, 6 }
  0x19   : > { %v594_v35 = vsel %vm586_vm3, %v592_v31, %v593_v30  ;;  %v481_v36 = vsel %vm473_vm2, %v479_v32, %v480_v33  ;;  %v707_v40 = vsel %vm699_vm1, %v705_v37, %v706_v38  ;;  %v708_v52 = vrot.slane %v4973_v41, 3  ;;  %v349_v31 = vld [vmem:[%s4918_s15 + $0x40] sm:$0xff]  ;;  %v350_v32 = vld [vmem:[%s4918_s15 + $0x48] sm:$0xff] }
  0x1a   : > { %v596_v49 = vsel %vm586_vm3, %v593_v30, %v595_v44  ;;  %v483_v50 = vsel %vm473_vm2, %v480_v33, %v482_v45  ;;  %v4985_v51 = vsel %vm392_vm0, %v362_v46, %v399_v47  ;;  %v4989_v53 = vsel %vm392_vm0, %v399_v47, %v400_v48 }
  0x1b   : > { %v597_v54 = vrot.slane %v4985_v51, 2  ;;  %v598_v55 = vrot.slane %v4989_v53, 2  ;;  %v484_v56 = vrot.slane %v4985_v51, 1  ;;  %v485_v57 = vrot.slane %v4989_v53, 1 }
  0x1c   : > { %v709_v58 = vsel %vm699_vm1, %v706_v38, %v708_v52  ;;  %v710_v61 = vrot.slane %v4985_v51, 3  ;;  %v711_v62 = vrot.slane %v4989_v53, 3  ;;  %v370_v63 = vperm.slane %v346_v43, 7 }
  0x1d   : > { %516 = vrot.lane.b32.xlu1 %v478_v25, %s4847_s17  ;;  %627 = vrot.lane.b32.xlu0 %v589_v26, %s4848_s18  ;;  %v599_v59 = vsel %vm586_vm3, %v597_v54, %v598_v55  ;;  %v486_v60 = vsel %vm473_vm2, %v484_v56, %v485_v57  ;;  %v363_v8 = vperm.slane %v347_v2, 0  ;;  %v402_v9 = vrot.slane %v347_v2, 6 }
  0x1e   : > { %742 = vrot.lane.b32.xlu2 %v704_v34, %s4846_s16  ;;  %v712_v0 = vsel %vm699_vm1, %v710_v61, %v711_v62  ;;  %v5008_v1 = vsel %vm392_vm0, %v400_v48, %v370_v63  ;;  %v403_v10 = vrot.slane %v348_v3, 6  ;;  %v371_v26 = vperm.slane %v348_v3, 7 }
  0x1f   : > { %v600_v4 = vrot.slane %v5008_v1, 2  ;;  %v487_v5 = vrot.slane %v5008_v1, 1  ;;  %v5020_v13 = vsel %vm392_vm0, %v363_v8, %v402_v9  ;;  %v713_v15 = vrot.slane %v5008_v1, 3 }
  0x20   : > { %v5024_v16 = vsel %vm392_vm0, %v402_v9, %v403_v10  ;;  %v602_v17 = vrot.slane %v5020_v13, 2  ;;  %v715_v24 = vrot.slane %v5020_v13, 3  ;;  %v5043_v30 = vsel %vm392_vm0, %v403_v10, %v371_v26 }
  0x21   : > { %v601_v11 = vsel %vm586_vm3, %v598_v55, %v600_v4  ;;  %v488_v12 = vsel %vm473_vm2, %v485_v57, %v487_v5  ;;  %v603_v18 = vrot.slane %v5024_v16, 2  ;;  %v490_v20 = vrot.slane %v5024_v16, 1 }
  0x22   : > { %v714_v21 = vsel %vm699_vm1, %v711_v62, %v713_v15  ;;  %v716_v25 = vrot.slane %v5024_v16, 3  ;;  %v605_v33 = vrot.slane %v5043_v30, 2  ;;  %v492_v34 = vrot.slane %v5043_v30, 1 }
  0x23   : > { %v406_v37 = vrot.slane %v350_v32, 6  ;;  %v718_v42 = vrot.slane %v5043_v30, 3  ;;  %v372_v55 = vperm.slane %v350_v32, 7  ;;  %v5125_v32 = vld [vmem:[%s4918_s15 + $0x68] sm:$0xff] }
  0x24   : > { %v606_v38 = vsel %vm586_vm3, %v603_v18, %v605_v33  ;;  %v493_v39 = vsel %vm473_vm2, %v490_v20, %v492_v34 }
  0x25   : > { %633 = vrot.lane.b32.xlu1 %v594_v35, %s4848_s18  ;;  %520 = vrot.lane.b32.xlu0 %v481_v36, %s4847_s17  ;;  %v364_v35 = vperm.slane %v349_v31, 0  ;;  %v405_v36 = vrot.slane %v349_v31, 6  ;;  %v719_v48 = vsel %vm699_vm1, %v716_v25, %v718_v42  ;;  %v5078_v57 = vsel %vm392_vm0, %v406_v37, %v372_v55  ;;  %v353_v31 = vld [vmem:[%s4918_s15 + $0x60] sm:$0xff] }
  0x26   : > { %518 = vrot.lane.b32.xlu2 %v477_v19, %s4847_s17  ;;  %v489_v19 = vrot.slane %v5020_v13, 1  ;;  %v497_v61 = vrot.slane %v5078_v57, 1 }
  0x27   : > { %v5059_v43 = vsel %vm392_vm0, %v405_v36, %v406_v37 }
  0x28   : > { %v491_v23 = vsel %vm473_vm2, %v489_v19, %v490_v20  ;;  %v495_v47 = vrot.slane %v5059_v43, 1  ;;  %v721_v54 = vrot.slane %v5059_v43, 3  ;;  %v358_v19 = vld [vmem:[%s7233_s1 + $0x8] sm:$0xff] }
  0x29   : > { %1235 = vmatpush.msra.mxu0 %v358_v19 }
  0x2a   : > { %v498_v3 = vsel %vm473_vm2, %v495_v47, %v497_v61 }
  0x2d   : > { %631 = vrot.lane.b32.xlu1 %v590_v22, %s4848_s18  ;;  %746 = vrot.lane.b32.xlu0 %v707_v40, %s4846_s16  ;;  %v604_v22 = vsel %vm586_vm3, %v602_v17, %v603_v18  ;;  %v5055_v40 = vsel %vm392_vm0, %v364_v35, %v405_v36  ;;  %v366_v35 = vperm.slane %v353_v31, 0  ;;  %v411_v36 = vrot.slane %v353_v31, 6 }
  0x2e   : > { %744 = vrot.lane.b32.xlu2 %v703_v28, %s4846_s16  ;;  %v717_v28 = vsel %vm699_vm1, %v715_v24, %v716_v25  ;;  %v494_v46 = vrot.slane %v5055_v40, 1  ;;  %v357_v24 = vld [vmem:[%s7233_s1] sm:$0xff] }
  0x2f   : > { %1236 = vmatpush.msra.mxu0 %v357_v24  ;;  %v374_v24 = vperm.slane %v5125_v32, 7 }
  0x35   : > { %635 = vrot.lane.b32.xlu1 %v596_v49, %s4848_s18  ;;  %522 = vrot.lane.b32.xlu0 %v483_v50, %s4847_s17  ;;  %v496_v50 = vsel %vm473_vm2, %v494_v46, %v495_v47 }
  0x36   : > { %748 = vrot.lane.b32.xlu2 %v709_v58, %s4846_s16  ;;  %v351_v58 = vld [vmem:[%s4918_s15 + $0x50] sm:$0xff] }
  0x37   : > { %v365_v62 = vperm.slane %v351_v58, 0  ;;  %v408_v63 = vrot.slane %v351_v58, 6 }
  0x3d   : > { %639 = vrot.lane.b32.xlu1 %v599_v59, %s4848_s18  ;;  %526 = vrot.lane.b32.xlu0 %v486_v60, %s4847_s17  ;;  %v352_v59 = vld [vmem:[%s4918_s15 + $0x58] sm:$0xff]  ;;  %v610_v60 = vrot.slane %v5078_v57, 2 }
  0x3e   : > { %524 = vrot.lane.b32.xlu2 %v482_v45, %s4847_s17  ;;  %v608_v45 = vrot.slane %v5059_v43, 2 }
  0x40   : > { %v611_v2 = vsel %vm586_vm3, %v608_v45, %v610_v60 }
  0x45   : > { %637 = vrot.lane.b32.xlu1 %v595_v44, %s4848_s18  ;;  %752 = vrot.lane.b32.xlu0 %v712_v0, %s4846_s16  ;;  %v607_v44 = vrot.slane %v5055_v40, 2  ;;  %v409_v0 = vrot.slane %v352_v59, 6 }
  0x46   : > { %750 = vrot.lane.b32.xlu2 %v708_v52, %s4846_s16  ;;  %v720_v52 = vrot.slane %v5055_v40, 3 }
  0x47   : > { %v609_v49 = vsel %vm586_vm3, %v607_v44, %v608_v45 }
  0x48   : > { %v722_v56 = vsel %vm699_vm1, %v720_v52, %v721_v54 }
  0x4d   : > { %641 = vrot.lane.b32.xlu1 %v601_v11, %s4848_s18  ;;  %528 = vrot.lane.b32.xlu0 %v488_v12, %s4847_s17  ;;  %v723_v12 = vrot.slane %v5078_v57, 3 }
  0x4e   : > { %754 = vrot.lane.b32.xlu2 %v714_v21, %s4846_s16 }
  0x4f   : > { %v724_v18 = vsel %vm699_vm1, %v721_v54, %v723_v12 }
  0x55   : > { %645 = vrot.lane.b32.xlu1 %v604_v22, %s4848_s18  ;;  %532 = vrot.lane.b32.xlu0 %v491_v23, %s4847_s17  ;;  %v373_v22 = vperm.slane %v352_v59, 7 }
  0x56   : > { %530 = vrot.lane.b32.xlu2 %v487_v5, %s4847_s17  ;;  %v5093_v5 = vsel %vm392_vm0, %v365_v62, %v408_v63 }
  0x57   : > { %v612_v8 = vrot.slane %v5093_v5, 2  ;;  %v499_v10 = vrot.slane %v5093_v5, 1  ;;  %v725_v20 = vrot.slane %v5093_v5, 3 }
  0x5d   : > { %643 = vrot.lane.b32.xlu1 %v600_v4, %s4848_s18  ;;  %758 = vrot.lane.b32.xlu0 %v717_v28, %s4846_s16  ;;  %v5090_v4 = vsel %vm392_vm0, %v408_v63, %v409_v0  ;;  %v5120_v28 = vsel %vm392_vm0, %v409_v0, %v373_v22 }
  0x5e   : > { %756 = vrot.lane.b32.xlu2 %v713_v15, %s4846_s16  ;;  %v613_v9 = vrot.slane %v5090_v4, 2  ;;  %v500_v11 = vrot.slane %v5090_v4, 1  ;;  %v726_v21 = vrot.slane %v5090_v4, 3 }
  0x60   : > { %v614_v15 = vsel %vm586_vm3, %v612_v8, %v613_v9  ;;  %v501_v17 = vsel %vm473_vm2, %v499_v10, %v500_v11  ;;  %v727_v26 = vsel %vm699_vm1, %v725_v20, %v726_v21 }
  0x65   : > { %647 = vrot.lane.b32.xlu1 %v606_v38, %s4848_s18  ;;  %534 = vrot.lane.b32.xlu0 %v493_v39, %s4847_s17  ;;  %v412_v39 = vrot.slane %v5125_v32, 6 }
  0x66   : > { %760 = vrot.lane.b32.xlu2 %v719_v48, %s4846_s16 }
  0x67   : > { %v5146_v54 = vsel %vm392_vm0, %v411_v36, %v412_v39 }
  0x68   : > { %v505_v63 = vrot.slane %v5146_v54, 1 }
  0x6d   : > { %651 = vrot.lane.b32.xlu1 %v609_v49, %s4848_s18  ;;  %538 = vrot.lane.b32.xlu0 %v496_v50, %s4847_s17 }
  0x6e   : > { %536 = vrot.lane.b32.xlu2 %v492_v34, %s4847_s17  ;;  %v502_v34 = vrot.slane %v5120_v28, 1 }
  0x70   : > { %v503_v47 = vsel %vm473_vm2, %v500_v11, %v502_v34 }
  0x75   : > { %649 = vrot.lane.b32.xlu1 %v605_v33, %s4848_s18  ;;  %764 = vrot.lane.b32.xlu0 %v722_v56, %s4846_s16  ;;  %v615_v33 = vrot.slane %v5120_v28, 2 }
  0x76   : > { %762 = vrot.lane.b32.xlu2 %v718_v42, %s4846_s16  ;;  %v630_v42 = vpop.permute.xlu2 %629 }
  0x77   : > { %v616_v46 = vsel %vm586_vm3, %v613_v9, %v615_v33 }
  0x7d   : > { %653 = vrot.lane.b32.xlu1 %v611_v2, %s4848_s18  ;;  %540 = vrot.lane.b32.xlu0 %v498_v3, %s4847_s17 }
  0x7e   : > { %766 = vrot.lane.b32.xlu2 %v724_v18, %s4846_s16  ;;  %v743_v2 = vpop.permute.xlu2 %742 }
  0x85   : > { %657 = vrot.lane.b32.xlu1 %v614_v15, %s4848_s18  ;;  %544 = vrot.lane.b32.xlu0 %v501_v17, %s4847_s17 }
  0x86   : > { %542 = vrot.lane.b32.xlu2 %v497_v61, %s4847_s17  ;;  %v618_v61 = vrot.slane %v5146_v54, 2 }
  0x87   : > { %v515_v23 = vpop.permute.xlu0 %514  ;;  %v741_v25 = vpop.permute.xlu1 %740 }
  0x88   : > { %v813_v37 = vsel %vm812_vm4, %v4926_v7, %v515_v23  ;;  %v5143_v7 = vsel %vm392_vm0, %v366_v35, %v411_v36  ;;  %v5175_v35 = vsel %vm392_vm0, %v412_v39, %v374_v24  ;;  %v728_v36 = vrot.slane %v5120_v28, 3  ;;  %v355_v39 = vld [vmem:[%s4918_s15 + $0x70] sm:$0xff] }
  0x89   : > { %v617_v59 = vrot.slane %v5143_v7, 2  ;;  %v504_v62 = vrot.slane %v5143_v7, 1  ;;  %v620_v32 = vrot.slane %v5175_v35, 2 }
  0x8b   : > { %v619_v8 = vsel %vm586_vm3, %v617_v59, %v618_v61  ;;  %v506_v9 = vsel %vm473_vm2, %v504_v62, %v505_v63 }
  0x8d   : > { %655 = vrot.lane.b32.xlu1 %v610_v60, %s4848_s18  ;;  %770 = vrot.lane.b32.xlu0 %v727_v26, %s4846_s16  ;;  %v519_v26 = vpop.permute.xlu2 %518 }
  0x8e   : > { %768 = vrot.lane.b32.xlu2 %v723_v12, %s4846_s16  ;;  %v731_v12 = vrot.slane %v5146_v54, 3 }
  0x8f   : > { %v628_v38 = vpop.permute.xlu0 %627  ;;  %v517_v55 = vpop.permute.xlu1 %516 }
  0x90   : > { %v838_v44 = vsel %vm837_vm5, %v813_v37, %v628_v38  ;;  %v814_v0 = vsel %vm812_vm4, %v4923_v6, %v517_v55  ;;  %v730_v6 = vrot.slane %v5143_v7, 3  ;;  %v507_v37 = vrot.slane %v5175_v35, 1 }
  0x91   : > { %v863_v45 = vsel %vm862_vm6, %v838_v44, %v741_v25  ;;  %v839_v3 = vsel %vm837_vm5, %v814_v0, %v630_v42 }
  0x92   : > { %v911_v48 = vrot.slane %v863_v45, 1  ;;  %v912_v49 = vrot.slane %v863_v45, 2  ;;  %v913_v50 = vrot.slane %v863_v45, 3  ;;  %1026 = vst [vmem:[#allocation1] ss:$9 sm:$0xff] %v863_v45  ;;  %v914_v52 = vrot.slane %v863_v45, 4 }
  0x93   : > { %v915_v56 = vrot.slane %v863_v45, 5  ;;  %v916_v58 = vrot.slane %v863_v45, 6  ;;  %v917_v60 = vrot.slane %v863_v45, 7  ;;  %v864_v10 = vsel %vm862_vm6, %v839_v3, %v743_v2  ;;  %v5188_v45 = vld [vmem:[%s4918_s15 + $0x78] sm:$0xff] }
  0x94   : > { %1028 = vst [vmem:[#allocation1 + $0x1] ss:$9 sm:$0xff] %v911_v48  ;;  %v919_v15 = vrot.slane %v864_v10, 2  ;;  %v920_v18 = vrot.slane %v864_v10, 3  ;;  %v921_v20 = vrot.slane %v864_v10, 4  ;;  %v732_v22 = vsel %vm699_vm1, %v730_v6, %v731_v12 }
  0x95   : > { %1030 = vst [vmem:[#allocation1 + $0x2] ss:$9 sm:$0xff] %v912_v49  ;;  %659 = vrot.lane.b32.xlu1 %v616_v46, %s4848_s18  ;;  %546 = vrot.lane.b32.xlu0 %v503_v47, %s4847_s17  ;;  %v922_v23 = vrot.slane %v864_v10, 5  ;;  %v923_v25 = vrot.slane %v864_v10, 6  ;;  %v924_v31 = vrot.slane %v864_v10, 7  ;;  %v918_v38 = vrot.slane %v864_v10, 1  ;;  %v745_v59 = vpop.permute.xlu2 %744 }
  0x96   : > { %1032 = vst [vmem:[#allocation1 + $0x3] ss:$9 sm:$0xff] %v913_v50  ;;  %v367_v46 = vperm.slane %v355_v39, 0  ;;  %v414_v47 = vrot.slane %v355_v39, 6  ;;  %v415_v48 = vrot.slane %v5188_v45, 6 }
  0x97   : > { %1034 = vst [vmem:[#allocation1 + $0x4] ss:$9 sm:$0xff] %v914_v52  ;;  %v521_v11 = vpop.permute.xlu0 %520  ;;  %v634_v19 = vpop.permute.xlu1 %633 }
  0x98   : > { %1036 = vst [vmem:[#allocation1 + $0x5] ss:$9 sm:$0xff] %v915_v56  ;;  %v816_v42 = vsel %vm812_vm4, %v4954_v29, %v521_v11  ;;  %v621_v29 = vsel %vm586_vm3, %v618_v61, %v620_v32  ;;  %v5202_v55 = vsel %vm392_vm0, %v414_v47, %v415_v48  ;;  %v5205_v56 = vsel %vm392_vm0, %v367_v46, %v414_v47 }
  0x99   : > { %1038 = vst [vmem:[#allocation1 + $0x6] ss:$9 sm:$0xff] %v916_v58  ;;  %v841_v49 = vsel %vm837_vm5, %v816_v42, %v634_v19  ;;  %v510_v61 = vrot.slane %v5202_v55, 1  ;;  %v375_v42 = vperm.slane %v5188_v45, 7 }
  0x9a   : > { %1040 = vst [vmem:[#allocation1 + $0x7] ss:$9 sm:$0xff] %v917_v60  ;;  %v509_v60 = vrot.slane %v5205_v56, 1 }
  0x9b   : > { %v5236_v39 = vsel %vm392_vm0, %v415_v48, %v375_v42 }
  0x9d   : > { %663 = vrot.lane.b32.xlu1 %v619_v8, %s4848_s18  ;;  %550 = vrot.lane.b32.xlu0 %v506_v9, %s4847_s17  ;;  %v511_v9 = vsel %vm473_vm2, %v509_v60, %v510_v61  ;;  %v749_v19 = vpop.permute.xlu2 %748 }
  0x9f   : > { %v747_v44 = vpop.permute.xlu0 %746  ;;  %v632_v50 = vpop.permute.xlu1 %631 }
  0xa0   : > { %v866_v52 = vsel %vm862_vm6, %v841_v49, %v747_v44  ;;  %v512_v49 = vrot.slane %v5236_v39, 1 }
  0xa1   : > { %v1041_v17 = vld [vmem:[#allocation1] sm:$0xff]  ;;  %v925_v58 = vrot.slane %v866_v52, 1  ;;  %v926_v62 = vrot.slane %v866_v52, 2  ;;  %v927_v0 = vrot.slane %v866_v52, 3  ;;  %v928_v2 = vrot.slane %v866_v52, 4 }
  0xa2   : > { %1044 = vst [vmem:[#allocation1 + $0x2] ss:$9 sm:$0xff] %v919_v15  ;;  %4616 = vmatmul.msk.f32.vlgmr.msra.gmra.mxu0 %vm1186_vm7, %v1041_v17  ;;  %v929_v3 = vrot.slane %v866_v52, 5  ;;  %v930_v11 = vrot.slane %v866_v52, 6  ;;  %v622_v17 = vrot.slane %v5205_v56, 2 }
  0xa3   : > { %1045 = vst [vmem:[#allocation1 + $0x3] ss:$9 sm:$0xff] %v920_v18  ;;  %v623_v18 = vrot.slane %v5202_v55, 2 }
  0xa4   : > { %1046 = vst [vmem:[#allocation1 + $0x4] ss:$9 sm:$0xff] %v921_v20 }
  0xa5   : > { %1047 = vst [vmem:[#allocation1 + $0x5] ss:$9 sm:$0xff] %v922_v23  ;;  %661 = vrot.lane.b32.xlu1 %v615_v33, %s4848_s18  ;;  %776 = vrot.lane.b32.xlu0 %v732_v22, %s4846_s16  ;;  %v729_v33 = vsel %vm699_vm1, %v726_v21, %v728_v36  ;;  %v508_v21 = vsel %vm473_vm2, %v505_v63, %v507_v37  ;;  %v525_v47 = vpop.permute.xlu2 %524 }
  0xa6   : > { %1048 = vst [vmem:[#allocation1 + $0x6] ss:$9 sm:$0xff] %v923_v25  ;;  %772 = vrot.lane.b32.xlu2 %v729_v33, %s4846_s16  ;;  %v624_v22 = vsel %vm586_vm3, %v622_v17, %v623_v18  ;;  %v931_v25 = vrot.slane %v866_v52, 7 }
  0xa7   : > { %1049 = vst [vmem:[#allocation1 + $0x7] ss:$9 sm:$0xff] %v924_v31  ;;  %v523_v8 = vpop.permute.xlu0 %522  ;;  %v636_v15 = vpop.permute.xlu1 %635 }
  0xa8   : > { %1042 = vst [vmem:[#allocation1] ss:$9 sm:$0xff] %v864_v10  ;;  %v815_v10 = vsel %vm812_vm4, %v4935_v14, %v519_v26 }
  0xa9   : > { %1043 = vst [vmem:[#allocation1 + $0x1] ss:$9 sm:$0xff] %v918_v38  ;;  %v840_v6 = vsel %vm837_vm5, %v815_v10, %v632_v50  ;;  %v513_v50 = vsel %vm473_vm2, %v510_v61, %v512_v49 }
  0xaa   : > { %v865_v14 = vsel %vm862_vm6, %v840_v6, %v745_v59 }
  0xad   : > { %665 = vrot.lane.b32.xlu1 %v621_v29, %s4848_s18  ;;  %552 = vrot.lane.b32.xlu0 %v508_v21, %s4847_s17  ;;  %v625_v29 = vrot.slane %v5236_v39, 2 }
  0xae   : > { %548 = vrot.lane.b32.xlu2 %v502_v34, %s4847_s17  ;;  %v817_v34 = vsel %vm812_vm4, %v4950_v27, %v523_v8  ;;  %v733_v27 = vrot.slane %v5175_v35, 3 }
  0xaf   : > { %v842_v20 = vsel %vm837_vm5, %v817_v34, %v636_v15  ;;  %v527_v24 = vpop.permute.xlu0 %526  ;;  %v735_v15 = vrot.slane %v5205_v56, 3 }
  0xb0   : > { %v1050_v63 = vld [vmem:[#allocation1] sm:$0xff]  ;;  %v867_v23 = vsel %vm862_vm6, %v842_v20, %v749_v19  ;;  %v819_v21 = vsel %vm812_vm4, %v4985_v51, %v527_v24  ;;  %v734_v45 = vsel %vm699_vm1, %v731_v12, %v733_v27 }
  0xb1   : > { %1052 = vst [vmem:[#allocation1 + $0x1] ss:$9 sm:$0xff] %v866_v52  ;;  %4617 = vmatmul.msk.f32.gmra.mxu0 %vm1186_vm7, %v1050_v63  ;;  %v932_v26 = vrot.slane %v867_v23, 1  ;;  %v934_v38 = vrot.slane %v867_v23, 3  ;;  %v935_v33 = vrot.slane %v867_v23, 4  ;;  %v936_v44 = vrot.slane %v867_v23, 5 }
  0xb2   : > { %1053 = vst [vmem:[#allocation1 + $0x2] ss:$9 sm:$0xff] %v925_v58  ;;  %v937_v46 = vrot.slane %v867_v23, 6  ;;  %v626_v52 = vsel %vm586_vm3, %v623_v18, %v625_v29  ;;  %v938_v60 = vrot.slane %v867_v23, 7 }
  0xb3   : > { %1054 = vst [vmem:[#allocation1 + $0x3] ss:$9 sm:$0xff] %v926_v62  ;;  %v751_v62 = vpop.permute.xlu2 %750 }
  0xb4   : > { %1055 = vst [vmem:[#allocation1 + $0x4] ss:$9 sm:$0xff] %v927_v0  ;;  %v818_v0 = vsel %vm812_vm4, %v4973_v41, %v525_v47 }
  0xb5   : > { %1056 = vst [vmem:[#allocation1 + $0x5] ss:$9 sm:$0xff] %v928_v2  ;;  %556 = vrot.lane.b32.xlu1 %v511_v9, %s4847_s17  ;;  %554 = vrot.lane.b32.xlu0 %v507_v37, %s4847_s17  ;;  %v933_v37 = vrot.slane %v867_v23, 2 }
  0xb6   : > { %1057 = vst [vmem:[#allocation1 + $0x6] ss:$9 sm:$0xff] %v929_v3  ;;  %774 = vrot.lane.b32.xlu2 %v728_v36, %s4846_s16  ;;  %v640_v36 = vpop.permute.xlu1 %639 }
  0xb7   : > { %1058 = vst [vmem:[#allocation1 + $0x7] ss:$9 sm:$0xff] %v930_v11  ;;  %v753_v48 = vpop.permute.xlu0 %752  ;;  %v844_v58 = vsel %vm837_vm5, %v819_v21, %v640_v36 }
  0xb8   : > { %1051 = vst [vmem:[#allocation1] ss:$9 sm:$0xff] %v865_v14  ;;  %v869_v51 = vsel %vm862_vm6, %v844_v58, %v753_v48 }
  0xb9   : > { %v939_v61 = vrot.slane %v869_v51, 1  ;;  %v940_v12 = vrot.slane %v869_v51, 2  ;;  %v941_v2 = vrot.slane %v869_v51, 3  ;;  %v942_v8 = vrot.slane %v869_v51, 4 }
  0xba   : > { %v943_v9 = vrot.slane %v869_v51, 5  ;;  %v945_v19 = vrot.slane %v869_v51, 7 }
  0xbb   : > { %v755_v34 = vpop.permute.xlu2 %754 }
  0xbd   : > { %780 = vrot.lane.b32.xlu1 %v733_v27, %s4846_s16  ;;  %669 = vrot.lane.b32.xlu0 %v624_v22, %s4848_s18  ;;  %v944_v27 = vrot.slane %v869_v51, 6 }
  0xbe   : > { %778 = vrot.lane.b32.xlu2 %v734_v45, %s4846_s16  ;;  %v638_v59 = vpop.permute.xlu1 %637 }
  0xbf   : > { %v1059_v31 = vld [vmem:[#allocation1] sm:$0xff]  ;;  %v843_v3 = vsel %vm837_vm5, %v818_v0, %v638_v59  ;;  %v529_v10 = vpop.permute.xlu0 %528 }
  0xc0   : > { %1060 = vst [vmem:[#allocation1] ss:$9 sm:$0xff] %v931_v25  ;;  %4618 = vmatmul.msk.f32.gmra.mxu0 %vm1186_vm7, %v1059_v31  ;;  %v868_v41 = vsel %vm862_vm6, %v843_v3, %v751_v62  ;;  %v820_v6 = vsel %vm812_vm4, %v4989_v53, %v529_v10 }
  0xc1   : > { %1061 = vst [vmem:[#allocation1 + $0x1] ss:$9 sm:$0xff] %v867_v23 }
  0xc2   : > { %1062 = vst [vmem:[#allocation1 + $0x2] ss:$9 sm:$0xff] %v932_v26 }
  0xc3   : > { %1063 = vst [vmem:[#allocation1 + $0x3] ss:$9 sm:$0xff] %v933_v37  ;;  %v531_v37 = vpop.permute.xlu2 %530 }
  0xc4   : > { %1064 = vst [vmem:[#allocation1 + $0x4] ss:$9 sm:$0xff] %v934_v38  ;;  %v738_v38 = vrot.slane %v5236_v39, 3  ;;  %v821_v48 = vsel %vm812_vm4, %v5008_v1, %v531_v37 }
  0xc5   : > { %1065 = vst [vmem:[#allocation1 + $0x5] ss:$9 sm:$0xff] %v935_v33  ;;  %558 = vrot.lane.b32.xlu0 %v513_v50, %s4847_s17  ;;  %671 = vrot.lane.b32.xlu1 %v626_v52, %s4848_s18 }
  0xc6   : > { %1066 = vst [vmem:[#allocation1 + $0x6] ss:$9 sm:$0xff] %v936_v44  ;;  %667 = vrot.lane.b32.xlu2 %v620_v32, %s4848_s18  ;;  %v642_v11 = vpop.permute.xlu1 %641  ;;  %v736_v32 = vrot.slane %v5202_v55, 3 }
  0xc7   : > { %1067 = vst [vmem:[#allocation1 + $0x7] ss:$9 sm:$0xff] %v937_v46  ;;  %v845_v17 = vsel %vm837_vm5, %v820_v6, %v642_v11  ;;  %v533_v20 = vpop.permute.xlu0 %532 }
  0xc8   : > { %v737_v18 = vsel %vm699_vm1, %v735_v15, %v736_v32  ;;  %v870_v14 = vsel %vm862_vm6, %v845_v17, %v755_v34  ;;  %v822_v36 = vsel %vm812_vm4, %v5020_v13, %v533_v20  ;;  %v739_v33 = vsel %vm699_vm1, %v736_v32, %v738_v38 }
  0xc9   : > { %v946_v53 = vrot.slane %v870_v14, 1  ;;  %v947_v23 = vrot.slane %v870_v14, 2  ;;  %v948_v24 = vrot.slane %v870_v14, 3  ;;  %v949_v26 = vrot.slane %v870_v14, 4 }
  0xca   : > { %v950_v31 = vrot.slane %v870_v14, 5 }
  0xcb   : > { %v757_v45 = vpop.permute.xlu2 %756 }
  0xcd   : > { %560 = vrot.lane.b32.xlu0 %v512_v49, %s4847_s17  ;;  %673 = vrot.lane.b32.xlu1 %v625_v29, %s4848_s18  ;;  %v951_v49 = vrot.slane %v870_v14, 6  ;;  %v952_v29 = vrot.slane %v870_v14, 7 }
  0xce   : > { %v1068_v63 = vld [vmem:[#allocation1] sm:$0xff]  ;;  %782 = vrot.lane.b32.xlu2 %v737_v18, %s4846_s16  ;;  %v646_v25 = vpop.permute.xlu1 %645 }
  0xcf   : > { %1069 = vst [vmem:[#allocation1] ss:$9 sm:$0xff] %v938_v60  ;;  %4619 = vmatmul.msk.f32.gmra.mxu0 %vm1186_vm7, %v1068_v63  ;;  %v759_v42 = vpop.permute.xlu0 %758  ;;  %v847_v44 = vsel %vm837_vm5, %v822_v36, %v646_v25 }
  0xd0   : > { %1071 = vst [vmem:[#allocation1 + $0x2] ss:$9 sm:$0xff] %v869_v51  ;;  %v872_v47 = vsel %vm862_vm6, %v847_v44, %v759_v42 }
  0xd1   : > { %1072 = vst [vmem:[#allocation1 + $0x3] ss:$9 sm:$0xff] %v939_v61  ;;  %v953_v50 = vrot.slane %v872_v47, 1  ;;  %v954_v13 = vrot.slane %v872_v47, 2  ;;  %v955_v58 = vrot.slane %v872_v47, 3  ;;  %v956_v59 = vrot.slane %v872_v47, 4 }
  0xd2   : > { %1073 = vst [vmem:[#allocation1 + $0x4] ss:$9 sm:$0xff] %v940_v12  ;;  %v959_v0 = vrot.slane %v872_v47, 7 }
  0xd3   : > { %1074 = vst [vmem:[#allocation1 + $0x5] ss:$9 sm:$0xff] %v941_v2  ;;  %v761_v62 = vpop.permute.xlu2 %760  ;;  %v957_v2 = vrot.slane %v872_v47, 5 }
  0xd4   : > { %1075 = vst [vmem:[#allocation1 + $0x6] ss:$9 sm:$0xff] %v942_v8 }
  0xd5   : > { %1076 = vst [vmem:[#allocation1 + $0x7] ss:$9 sm:$0xff] %v943_v9  ;;  %v958_v9 = vrot.slane %v872_v47, 6 }
  0xd6   : > { %1070 = vst [vmem:[#allocation1 + $0x1] ss:$9 sm:$0xff] %v868_v41  ;;  %784 = vrot.lane.b32.xlu2 %v739_v33, %s4846_s16  ;;  %v644_v46 = vpop.permute.xlu1 %643 }
  0xd7   : > { %v846_v52 = vsel %vm837_vm5, %v821_v48, %v644_v46  ;;  %v535_v51 = vpop.permute.xlu0 %534 }
  0xd8   : > { %v871_v60 = vsel %vm862_vm6, %v846_v52, %v757_v45  ;;  %v823_v1 = vsel %vm812_vm4, %v5024_v16, %v535_v51 }
  0xdb   : > { %v537_v15 = vpop.permute.xlu2 %536 }
  0xdd   : > { %v1077_v22 = vld [vmem:[#allocation1] sm:$0xff] }
  0xde   : > { %1079 = vst [vmem:[#allocation1 + $0x1] ss:$9 sm:$0xff] %v945_v19  ;;  %4620 = vmatmul.msk.f32.gmra.mxu0 %vm1186_vm7, %v1077_v22  ;;  %786 = vrot.lane.b32.xlu2 %v738_v38, %s4846_s16  ;;  %v648_v61 = vpop.permute.xlu1 %647 }
  0xdf   : > { %1078 = vst [vmem:[#allocation1] ss:$9 sm:$0xff] %v944_v27  ;;  %v848_v63 = vsel %vm837_vm5, %v823_v1, %v648_v61  ;;  %v539_v8 = vpop.permute.xlu0 %538 }
  0xe0   : > { %1080 = vst [vmem:[#allocation1 + $0x2] ss:$9 sm:$0xff] %v870_v14  ;;  %v873_v12 = vsel %vm862_vm6, %v848_v63, %v761_v62  ;;  %v825_v32 = vsel %vm812_vm4, %v5055_v40, %v539_v8 }
  0xe1   : > { %1081 = vst [vmem:[#allocation1 + $0x3] ss:$9 sm:$0xff] %v946_v53  ;;  %v960_v10 = vrot.slane %v873_v12, 1  ;;  %v961_v41 = vrot.slane %v873_v12, 2  ;;  %v962_v11 = vrot.slane %v873_v12, 3  ;;  %v963_v6 = vrot.slane %v873_v12, 4 }
  0xe2   : > { %1082 = vst [vmem:[#allocation1 + $0x4] ss:$9 sm:$0xff] %v947_v23  ;;  %v964_v19 = vrot.slane %v873_v12, 5  ;;  %v965_v20 = vrot.slane %v873_v12, 6  ;;  %v966_v22 = vrot.slane %v873_v12, 7  ;;  %v824_v53 = vsel %vm812_vm4, %v5043_v30, %v537_v15 }
  0xe3   : > { %1083 = vst [vmem:[#allocation1 + $0x5] ss:$9 sm:$0xff] %v948_v24  ;;  %v763_v24 = vpop.permute.xlu2 %762 }
  0xe4   : > { %1084 = vst [vmem:[#allocation1 + $0x6] ss:$9 sm:$0xff] %v949_v26 }
  0xe5   : > { %1085 = vst [vmem:[#allocation1 + $0x7] ss:$9 sm:$0xff] %v950_v31 }
  0xe6   : > { %v652_v16 = vpop.permute.xlu1 %651 }
  0xe7   : > { %v765_v34 = vpop.permute.xlu0 %764  ;;  %v850_v17 = vsel %vm837_vm5, %v825_v32, %v652_v16 }
  0xe8   : > { %v875_v14 = vsel %vm862_vm6, %v850_v17, %v765_v34 }
  0xe9   : > { %v967_v23 = vrot.slane %v875_v14, 1  ;;  %v968_v25 = vrot.slane %v875_v14, 2  ;;  %v969_v26 = vrot.slane %v875_v14, 3  ;;  %v973_v33 = vrot.slane %v875_v14, 7 }
  0xea   : > { %v970_v46 = vrot.slane %v875_v14, 4 }
  0xeb   : > { %v767_v36 = vpop.permute.xlu2 %766 }
  0xec   : > { %v1086_v21 = vld [vmem:[#allocation1] sm:$0xff] }
  0xed   : > { %1087 = vst [vmem:[#allocation1] ss:$9 sm:$0xff] %v951_v49  ;;  %4621 = vmatmul.msk.f32.gmra.mxu0 %vm1186_vm7, %v1086_v21  ;;  %v971_v49 = vrot.slane %v875_v14, 5  ;;  %v972_v21 = vrot.slane %v875_v14, 6 }
  0xee   : > { %1088 = vst [vmem:[#allocation1 + $0x1] ss:$9 sm:$0xff] %v952_v29  ;;  %v650_v18 = vpop.permute.xlu1 %649 }
  0xef   : > { %1090 = vst [vmem:[#allocation1 + $0x3] ss:$9 sm:$0xff] %v872_v47  ;;  %v849_v40 = vsel %vm837_vm5, %v824_v53, %v650_v18  ;;  %v541_v37 = vpop.permute.xlu0 %540 }
  0xf0   : > { %1091 = vst [vmem:[#allocation1 + $0x4] ss:$9 sm:$0xff] %v953_v50  ;;  %v874_v31 = vsel %vm862_vm6, %v849_v40, %v763_v24  ;;  %v826_v30 = vsel %vm812_vm4, %v5059_v43, %v541_v37 }
  0xf1   : > { %1092 = vst [vmem:[#allocation1 + $0x5] ss:$9 sm:$0xff] %v954_v13 }
  0xf2   : > { %1093 = vst [vmem:[#allocation1 + $0x6] ss:$9 sm:$0xff] %v955_v58 }
  0xf3   : > { %1094 = vst [vmem:[#allocation1 + $0x7] ss:$9 sm:$0xff] %v956_v59  ;;  %v543_v13 = vpop.permute.xlu2 %542 }
  0xf4   : > { %1089 = vst [vmem:[#allocation1 + $0x2] ss:$9 sm:$0xff] %v871_v60 }
  0xf6   : > { %v654_v38 = vpop.permute.xlu1 %653 }
  0xf7   : > { %v851_v42 = vsel %vm837_vm5, %v826_v30, %v654_v38  ;;  %v545_v29 = vpop.permute.xlu0 %544 }
  0xf8   : > { %v876_v44 = vsel %vm862_vm6, %v851_v42, %v767_v36  ;;  %v828_v52 = vsel %vm812_vm4, %v5093_v5, %v545_v29 }
  0xf9   : > { %v974_v50 = vrot.slane %v876_v44, 1  ;;  %v975_v45 = vrot.slane %v876_v44, 2  ;;  %v976_v43 = vrot.slane %v876_v44, 3  ;;  %v977_v51 = vrot.slane %v876_v44, 4 }
  0xfa   : > { %v978_v1 = vrot.slane %v876_v44, 5  ;;  %v979_v63 = vrot.slane %v876_v44, 6 }
  0xfb   : > { %v1095_v3 = vld [vmem:[#allocation1] sm:$0xff] }
  0xfc   : > { %1098 = vst [vmem:[#allocation1 + $0x2] ss:$9 sm:$0xff] %v959_v0  ;;  %4622 = vmatmul.msk.f32.gmra.mxu0 %vm1186_vm7, %v1095_v3  ;;  %v980_v0 = vrot.slane %v876_v44, 7  ;;  %v769_v3 = vpop.permute.xlu2 %768 }
  0xfd   : > { %1096 = vst [vmem:[#allocation1] ss:$9 sm:$0xff] %v957_v2 }
  0xfe   : > { %1097 = vst [vmem:[#allocation1 + $0x1] ss:$9 sm:$0xff] %v958_v9  ;;  %v658_v48 = vpop.permute.xlu1 %657 }
  0xff   : > { %1099 = vst [vmem:[#allocation1 + $0x3] ss:$9 sm:$0xff] %v873_v12  ;;  %v771_v58 = vpop.permute.xlu0 %770  ;;  %v853_v59 = vsel %vm837_vm5, %v828_v52, %v658_v48  ;;  %v827_v12 = vsel %vm812_vm4, %v5078_v57, %v543_v13 }
 0x100   : > { %1100 = vst [vmem:[#allocation1 + $0x4] ss:$9 sm:$0xff] %v960_v10  ;;  %v878_v61 = vsel %vm862_vm6, %v853_v59, %v771_v58 }
 0x101   : > { %1101 = vst [vmem:[#allocation1 + $0x5] ss:$9 sm:$0xff] %v961_v41  ;;  %v981_v2 = vrot.slane %v878_v61, 1  ;;  %v982_v8 = vrot.slane %v878_v61, 2  ;;  %v983_v15 = vrot.slane %v878_v61, 3  ;;  %v984_v17 = vrot.slane %v878_v61, 4 }
 0x102   : > { %1102 = vst [vmem:[#allocation1 + $0x6] ss:$9 sm:$0xff] %v962_v11  ;;  %v985_v18 = vrot.slane %v878_v61, 5 }
 0x103   : > { %1103 = vst [vmem:[#allocation1 + $0x7] ss:$9 sm:$0xff] %v963_v6  ;;  %v987_v6 = vrot.slane %v878_v61, 7 }
 0x104   : > { %v773_v11 = vpop.permute.xlu2 %772 }
 0x106   : > { %v656_v60 = vpop.permute.xlu1 %655 }
 0x107   : > { %v852_v5 = vsel %vm837_vm5, %v827_v12, %v656_v60  ;;  %v547_v10 = vpop.permute.xlu0 %546 }
 0x108   : > { %v877_v9 = vsel %vm862_vm6, %v852_v5, %v769_v3  ;;  %v829_v57 = vsel %vm812_vm4, %v5090_v4, %v547_v10 }
 0x10a   : > { %v1104_v27 = vld [vmem:[#allocation1] sm:$0xff] }
 0x10b   : > { %1105 = vst [vmem:[#allocation1] ss:$9 sm:$0xff] %v964_v19  ;;  %4623 = vmatmul.msk.f32.gmra.mxu0 %vm1186_vm7, %v1104_v27  ;;  %v986_v19 = vrot.slane %v878_v61, 6 }
 0x10c   : > { %1106 = vst [vmem:[#allocation1 + $0x1] ss:$9 sm:$0xff] %v965_v20 }
 0x10d   : > { %1107 = vst [vmem:[#allocation1 + $0x2] ss:$9 sm:$0xff] %v966_v22  ;;  %v549_v22 = vpop.permute.xlu2 %548 }
 0x10e   : > { %1109 = vst [vmem:[#allocation1 + $0x4] ss:$9 sm:$0xff] %v875_v14  ;;  %v660_v41 = vpop.permute.xlu1 %659  ;;  %v830_v30 = vsel %vm812_vm4, %v5120_v28, %v549_v22 }
 0x10f   : > { %1110 = vst [vmem:[#allocation1 + $0x5] ss:$9 sm:$0xff] %v967_v23  ;;  %v854_v16 = vsel %vm837_vm5, %v829_v57, %v660_v41  ;;  %v551_v14 = vpop.permute.xlu0 %550 }
 0x110   : > { %1111 = vst [vmem:[#allocation1 + $0x6] ss:$9 sm:$0xff] %v968_v25  ;;  %v879_v34 = vsel %vm862_vm6, %v854_v16, %v773_v11  ;;  %v831_v53 = vsel %vm812_vm4, %v5143_v7, %v551_v14 }
 0x111   : > { %1112 = vst [vmem:[#allocation1 + $0x7] ss:$9 sm:$0xff] %v969_v26  ;;  %v988_v20 = vrot.slane %v879_v34, 1  ;;  %v989_v4 = vrot.slane %v879_v34, 2  ;;  %v990_v24 = vrot.slane %v879_v34, 3  ;;  %v991_v26 = vrot.slane %v879_v34, 4 }
 0x112   : > { %1108 = vst [vmem:[#allocation1 + $0x3] ss:$9 sm:$0xff] %v874_v31  ;;  %v992_v38 = vrot.slane %v879_v34, 5  ;;  %v993_v36 = vrot.slane %v879_v34, 6 }
 0x115   : > { %v775_v42 = vpop.permute.xlu2 %774 }
 0x116   : > { %v664_v27 = vpop.permute.xlu1 %663 }
 0x117   : > { %v777_v23 = vpop.permute.xlu0 %776  ;;  %v856_v25 = vsel %vm837_vm5, %v831_v53, %v664_v27 }
 0x118   : > { %v881_v37 = vsel %vm862_vm6, %v856_v25, %v777_v23 }
 0x119   : > { %v1113_v47 = vld [vmem:[#allocation1] sm:$0xff]  ;;  %v997_v48 = vrot.slane %v881_v37, 3  ;;  %v998_v52 = vrot.slane %v881_v37, 4  ;;  %v999_v58 = vrot.slane %v881_v37, 5  ;;  %v1000_v59 = vrot.slane %v881_v37, 6 }
 0x11a   : > { %1117 = vst [vmem:[#allocation1 + $0x3] ss:$9 sm:$0xff] %v973_v33  ;;  %4624 = vmatmul.msk.f32.gmra.mxu0 %vm1186_vm7, %v1113_v47  ;;  %v994_v33 = vrot.slane %v879_v34, 7 }
 0x11b   : > { %1114 = vst [vmem:[#allocation1] ss:$9 sm:$0xff] %v970_v46 }
 0x11c   : > { %1115 = vst [vmem:[#allocation1 + $0x1] ss:$9 sm:$0xff] %v971_v49 }
 0x11d   : > { %1116 = vst [vmem:[#allocation1 + $0x2] ss:$9 sm:$0xff] %v972_v21  ;;  %v779_v29 = vpop.permute.xlu2 %778 }
 0x11e   : > { %1118 = vst [vmem:[#allocation1 + $0x4] ss:$9 sm:$0xff] %v876_v44  ;;  %v662_v40 = vpop.permute.xlu1 %661  ;;  %v995_v44 = vrot.slane %v881_v37, 1 }
 0x11f   : > { %1119 = vst [vmem:[#allocation1 + $0x5] ss:$9 sm:$0xff] %v974_v50  ;;  %v855_v7 = vsel %vm837_vm5, %v830_v30, %v662_v40  ;;  %v553_v47 = vpop.permute.xlu0 %552  ;;  %v1001_v50 = vrot.slane %v881_v37, 7 }
 0x120   : > { %1120 = vst [vmem:[#allocation1 + $0x6] ss:$9 sm:$0xff] %v975_v45  ;;  %v880_v46 = vsel %vm862_vm6, %v855_v7, %v775_v42  ;;  %v832_v28 = vsel %vm812_vm4, %v5146_v54, %v553_v47  ;;  %v996_v45 = vrot.slane %v881_v37, 2 }
 0x121   : > { %1121 = vst [vmem:[#allocation1 + $0x7] ss:$9 sm:$0xff] %v976_v43 }
 0x126   : > { %v666_v49 = vpop.permute.xlu1 %665 }
 0x127   : > { %v857_v21 = vsel %vm837_vm5, %v832_v28, %v666_v49  ;;  %v555_v54 = vpop.permute.xlu0 %554 }
 0x128   : > { %v1122_v62 = vld [vmem:[#allocation1] sm:$0xff]  ;;  %v882_v13 = vsel %vm862_vm6, %v857_v21, %v779_v29 }
 0x129   : > { %1123 = vst [vmem:[#allocation1] ss:$9 sm:$0xff] %v977_v51  ;;  %4625 = vmatmul.msk.f32.gmra.mxu0 %vm1186_vm7, %v1122_v62  ;;  %v1002_v51 = vrot.slane %v882_v13, 1  ;;  %v1005_v5 = vrot.slane %v882_v13, 4  ;;  %v1007_v41 = vrot.slane %v882_v13, 6  ;;  %v1008_v11 = vrot.slane %v882_v13, 7 }
 0x12a   : > { %1124 = vst [vmem:[#allocation1 + $0x1] ss:$9 sm:$0xff] %v978_v1  ;;  %v1003_v1 = vrot.slane %v882_v13, 2 }
 0x12b   : > { %1125 = vst [vmem:[#allocation1 + $0x2] ss:$9 sm:$0xff] %v979_v63  ;;  %v1004_v63 = vrot.slane %v882_v13, 3 }
 0x12c   : > { %1126 = vst [vmem:[#allocation1 + $0x3] ss:$9 sm:$0xff] %v980_v0  ;;  %v833_v0 = vsel %vm812_vm4, %v5175_v35, %v555_v54 }
 0x12d   : > { %1128 = vst [vmem:[#allocation1 + $0x5] ss:$9 sm:$0xff] %v878_v61  ;;  %v668_v61 = vpop.permute.xlu2 %667 }
 0x12e   : > { %1129 = vst [vmem:[#allocation1 + $0x6] ss:$9 sm:$0xff] %v981_v2  ;;  %v557_v60 = vpop.permute.xlu1 %556  ;;  %v858_v57 = vsel %vm837_vm5, %v833_v0, %v668_v61 }
 0x12f   : > { %1130 = vst [vmem:[#allocation1 + $0x7] ss:$9 sm:$0xff] %v982_v8  ;;  %v670_v62 = vpop.permute.xlu0 %669  ;;  %v834_v2 = vsel %vm812_vm4, %v5205_v56, %v557_v60  ;;  %v1006_v8 = vrot.slane %v882_v13, 5 }
 0x130   : > { %1127 = vst [vmem:[#allocation1 + $0x4] ss:$9 sm:$0xff] %v877_v9  ;;  %v859_v9 = vsel %vm837_vm5, %v834_v2, %v670_v62 }
 0x135   : > { %v783_v10 = vpop.permute.xlu2 %782 }
 0x136   : > { %v781_v3 = vpop.permute.xlu1 %780  ;;  %v884_v16 = vsel %vm862_vm6, %v859_v9, %v783_v10 }
 0x137   : > { %v1131_v32 = vld [vmem:[#allocation1] sm:$0xff]  ;;  %v883_v35 = vsel %vm862_vm6, %v858_v57, %v781_v3  ;;  %v559_v56 = vpop.permute.xlu0 %558  ;;  %v1012_v14 = vrot.slane %v884_v16, 4  ;;  %v1014_v27 = vrot.slane %v884_v16, 6  ;;  %v1015_v22 = vrot.slane %v884_v16, 7 }
 0x138   : > { %1136 = vst [vmem:[#allocation1 + $0x4] ss:$9 sm:$0xff] %v987_v6  ;;  %4626 = vmatmul.msk.f32.gmra.mxu0 %vm1186_vm7, %v1131_v32  ;;  %v1009_v6 = vrot.slane %v884_v16, 1 }
 0x139   : > { %1132 = vst [vmem:[#allocation1] ss:$9 sm:$0xff] %v983_v15  ;;  %v835_v15 = vsel %vm812_vm4, %v5202_v55, %v559_v56 }
 0x13a   : > { %1133 = vst [vmem:[#allocation1 + $0x1] ss:$9 sm:$0xff] %v984_v17 }
 0x13b   : > { %1134 = vst [vmem:[#allocation1 + $0x2] ss:$9 sm:$0xff] %v985_v18  ;;  %v1011_v18 = vrot.slane %v884_v16, 3 }
 0x13c   : > { %1135 = vst [vmem:[#allocation1 + $0x3] ss:$9 sm:$0xff] %v986_v19 }
 0x13d   : > { %1137 = vst [vmem:[#allocation1 + $0x5] ss:$9 sm:$0xff] %v879_v34  ;;  %v1010_v34 = vrot.slane %v884_v16, 2 }
 0x13e   : > { %1138 = vst [vmem:[#allocation1 + $0x6] ss:$9 sm:$0xff] %v988_v20  ;;  %v672_v32 = vpop.permute.xlu1 %671  ;;  %v785_v20 = vpop.permute.xlu2 %784 }
 0x13f   : > { %1139 = vst [vmem:[#allocation1 + $0x7] ss:$9 sm:$0xff] %v989_v4  ;;  %v860_v19 = vsel %vm837_vm5, %v835_v15, %v672_v32  ;;  %v1013_v4 = vrot.slane %v884_v16, 5  ;;  %v561_v53 = vpop.permute.xlu0 %560 }
 0x140   : > { %v885_v55 = vsel %vm862_vm6, %v860_v19, %v785_v20 }
 0x141   : > { %v1016_v23 = vrot.slane %v885_v55, 1  ;;  %v1017_v25 = vrot.slane %v885_v55, 2  ;;  %v1020_v7 = vrot.slane %v885_v55, 5  ;;  %v1021_v42 = vrot.slane %v885_v55, 6 }
 0x146   : > { %v1140_v31 = vld [vmem:[#allocation1] sm:$0xff]  ;;  %v674_v40 = vpop.permute.xlu1 %673  ;;  %v787_v30 = vpop.permute.xlu2 %786 }
 0x147   : > { %1141 = vst [vmem:[#allocation1] ss:$9 sm:$0xff] %v990_v24  ;;  %4627 = vmatmul.msk.f32.gmra.mxu0 %vm1186_vm7, %v1140_v31  ;;  %v836_v24 = vsel %vm812_vm4, %v5236_v39, %v561_v53  ;;  %v1018_v31 = vrot.slane %v885_v55, 3  ;;  %v1238_v39 = vpop.f32.mrf.mxu0 }
 0x148   : > { %1142 = vst [vmem:[#allocation1 + $0x1] ss:$9 sm:$0xff] %v991_v26 }
 0x149   : > { %1143 = vst [vmem:[#allocation1 + $0x2] ss:$9 sm:$0xff] %v992_v38  ;;  %v861_v38 = vsel %vm837_vm5, %v836_v24, %v674_v40 }
 0x14a   : > { %1144 = vst [vmem:[#allocation1 + $0x3] ss:$9 sm:$0xff] %v993_v36  ;;  %v5352_v36 = vld [vmem:[%s7234_s2] ss:$0 sm:$0xff] }
 0x14b   : > { %1145 = vst [vmem:[#allocation1 + $0x4] ss:$9 sm:$0xff] %v994_v33  ;;  %v1022_v33 = vrot.slane %v885_v55, 7 }
 0x14c   : > { %1147 = vst [vmem:[#allocation1 + $0x6] ss:$9 sm:$0xff] %v881_v37  ;;  %v1019_v37 = vrot.slane %v885_v55, 4 }
 0x14d   : > { %1148 = vst [vmem:[#allocation1 + $0x7] ss:$9 sm:$0xff] %v995_v44  ;;  %v886_v44 = vsel %vm862_vm6, %v861_v38, %v787_v30 }
 0x14e   : > { %1146 = vst [vmem:[#allocation1 + $0x5] ss:$9 sm:$0xff] %v880_v46  ;;  %v1239_v46 = vadd.f32 %v5352_v36, %v1238_v39 }
 0x150   : > { %v1289_v47 = vmax.f32 %v1239_v46, 0.0 }
 0x152   : > { %v1323_v49 = vrot.slane %v1289_v47, 1  ;;  %v1324_v29 = vrot.slane %v1289_v47, 2  ;;  %v1325_v21 = vrot.slane %v1289_v47, 3 }
 0x155   : > { %v1149_v43 = vld [vmem:[#allocation1] sm:$0xff] }
 0x156   : > { %1155 = vst [vmem:[#allocation1 + $0x5] ss:$9 sm:$0xff] %v1001_v50  ;;  %4628 = vmatmul.msk.f32.gmra.mxu0 %vm1186_vm7, %v1149_v43  ;;  %v1326_v50 = vrot.slane %v1289_v47, 4  ;;  %v1241_v43 = vpop.f32.mrf.mxu0 }
 0x157   : > { %1150 = vst [vmem:[#allocation1] ss:$9 sm:$0xff] %v996_v45  ;;  %v1327_v45 = vrot.slane %v1289_v47, 5 }
 0x158   : > { %1151 = vst [vmem:[#allocation1 + $0x1] ss:$9 sm:$0xff] %v997_v48  ;;  %v1242_v48 = vadd.f32 %v5352_v36, %v1241_v43 }
 0x159   : > { %1152 = vst [vmem:[#allocation1 + $0x2] ss:$9 sm:$0xff] %v998_v52  ;;  %v1328_v52 = vrot.slane %v1289_v47, 6 }
 0x15a   : > { %1153 = vst [vmem:[#allocation1 + $0x3] ss:$9 sm:$0xff] %v999_v58  ;;  %v1329_v58 = vrot.slane %v1289_v47, 7 }
 0x15b   : > { %1154 = vst [vmem:[#allocation1 + $0x4] ss:$9 sm:$0xff] %v1000_v59 }
 0x15c   : > { %1156 = vst [vmem:[#allocation1 + $0x6] ss:$9 sm:$0xff] %v882_v13  ;;  %v1290_v13 = vmax.f32 %v1242_v48, 0.0 }
 0x15d   : > { %1157 = vst [vmem:[#allocation1 + $0x7] ss:$9 sm:$0xff] %v1002_v51 }
 0x15e   : > { %v1330_v51 = vrot.slane %v1290_v13, 1  ;;  %v1331_v54 = vrot.slane %v1290_v13, 2  ;;  %v1332_v60 = vrot.slane %v1290_v13, 3  ;;  %v1333_v61 = vrot.slane %v1290_v13, 4  ;;  %v1244_v62 = vpop.f32.mrf.mxu0 }
 0x15f   : > { %v1336_v2 = vrot.slane %v1290_v13, 7 }
 0x164   : > { %v1158_v12 = vld [vmem:[#allocation1] sm:$0xff] }
 0x165   : > { %1159 = vst [vmem:[#allocation1] ss:$9 sm:$0xff] %v1003_v1  ;;  %4629 = vmatmul.msk.f32.gmra.mxu0 %vm1186_vm7, %v1158_v12  ;;  %v1334_v1 = vrot.slane %v1290_v13, 5  ;;  %v1459_v12 = vperm.slane %v1289_v47, 0 }
 0x166   : > { %1160 = vst [vmem:[#allocation1 + $0x1] ss:$9 sm:$0xff] %v1004_v63  ;;  %v1245_v63 = vadd.f32 %v5352_v36, %v1244_v62 }
 0x167   : > { %1161 = vst [vmem:[#allocation1 + $0x2] ss:$9 sm:$0xff] %v1005_v5  ;;  %v1335_v5 = vrot.slane %v1290_v13, 6 }
 0x168   : > { %1162 = vst [vmem:[#allocation1 + $0x3] ss:$9 sm:$0xff] %v1006_v8  ;;  %v5362_v3 = vmax.f32 %v1245_v63, 0.0 }
 0x169   : > { %1163 = vst [vmem:[#allocation1 + $0x4] ss:$9 sm:$0xff] %v1007_v41 }
 0x16a   : > { %1164 = vst [vmem:[#allocation1 + $0x5] ss:$9 sm:$0xff] %v1008_v11  ;;  %v1337_v15 = vrot.slane %v5362_v3, 1  ;;  %v1338_v32 = vrot.slane %v5362_v3, 2  ;;  %v1341_v19 = vrot.slane %v5362_v3, 5  ;;  %v1342_v20 = vrot.slane %v5362_v3, 6 }
 0x16b   : > { %1165 = vst [vmem:[#allocation1 + $0x6] ss:$9 sm:$0xff] %v883_v35 }
 0x16c   : > { %1166 = vst [vmem:[#allocation1 + $0x7] ss:$9 sm:$0xff] %v884_v16 }
 0x173   : > { %v1167_v17 = vld [vmem:[#allocation1] sm:$0xff] }
 0x174   : > { %1168 = vst [vmem:[#allocation1] ss:$9 sm:$0xff] %v1009_v6  ;;  %4630 = vmatmul.msk.f32.gmra.mxu0 %vm1186_vm7, %v1167_v17  ;;  %v1339_v17 = vrot.slane %v5362_v3, 3 }
 0x175   : > { %1169 = vst [vmem:[#allocation1 + $0x1] ss:$9 sm:$0xff] %v1010_v34 }
 0x176   : > { %1170 = vst [vmem:[#allocation1 + $0x2] ss:$9 sm:$0xff] %v1011_v18  ;;  %v1247_v18 = vpop.f32.mrf.mxu0 }
 0x177   : > { %1171 = vst [vmem:[#allocation1 + $0x3] ss:$9 sm:$0xff] %v1012_v14  ;;  %v1340_v14 = vrot.slane %v5362_v3, 4 }
 0x178   : > { %1172 = vst [vmem:[#allocation1 + $0x4] ss:$9 sm:$0xff] %v1013_v4  ;;  %v1248_v4 = vadd.f32 %v5352_v36, %v1247_v18 }
 0x179   : > { %1173 = vst [vmem:[#allocation1 + $0x5] ss:$9 sm:$0xff] %v1014_v27  ;;  %v1475_v27 = vperm.slane %v5362_v3, 0 }
 0x17a   : > { %1174 = vst [vmem:[#allocation1 + $0x6] ss:$9 sm:$0xff] %v1015_v22  ;;  %v1292_v22 = vmax.f32 %v1248_v4, 0.0 }
 0x17b   : > { %1175 = vst [vmem:[#allocation1 + $0x7] ss:$9 sm:$0xff] %v885_v55 }
 0x17c   : > { %v1349_v40 = vrot.slane %v1292_v22, 6  ;;  %v1346_v38 = vrot.slane %v1292_v22, 3  ;;  %v1347_v39 = vrot.slane %v1292_v22, 4 }
 0x17e   : > { %v1250_v30 = vpop.f32.mrf.mxu0 }
 0x182   : > { %v1176_v26 = vld [vmem:[#allocation1] sm:$0xff] }
 0x183   : > { %1177 = vst [vmem:[#allocation1] ss:$9 sm:$0xff] %v1016_v23  ;;  %4631 = vmatmul.msk.f32.gmra.mxu0 %vm1186_vm7, %v1176_v26 }
 0x184   : > { %1178 = vst [vmem:[#allocation1 + $0x1] ss:$9 sm:$0xff] %v1017_v25  ;;  %v1343_v25 = vrot.slane %v5362_v3, 7 }
 0x185   : > { %1179 = vst [vmem:[#allocation1 + $0x2] ss:$9 sm:$0xff] %v1018_v31  ;;  %v1344_v31 = vrot.slane %v1292_v22, 1 }
 0x186   : > { %1180 = vst [vmem:[#allocation1 + $0x3] ss:$9 sm:$0xff] %v1019_v37  ;;  %v1345_v37 = vrot.slane %v1292_v22, 2 }
 0x187   : > { %1181 = vst [vmem:[#allocation1 + $0x4] ss:$9 sm:$0xff] %v1020_v7 }
 0x188   : > { %1182 = vst [vmem:[#allocation1 + $0x5] ss:$9 sm:$0xff] %v1021_v42 }
 0x189   : > { %1183 = vst [vmem:[#allocation1 + $0x6] ss:$9 sm:$0xff] %v1022_v33  ;;  %v1348_v33 = vrot.slane %v1292_v22, 5 }
 0x18a   : > { %1184 = vst [vmem:[#allocation1 + $0x7] ss:$9 sm:$0xff] %v886_v44  ;;  %v1251_v44 = vadd.f32 %v5352_v36, %v1250_v30 }
 0x18c   : > { %v5404_v46 = vmax.f32 %v1251_v44, 0.0 }
 0x18e   : > { %v1355_v63 = vrot.slane %v5404_v46, 5 }
 0x191   : > { %v1185_v28 = vld [vmem:[#allocation1] sm:$0xff] }
 0x192   : > { %1492 = vst [vmem:[#allocation1 + $0x2] ss:$9 sm:$0xff] %v1289_v47  ;;  %4632 = vmatmul.msk.f32.gmra.mxu0 %vm1186_vm7, %v1185_v28  ;;  %v1460_v47 = vperm.slane %v1337_v15, 0 }
 0x193   : > { %1494 = vst [vmem:[#allocation1 + $0x3] ss:$9 sm:$0xff] %v1323_v49 }
 0x194   : > { %1496 = vst [vmem:[#allocation1 + $0x4] ss:$9 sm:$0xff] %v1324_v29  ;;  %v1350_v29 = vrot.slane %v1292_v22, 7 }
 0x195   : > { %1498 = vst [vmem:[#allocation1 + $0x5] ss:$9 sm:$0xff] %v1325_v21  ;;  %v1351_v21 = vrot.slane %v5404_v46, 1 }
 0x196   : > { %1500 = vst [vmem:[#allocation1 + $0x6] ss:$9 sm:$0xff] %v1326_v50 }
 0x197   : > { %1502 = vst [vmem:[#allocation1 + $0x7] ss:$9 sm:$0xff] %v1327_v45 }
 0x19e   : > { %v1503_v59 = vld [vmem:[#allocation1] sm:$0xff] }
 0x19f   : > { %1504 = vst [vmem:[#allocation1] ss:$9 sm:$0xff] %v1328_v52  ;;  %v5360_v0 = vsel %vm392_vm0, %v1459_v12, %v1503_v59  ;;  %v1352_v59 = vrot.slane %v5404_v46, 2  ;;  %v1253_v12 = vpop.f32.mrf.mxu0 }
 0x1a0   : > { %1506 = vst [vmem:[#allocation1 + $0x1] ss:$9 sm:$0xff] %v1329_v58  ;;  %v1939_v9 = vrot.slane %v5360_v0, 3  ;;  %v1827_v10 = vrot.slane %v5360_v0, 2  ;;  %v1715_v11 = vrot.slane %v5360_v0, 1 }
 0x1a1   : > { %1507 = vst [vmem:[#allocation1 + $0x2] ss:$9 sm:$0xff] %v1290_v13 }
 0x1a2   : > { %1508 = vst [vmem:[#allocation1 + $0x3] ss:$9 sm:$0xff] %v1330_v51 }
 0x1a3   : > { %1509 = vst [vmem:[#allocation1 + $0x4] ss:$9 sm:$0xff] %v1331_v54 }
 0x1a4   : > { %1510 = vst [vmem:[#allocation1 + $0x5] ss:$9 sm:$0xff] %v1332_v60  ;;  %v1353_v60 = vrot.slane %v5404_v46, 3 }
 0x1a5   : > { %1511 = vst [vmem:[#allocation1 + $0x6] ss:$9 sm:$0xff] %v1333_v61 }
 0x1a6   : > { %1512 = vst [vmem:[#allocation1 + $0x7] ss:$9 sm:$0xff] %v1334_v1  ;;  %v1354_v1 = vrot.slane %v5404_v46, 4 }
 0x1a7   : > { %v1256_v18 = vpop.f32.mrf.mxu0 }
 0x1a8   : > { %v1257_v4 = vadd.f32 %v5352_v36, %v1256_v18 }
 0x1ad   : > { %v5364_v8 = vld [vmem:[#allocation1] sm:$0xff] }
 0x1ae   : > { %1514 = vst [vmem:[#allocation1] ss:$9 sm:$0xff] %v1335_v5  ;;  %v1940_v41 = vrot.slane %v5364_v8, 3  ;;  %v1828_v57 = vrot.slane %v5364_v8, 2  ;;  %v1716_v35 = vrot.slane %v5364_v8, 1  ;;  %v1356_v5 = vrot.slane %v5404_v46, 6 }
 0x1af   : > { %1515 = vst [vmem:[#allocation1 + $0x1] ss:$9 sm:$0xff] %v1336_v2  ;;  %v1357_v2 = vrot.slane %v5404_v46, 7 }
 0x1b0   : > { %1516 = vst [vmem:[#allocation1 + $0x2] ss:$9 sm:$0xff] %v5362_v3  ;;  %v1941_v16 = vsel %vm699_vm1, %v1939_v9, %v1940_v41  ;;  %v1829_v56 = vsel %vm586_vm3, %v1827_v10, %v1828_v57  ;;  %v1717_v6 = vsel %vm473_vm2, %v1715_v11, %v1716_v35  ;;  %v1254_v3 = vadd.f32 %v5352_v36, %v1253_v12 }
 0x1b1   : > { %1979 = vrot.lane.b32.xlu2 %v1941_v16, %s4849_s25  ;;  %1867 = vrot.lane.b32.xlu1 %v1829_v56, %s4850_s26  ;;  %v1476_v9 = vperm.slane %v1351_v21, 0 }
 0x1b2   : > { %1755 = vrot.lane.b32.xlu0 %v1717_v6, %s4851_s27  ;;  %v1294_v11 = vmax.f32 %v1254_v3, 0.0 }
 0x1b4   : > { %v1358_v16 = vrot.slane %v1294_v11, 1  ;;  %v1360_v6 = vrot.slane %v1294_v11, 3 }
 0x1b7   : > { %v1517_v34 = vld [vmem:[#allocation1] sm:$0xff] }
 0x1b8   : > { %1518 = vst [vmem:[#allocation1 + $0x2] ss:$9 sm:$0xff] %v1337_v15  ;;  %v5390_v55 = vsel %vm1690_vm8, %v1517_v34, %v1475_v27  ;;  %v1361_v15 = vrot.slane %v1294_v11, 4  ;;  %v5450_v27 = vmax.f32 %v1257_v4, 0.0 }
 0x1b9   : > { %1519 = vst [vmem:[#allocation1 + $0x3] ss:$9 sm:$0xff] %v1338_v32  ;;  %v1830_v53 = vrot.slane %v5390_v55, 2  ;;  %v1718_v23 = vrot.slane %v5390_v55, 1  ;;  %v1942_v7 = vrot.slane %v5390_v55, 3  ;;  %v1362_v32 = vrot.slane %v1294_v11, 5 }
 0x1ba   : > { %1520 = vst [vmem:[#allocation1 + $0x4] ss:$9 sm:$0xff] %v1339_v17  ;;  %v1363_v17 = vrot.slane %v1294_v11, 6 }
 0x1bb   : > { %1521 = vst [vmem:[#allocation1 + $0x5] ss:$9 sm:$0xff] %v1340_v14  ;;  %1871 = vrot.lane.b32.xlu1 %v1830_v53, %s4850_s26  ;;  %1759 = vrot.lane.b32.xlu2 %v1718_v23, %s4851_s27  ;;  %v1719_v24 = vsel %vm473_vm2, %v1716_v35, %v1718_v23  ;;  %v1831_v42 = vsel %vm586_vm3, %v1828_v57, %v1830_v53 }
 0x1bc   : > { %1522 = vst [vmem:[#allocation1 + $0x6] ss:$9 sm:$0xff] %v1341_v19  ;;  %1757 = vrot.lane.b32.xlu0 %v1719_v24, %s4851_s27  ;;  %v1943_v49 = vsel %vm699_vm1, %v1940_v41, %v1942_v7  ;;  %v1364_v19 = vrot.slane %v1294_v11, 7  ;;  %v1365_v24 = vrot.slane %v5450_v27, 1 }
 0x1bd   : > { %1523 = vst [vmem:[#allocation1 + $0x7] ss:$9 sm:$0xff] %v1342_v20  ;;  %v1359_v20 = vrot.slane %v1294_v11, 2 }
 0x1c3   : > { %1869 = vrot.lane.b32.xlu1 %v1831_v42, %s4850_s26  ;;  %1983 = vrot.lane.b32.xlu2 %v1942_v7, %s4849_s25 }
 0x1c4   : > { %v1524_v26 = vld [vmem:[#allocation1] sm:$0xff] }
 0x1c5   : > { %1532 = vst [vmem:[#allocation1 + $0x7] ss:$9 sm:$0xff] %v1349_v40  ;;  %v5410_v28 = vsel %vm392_vm0, %v1460_v47, %v1524_v26  ;;  %v1366_v40 = vrot.slane %v5450_v27, 2 }
 0x1c6   : > { %1525 = vst [vmem:[#allocation1] ss:$9 sm:$0xff] %v1343_v25  ;;  %v1832_v45 = vrot.slane %v5410_v28, 2  ;;  %v1720_v48 = vrot.slane %v5410_v28, 1  ;;  %v1944_v51 = vrot.slane %v5410_v28, 3 }
 0x1c7   : > { %1526 = vst [vmem:[#allocation1 + $0x1] ss:$9 sm:$0xff] %v1292_v22  ;;  %v1461_v22 = vperm.slane %v1352_v59, 0 }
 0x1c8   : > { %1527 = vst [vmem:[#allocation1 + $0x2] ss:$9 sm:$0xff] %v1344_v31 }
 0x1c9   : > { %1528 = vst [vmem:[#allocation1 + $0x3] ss:$9 sm:$0xff] %v1345_v37 }
 0x1ca   : > { %1529 = vst [vmem:[#allocation1 + $0x4] ss:$9 sm:$0xff] %v1346_v38 }
 0x1cb   : > { %1530 = vst [vmem:[#allocation1 + $0x5] ss:$9 sm:$0xff] %v1347_v39  ;;  %1981 = vrot.lane.b32.xlu2 %v1943_v49, %s4849_s25  ;;  %v1259_v39 = vpop.f32.mrf.mxu0 }
 0x1cc   : > { %1531 = vst [vmem:[#allocation1 + $0x6] ss:$9 sm:$0xff] %v1348_v33  ;;  %v1368_v33 = vrot.slane %v5450_v27, 4  ;;  %v1260_v49 = vadd.f32 %v5352_v36, %v1259_v39 }
 0x1d3   : > { %v5414_v50 = vld [vmem:[#allocation1] sm:$0xff] }
 0x1d4   : > { %1534 = vst [vmem:[#allocation1] ss:$9 sm:$0xff] %v1350_v29  ;;  %v1833_v43 = vrot.slane %v5414_v50, 2  ;;  %v1721_v13 = vrot.slane %v5414_v50, 1  ;;  %v1945_v54 = vrot.slane %v5414_v50, 3  ;;  %v1370_v29 = vrot.slane %v5450_v27, 6 }
 0x1d5   : > { %1535 = vst [vmem:[#allocation1 + $0x1] ss:$9 sm:$0xff] %v5404_v46  ;;  %v1369_v46 = vrot.slane %v5450_v27, 5 }
 0x1d6   : > { %1536 = vst [vmem:[#allocation1 + $0x2] ss:$9 sm:$0xff] %v1351_v21  ;;  %v1834_v52 = vsel %vm586_vm3, %v1832_v45, %v1833_v43  ;;  %v1722_v58 = vsel %vm473_vm2, %v1720_v48, %v1721_v13  ;;  %v1946_v62 = vsel %vm699_vm1, %v1944_v51, %v1945_v54  ;;  %v1371_v45 = vrot.slane %v5450_v27, 7 }
 0x1d7   : > { %1873 = vrot.lane.b32.xlu1 %v1834_v52, %s4850_s26  ;;  %1761 = vrot.lane.b32.xlu0 %v1722_v58, %s4851_s27  ;;  %v1296_v48 = vmax.f32 %v1260_v49, 0.0 }
 0x1dd   : > { %v1537_v61 = vld [vmem:[#allocation1] sm:$0xff] }
 0x1de   : > { %1538 = vst [vmem:[#allocation1 + $0x2] ss:$9 sm:$0xff] %v1352_v59  ;;  %v5437_v10 = vsel %vm1690_vm8, %v1537_v61, %v1476_v9  ;;  %v1373_v61 = vrot.slane %v1296_v48, 2  ;;  %v1378_v9 = vrot.slane %v1296_v48, 7 }
 0x1df   : > { %1539 = vst [vmem:[#allocation1 + $0x3] ss:$9 sm:$0xff] %v1353_v60  ;;  %1985 = vrot.lane.b32.xlu0 %v1946_v62, %s4849_s25  ;;  %v1835_v41 = vrot.slane %v5437_v10, 2  ;;  %v1723_v57 = vrot.slane %v5437_v10, 1  ;;  %v1947_v34 = vrot.slane %v5437_v10, 3  ;;  %v1262_v60 = vpop.f32.mrf.mxu0  ;;  %v1375_v62 = vrot.slane %v1296_v48, 4 }
 0x1e0   : > { %1540 = vst [vmem:[#allocation1 + $0x4] ss:$9 sm:$0xff] %v1354_v1  ;;  %v1263_v12 = vadd.f32 %v5352_v36, %v1262_v60 }
 0x1e1   : > { %1541 = vst [vmem:[#allocation1 + $0x5] ss:$9 sm:$0xff] %v1355_v63  ;;  %1877 = vrot.lane.b32.xlu1 %v1835_v41, %s4850_s26  ;;  %1765 = vrot.lane.b32.xlu2 %v1723_v57, %s4851_s27  ;;  %v1724_v35 = vsel %vm473_vm2, %v1721_v13, %v1723_v57  ;;  %v1836_v14 = vsel %vm586_vm3, %v1833_v43, %v1835_v41  ;;  %v1367_v43 = vrot.slane %v5450_v27, 3  ;;  %v1477_v13 = vperm.slane %v1366_v40, 0 }
 0x1e2   : > { %1542 = vst [vmem:[#allocation1 + $0x6] ss:$9 sm:$0xff] %v1356_v5  ;;  %v1948_v53 = vsel %vm699_vm1, %v1945_v54, %v1947_v34  ;;  %v1372_v54 = vrot.slane %v1296_v48, 1  ;;  %v1376_v63 = vrot.slane %v1296_v48, 5  ;;  %v1377_v5 = vrot.slane %v1296_v48, 6 }
 0x1e3   : > { %1543 = vst [vmem:[#allocation1 + $0x7] ss:$9 sm:$0xff] %v1357_v2  ;;  %v1374_v57 = vrot.slane %v1296_v48, 3 }
 0x1e7   : > { %1763 = vrot.lane.b32.xlu0 %v1724_v35, %s4851_s27  ;;  %v1462_v35 = vperm.slane %v1367_v43, 0 }
 0x1e9   : > { %1875 = vrot.lane.b32.xlu1 %v1836_v14, %s4850_s26  ;;  %1989 = vrot.lane.b32.xlu2 %v1947_v34, %s4849_s25 }
 0x1ea   : > { %v1544_v56 = vld [vmem:[#allocation1] sm:$0xff] }
 0x1eb   : > { %1545 = vst [vmem:[#allocation1] ss:$9 sm:$0xff] %v1294_v11  ;;  %v5455_v23 = vsel %vm392_vm0, %v1461_v22, %v1544_v56  ;;  %v5496_v11 = vmax.f32 %v1263_v12, 0.0 }
 0x1ec   : > { %1546 = vst [vmem:[#allocation1 + $0x1] ss:$9 sm:$0xff] %v1358_v16  ;;  %v1837_v26 = vrot.slane %v5455_v23, 2  ;;  %v1725_v37 = vrot.slane %v5455_v23, 1  ;;  %v1949_v44 = vrot.slane %v5455_v23, 3 }
 0x1ed   : > { %1548 = vst [vmem:[#allocation1 + $0x3] ss:$9 sm:$0xff] %v1360_v6  ;;  %v1379_v56 = vrot.slane %v5496_v11, 1  ;;  %v1380_v6 = vrot.slane %v5496_v11, 2 }
 0x1ee   : > { %1549 = vst [vmem:[#allocation1 + $0x4] ss:$9 sm:$0xff] %v1361_v15  ;;  %v1381_v15 = vrot.slane %v5496_v11, 3 }
 0x1ef   : > { %1550 = vst [vmem:[#allocation1 + $0x5] ss:$9 sm:$0xff] %v1362_v32 }
 0x1f0   : > { %1551 = vst [vmem:[#allocation1 + $0x6] ss:$9 sm:$0xff] %v1363_v17 }
 0x1f1   : > { %1552 = vst [vmem:[#allocation1 + $0x7] ss:$9 sm:$0xff] %v1364_v19  ;;  %1987 = vrot.lane.b32.xlu2 %v1948_v53, %s4849_s25  ;;  %v1265_v19 = vpop.f32.mrf.mxu0 }
 0x1f2   : > { %1547 = vst [vmem:[#allocation1 + $0x2] ss:$9 sm:$0xff] %v1359_v20 }
 0x1f9   : > { %v5459_v25 = vld [vmem:[#allocation1] sm:$0xff] }
 0x1fa   : > { %1554 = vst [vmem:[#allocation1] ss:$9 sm:$0xff] %v5450_v27  ;;  %v1838_v31 = vrot.slane %v5459_v25, 2  ;;  %v1726_v38 = vrot.slane %v5459_v25, 1  ;;  %v1950_v42 = vrot.slane %v5459_v25, 3  ;;  %v1266_v27 = vadd.f32 %v5352_v36, %v1265_v19 }
 0x1fb   : > { %1555 = vst [vmem:[#allocation1 + $0x1] ss:$9 sm:$0xff] %v1365_v24  ;;  %v1383_v24 = vrot.slane %v5496_v11, 5 }
 0x1fc   : > { %1556 = vst [vmem:[#allocation1 + $0x2] ss:$9 sm:$0xff] %v1366_v40  ;;  %v1839_v30 = vsel %vm586_vm3, %v1837_v26, %v1838_v31  ;;  %v1727_v7 = vsel %vm473_vm2, %v1725_v37, %v1726_v38  ;;  %v1951_v21 = vsel %vm699_vm1, %v1949_v44, %v1950_v42  ;;  %v1384_v26 = vrot.slane %v5496_v11, 6 }
 0x1fd   : > { %1879 = vrot.lane.b32.xlu1 %v1839_v30, %s4850_s26  ;;  %1767 = vrot.lane.b32.xlu0 %v1727_v7, %s4851_s27  ;;  %v1298_v37 = vmax.f32 %v1266_v27, 0.0  ;;  %v1382_v30 = vrot.slane %v5496_v11, 4  ;;  %v1478_v7 = vperm.slane %v1381_v15, 0 }
 0x1ff   : > { %v1386_v39 = vrot.slane %v1298_v37, 1  ;;  %v1389_v60 = vrot.slane %v1298_v37, 4 }
 0x203   : > { %v1557_v47 = vld [vmem:[#allocation1] sm:$0xff] }
 0x204   : > { %1559 = vst [vmem:[#allocation1 + $0x3] ss:$9 sm:$0xff] %v1368_v33  ;;  %v5481_v52 = vsel %vm1690_vm8, %v1557_v47, %v1477_v13  ;;  %v1268_v47 = vpop.f32.mrf.mxu0 }
 0x205   : > { %1560 = vst [vmem:[#allocation1 + $0x4] ss:$9 sm:$0xff] %v1369_v46  ;;  %1991 = vrot.lane.b32.xlu0 %v1951_v21, %s4849_s25  ;;  %v1952_v58 = vrot.slane %v5481_v52, 3  ;;  %v1840_v59 = vrot.slane %v5481_v52, 2  ;;  %v1728_v51 = vrot.slane %v5481_v52, 1  ;;  %v1269_v49 = vadd.f32 %v5352_v36, %v1268_v47 }
 0x206   : > { %1561 = vst [vmem:[#allocation1 + $0x5] ss:$9 sm:$0xff] %v1370_v29  ;;  %v1387_v29 = vrot.slane %v1298_v37, 2  ;;  %v1388_v21 = vrot.slane %v1298_v37, 3 }
 0x207   : > { %1562 = vst [vmem:[#allocation1 + $0x6] ss:$9 sm:$0xff] %v1371_v45  ;;  %1995 = vrot.lane.b32.xlu1 %v1952_v58, %s4849_s25  ;;  %1883 = vrot.lane.b32.xlu2 %v1840_v59, %s4850_s26  ;;  %v1953_v2 = vsel %vm699_vm1, %v1950_v42, %v1952_v58  ;;  %v1841_v3 = vsel %vm586_vm3, %v1838_v31, %v1840_v59  ;;  %v5534_v13 = vmax.f32 %v1269_v49, 0.0 }
 0x208   : > { %1558 = vst [vmem:[#allocation1 + $0x2] ss:$9 sm:$0xff] %v1367_v43  ;;  %v1729_v41 = vsel %vm473_vm2, %v1726_v38, %v1728_v51  ;;  %v1385_v38 = vrot.slane %v5496_v11, 7  ;;  %v1390_v43 = vrot.slane %v1298_v37, 5 }
 0x209   : > { %1563 = vst [vmem:[#allocation1 + $0x7] ss:$9 sm:$0xff] %v1296_v48  ;;  %v1391_v48 = vrot.slane %v1298_v37, 6  ;;  %v1395_v12 = vrot.slane %v5534_v13, 3 }
 0x20d   : > { %1771 = vrot.lane.b32.xlu0 %v1728_v51, %s4851_s27  ;;  %v1392_v51 = vrot.slane %v1298_v37, 7 }
 0x20f   : > { %1993 = vrot.lane.b32.xlu2 %v1953_v2, %s4849_s25  ;;  %1881 = vrot.lane.b32.xlu1 %v1841_v3, %s4850_s26 }
 0x210   : > { %v1564_v1 = vld [vmem:[#allocation1] sm:$0xff] }
 0x211   : > { %1565 = vst [vmem:[#allocation1] ss:$9 sm:$0xff] %v1372_v54  ;;  %v5500_v16 = vsel %vm392_vm0, %v1462_v35, %v1564_v1  ;;  %v1463_v1 = vperm.slane %v1382_v30, 0  ;;  %v1271_v35 = vpop.f32.mrf.mxu0 }
 0x212   : > { %1566 = vst [vmem:[#allocation1 + $0x1] ss:$9 sm:$0xff] %v1373_v61  ;;  %v1954_v34 = vrot.slane %v5500_v16, 3  ;;  %v1730_v18 = vrot.slane %v5500_v16, 1  ;;  %v1842_v22 = vrot.slane %v5500_v16, 2  ;;  %v1393_v61 = vrot.slane %v5534_v13, 1 }
 0x213   : > { %1568 = vst [vmem:[#allocation1 + $0x3] ss:$9 sm:$0xff] %v1375_v62 }
 0x214   : > { %1569 = vst [vmem:[#allocation1 + $0x4] ss:$9 sm:$0xff] %v1376_v63  ;;  %v1394_v63 = vrot.slane %v5534_v13, 2 }
 0x215   : > { %1570 = vst [vmem:[#allocation1 + $0x5] ss:$9 sm:$0xff] %v1377_v5  ;;  %1769 = vrot.lane.b32.xlu0 %v1729_v41, %s4851_s27  ;;  %v1396_v5 = vrot.slane %v5534_v13, 4 }
 0x216   : > { %1571 = vst [vmem:[#allocation1 + $0x6] ss:$9 sm:$0xff] %v1378_v9 }
 0x217   : > { %1567 = vst [vmem:[#allocation1 + $0x2] ss:$9 sm:$0xff] %v1374_v57 }
 0x218   : > { %1572 = vst [vmem:[#allocation1 + $0x7] ss:$9 sm:$0xff] %v5496_v11 }
 0x21f   : > { %v5505_v32 = vld [vmem:[#allocation1] sm:$0xff] }
 0x220   : > { %1574 = vst [vmem:[#allocation1] ss:$9 sm:$0xff] %v1379_v56  ;;  %v1955_v17 = vrot.slane %v5505_v32, 3  ;;  %v1731_v14 = vrot.slane %v5505_v32, 1  ;;  %v1843_v53 = vrot.slane %v5505_v32, 2 }
 0x221   : > { %1575 = vst [vmem:[#allocation1 + $0x1] ss:$9 sm:$0xff] %v1380_v6 }
 0x222   : > { %1576 = vst [vmem:[#allocation1 + $0x2] ss:$9 sm:$0xff] %v1381_v15  ;;  %v1956_v20 = vsel %vm699_vm1, %v1954_v34, %v1955_v17  ;;  %v1732_v4 = vsel %vm473_vm2, %v1730_v18, %v1731_v14  ;;  %v1844_v40 = vsel %vm586_vm3, %v1842_v22, %v1843_v53  ;;  %v5564_v18 = vpop.permute.xlu2 %1979  ;;  %v1397_v22 = vrot.slane %v5534_v13, 5 }
 0x223   : > { %1997 = vrot.lane.b32.xlu2 %v1956_v20, %s4849_s25  ;;  %1773 = vrot.lane.b32.xlu1 %v1732_v4, %s4851_s27  ;;  %v1479_v20 = vperm.slane %v1396_v5, 0  ;;  %v1399_v4 = vrot.slane %v5534_v13, 7 }
 0x224   : > { %1885 = vrot.lane.b32.xlu0 %v1844_v40, %s4850_s26 }
 0x229   : > { %v1577_v31 = vld [vmem:[#allocation1] sm:$0xff] }
 0x22a   : > { %1579 = vst [vmem:[#allocation1 + $0x3] ss:$9 sm:$0xff] %v1383_v24  ;;  %v5525_v42 = vsel %vm1690_vm8, %v1577_v31, %v1478_v7 }
 0x22b   : > { %1580 = vst [vmem:[#allocation1 + $0x4] ss:$9 sm:$0xff] %v1384_v26  ;;  %v1957_v33 = vrot.slane %v5525_v42, 3  ;;  %v1845_v44 = vrot.slane %v5525_v42, 2  ;;  %v1733_v46 = vrot.slane %v5525_v42, 1 }
 0x22c   : > { %1581 = vst [vmem:[#allocation1 + $0x5] ss:$9 sm:$0xff] %v1385_v38  ;;  %v5578_v38 = vpop.permute.xlu2 %1759 }
 0x22d   : > { %1578 = vst [vmem:[#allocation1 + $0x2] ss:$9 sm:$0xff] %v1382_v30  ;;  %2001 = vrot.lane.b32.xlu2 %v1957_v33, %s4849_s25  ;;  %1889 = vrot.lane.b32.xlu1 %v1845_v44, %s4850_s26  ;;  %v1958_v58 = vsel %vm699_vm1, %v1955_v17, %v1957_v33  ;;  %v1846_v59 = vsel %vm586_vm3, %v1843_v53, %v1845_v44  ;;  %v1274_v30 = vpop.f32.mrf.mxu0 }
 0x22e   : > { %1582 = vst [vmem:[#allocation1 + $0x6] ss:$9 sm:$0xff] %v1298_v37  ;;  %1777 = vrot.lane.b32.xlu0 %v1733_v46, %s4851_s27  ;;  %v1734_v54 = vsel %vm473_vm2, %v1731_v14, %v1733_v46  ;;  %v1272_v17 = vadd.f32 %v5352_v36, %v1271_v35  ;;  %v1398_v14 = vrot.slane %v5534_v13, 6  ;;  %v1275_v7 = vadd.f32 %v5352_v36, %v1274_v30  ;;  %v5613_v35 = vpop.permute.xlu0 %1755 }
 0x22f   : > { %1583 = vst [vmem:[#allocation1 + $0x7] ss:$9 sm:$0xff] %v1386_v39 }
 0x230   : > { %v1300_v19 = vmax.f32 %v1272_v17, 0.0 }
 0x232   : > { %v1400_v26 = vrot.slane %v1300_v19, 1  ;;  %v1401_v31 = vrot.slane %v1300_v19, 2  ;;  %v1402_v44 = vrot.slane %v1300_v19, 3  ;;  %v1403_v46 = vrot.slane %v1300_v19, 4 }
 0x233   : > { %v1405_v49 = vrot.slane %v1300_v19, 6 }
 0x235   : > { %1999 = vrot.lane.b32.xlu2 %v1958_v58, %s4849_s25  ;;  %1887 = vrot.lane.b32.xlu1 %v1846_v59, %s4850_s26  ;;  %v5593_v58 = vpop.permute.xlu1 %1867 }
 0x236   : > { %v1584_v45 = vld [vmem:[#allocation1] sm:$0xff]  ;;  %1775 = vrot.lane.b32.xlu0 %v1734_v54, %s4851_s27 }
 0x237   : > { %1585 = vst [vmem:[#allocation1] ss:$9 sm:$0xff] %v1387_v29  ;;  %v5545_v62 = vsel %vm392_vm0, %v1463_v1, %v1584_v45  ;;  %v5586_v29 = vmax.f32 %v1275_v7, 0.0  ;;  %v5588_v45 = vpop.permute.xlu2 %1983 }
 0x238   : > { %1586 = vst [vmem:[#allocation1 + $0x1] ss:$9 sm:$0xff] %v1388_v21  ;;  %v1959_v3 = vrot.slane %v5545_v62, 3  ;;  %v1847_v41 = vrot.slane %v5545_v62, 2  ;;  %v1735_v56 = vrot.slane %v5545_v62, 1  ;;  %v1406_v21 = vrot.slane %v1300_v19, 7 }
 0x239   : > { %1588 = vst [vmem:[#allocation1 + $0x3] ss:$9 sm:$0xff] %v1390_v43  ;;  %v1404_v43 = vrot.slane %v1300_v19, 5  ;;  %v1410_v1 = vrot.slane %v5586_v29, 4 }
 0x23a   : > { %1589 = vst [vmem:[#allocation1 + $0x4] ss:$9 sm:$0xff] %v1391_v48  ;;  %v1407_v48 = vrot.slane %v5586_v29, 1 }
 0x23b   : > { %1590 = vst [vmem:[#allocation1 + $0x5] ss:$9 sm:$0xff] %v1392_v51  ;;  %v1464_v51 = vperm.slane %v1397_v22, 0 }
 0x23c   : > { %1587 = vst [vmem:[#allocation1 + $0x2] ss:$9 sm:$0xff] %v1389_v60 }
 0x23d   : > { %1591 = vst [vmem:[#allocation1 + $0x6] ss:$9 sm:$0xff] %v5534_v13  ;;  %v1408_v13 = vrot.slane %v5586_v29, 2 }
 0x23e   : > { %1592 = vst [vmem:[#allocation1 + $0x7] ss:$9 sm:$0xff] %v1393_v61  ;;  %v1409_v61 = vrot.slane %v5586_v29, 3 }
 0x23f   : > { %v5597_v54 = vpop.permute.xlu2 %1981 }
 0x245   : > { %v5550_v2 = vld [vmem:[#allocation1] sm:$0xff] }
 0x246   : > { %1594 = vst [vmem:[#allocation1] ss:$9 sm:$0xff] %v1394_v63  ;;  %v1960_v9 = vrot.slane %v5550_v2, 3  ;;  %v1848_v57 = vrot.slane %v5550_v2, 2  ;;  %v1736_v11 = vrot.slane %v5550_v2, 1  ;;  %v1411_v63 = vrot.slane %v5586_v29, 5 }
 0x247   : > { %1595 = vst [vmem:[#allocation1 + $0x1] ss:$9 sm:$0xff] %v1395_v12 }
 0x248   : > { %1596 = vst [vmem:[#allocation1 + $0x2] ss:$9 sm:$0xff] %v1396_v5  ;;  %v1961_v6 = vsel %vm699_vm1, %v1959_v3, %v1960_v9  ;;  %v1849_v15 = vsel %vm586_vm3, %v1847_v41, %v1848_v57  ;;  %v1737_v34 = vsel %vm473_vm2, %v1735_v56, %v1736_v11  ;;  %v1277_v5 = vpop.f32.mrf.mxu0 }
 0x249   : > { %2003 = vrot.lane.b32.xlu2 %v1961_v6, %s4849_s25  ;;  %1891 = vrot.lane.b32.xlu1 %v1849_v15, %s4850_s26  ;;  %v1278_v15 = vadd.f32 %v5352_v36, %v1277_v5 }
 0x24a   : > { %1779 = vrot.lane.b32.xlu0 %v1737_v34, %s4851_s27  ;;  %v5620_v34 = vpop.permute.xlu2 %1765 }
 0x24f   : > { %v1597_v27 = vld [vmem:[#allocation1] sm:$0xff] }
 0x250   : > { %1599 = vst [vmem:[#allocation1 + $0x3] ss:$9 sm:$0xff] %v1398_v14  ;;  %v5571_v53 = vsel %vm1690_vm8, %v1597_v27, %v1479_v20  ;;  %v1302_v14 = vmax.f32 %v1278_v15, 0.0 }
 0x251   : > { %1600 = vst [vmem:[#allocation1 + $0x4] ss:$9 sm:$0xff] %v1399_v4  ;;  %v1850_v24 = vrot.slane %v5571_v53, 2  ;;  %v1738_v40 = vrot.slane %v5571_v53, 1  ;;  %v1962_v39 = vrot.slane %v5571_v53, 3  ;;  %v1480_v4 = vperm.slane %v1411_v63, 0 }
 0x252   : > { %1598 = vst [vmem:[#allocation1 + $0x2] ss:$9 sm:$0xff] %v1397_v22  ;;  %v1412_v22 = vrot.slane %v5586_v29, 6  ;;  %v1415_v7 = vrot.slane %v1302_v14, 2  ;;  %v1419_v5 = vrot.slane %v1302_v14, 6 }
 0x253   : > { %1601 = vst [vmem:[#allocation1 + $0x5] ss:$9 sm:$0xff] %v1300_v19  ;;  %1895 = vrot.lane.b32.xlu1 %v1850_v24, %s4850_s26  ;;  %1783 = vrot.lane.b32.xlu2 %v1738_v40, %s4851_s27  ;;  %v1739_v37 = vsel %vm473_vm2, %v1736_v11, %v1738_v40  ;;  %v1851_v33 = vsel %vm586_vm3, %v1848_v57, %v1850_v24  ;;  %v5611_v11 = vpop.permute.xlu1 %1871  ;;  %v1413_v19 = vrot.slane %v5586_v29, 7 }
 0x254   : > { %1602 = vst [vmem:[#allocation1 + $0x6] ss:$9 sm:$0xff] %v1400_v26  ;;  %1781 = vrot.lane.b32.xlu0 %v1739_v37, %s4851_s27  ;;  %v1963_v59 = vsel %vm699_vm1, %v1960_v9, %v1962_v39  ;;  %v1465_v15 = vperm.slane %v1412_v22, 0 }
 0x255   : > { %1603 = vst [vmem:[#allocation1 + $0x7] ss:$9 sm:$0xff] %v1401_v31  ;;  %v1414_v31 = vrot.slane %v1302_v14, 1 }
 0x25b   : > { %1893 = vrot.lane.b32.xlu1 %v1851_v33, %s4850_s26  ;;  %2007 = vrot.lane.b32.xlu2 %v1962_v39, %s4849_s25  ;;  %v5630_v26 = vpop.permute.xlu1 %1869  ;;  %v5635_v39 = vpop.permute.xlu0 %1757  ;;  %v1416_v33 = vrot.slane %v1302_v14, 3 }
 0x25c   : > { %v1604_v47 = vld [vmem:[#allocation1] sm:$0xff] }
 0x25d   : > { %1605 = vst [vmem:[#allocation1] ss:$9 sm:$0xff] %v1402_v44  ;;  %v5600_v60 = vsel %vm392_vm0, %v1464_v51, %v1604_v47  ;;  %v1280_v44 = vpop.f32.mrf.mxu0  ;;  %v1418_v51 = vrot.slane %v1302_v14, 5 }
 0x25e   : > { %1606 = vst [vmem:[#allocation1 + $0x1] ss:$9 sm:$0xff] %v1403_v46  ;;  %v1852_v3 = vrot.slane %v5600_v60, 2  ;;  %v1740_v41 = vrot.slane %v5600_v60, 1  ;;  %v1964_v20 = vrot.slane %v5600_v60, 3  ;;  %v5639_v46 = vpop.permute.xlu2 %1989 }
 0x25f   : > { %1608 = vst [vmem:[#allocation1 + $0x3] ss:$9 sm:$0xff] %v1405_v49  ;;  %v1281_v49 = vadd.f32 %v5352_v36, %v1280_v44 }
 0x260   : > { %1609 = vst [vmem:[#allocation1 + $0x4] ss:$9 sm:$0xff] %v1406_v21 }
 0x261   : > { %1607 = vst [vmem:[#allocation1 + $0x2] ss:$9 sm:$0xff] %v1404_v43 }
 0x262   : > { %1610 = vst [vmem:[#allocation1 + $0x5] ss:$9 sm:$0xff] %v5586_v29 }
 0x263   : > { %1611 = vst [vmem:[#allocation1 + $0x6] ss:$9 sm:$0xff] %v1407_v48  ;;  %2005 = vrot.lane.b32.xlu2 %v1963_v59, %s4849_s25  ;;  %v5647_v48 = vpop.permute.xlu1 %1873  ;;  %v1417_v59 = vrot.slane %v1302_v14, 4 }
 0x264   : > { %1612 = vst [vmem:[#allocation1 + $0x7] ss:$9 sm:$0xff] %v1408_v13  ;;  %v5649_v13 = vpop.permute.xlu0 %1761 }
 0x26b   : > { %v5605_v12 = vld [vmem:[#allocation1] sm:$0xff] }
 0x26c   : > { %1614 = vst [vmem:[#allocation1] ss:$9 sm:$0xff] %v1409_v61  ;;  %v1853_v9 = vrot.slane %v5605_v12, 2  ;;  %v1741_v57 = vrot.slane %v5605_v12, 1  ;;  %v1965_v17 = vrot.slane %v5605_v12, 3 }
 0x26d   : > { %1615 = vst [vmem:[#allocation1 + $0x1] ss:$9 sm:$0xff] %v1410_v1  ;;  %v5653_v1 = vmax.f32 %v1281_v49, 0.0 }
 0x26e   : > { %1616 = vst [vmem:[#allocation1 + $0x2] ss:$9 sm:$0xff] %v1411_v63  ;;  %v1854_v56 = vsel %vm586_vm3, %v1852_v3, %v1853_v9  ;;  %v1742_v6 = vsel %vm473_vm2, %v1740_v41, %v1741_v57  ;;  %v1966_v24 = vsel %vm699_vm1, %v1964_v20, %v1965_v17  ;;  %v1420_v63 = vrot.slane %v1302_v14, 7 }
 0x26f   : > { %1897 = vrot.lane.b32.xlu1 %v1854_v56, %s4850_s26  ;;  %1785 = vrot.lane.b32.xlu0 %v1742_v6, %s4851_s27  ;;  %v1421_v3 = vrot.slane %v5653_v1, 1  ;;  %v1422_v41 = vrot.slane %v5653_v1, 2  ;;  %v5662_v56 = vpop.permute.xlu0 %1985  ;;  %v5664_v6 = vpop.permute.xlu1 %1877  ;;  %v1424_v20 = vrot.slane %v5653_v1, 4 }
 0x275   : > { %v1617_v27 = vld [vmem:[#allocation1] sm:$0xff] }
 0x276   : > { %1619 = vst [vmem:[#allocation1 + $0x3] ss:$9 sm:$0xff] %v1413_v19  ;;  %v5628_v40 = vsel %vm1690_vm8, %v1617_v27, %v1480_v4  ;;  %v1456_v19 = vld [vmem:[%s7235_s3 + $0x70] sm:$0xff]  ;;  %v1425_v27 = vrot.slane %v5653_v1, 5 }
 0x277   : > { %1618 = vst [vmem:[#allocation1 + $0x2] ss:$9 sm:$0xff] %v1412_v22  ;;  %2009 = vrot.lane.b32.xlu0 %v1966_v24, %s4849_s25  ;;  %v1855_v37 = vrot.slane %v5628_v40, 2  ;;  %v1743_v30 = vrot.slane %v5628_v40, 1  ;;  %v1967_v47 = vrot.slane %v5628_v40, 3  ;;  %v1426_v22 = vrot.slane %v5653_v1, 6 }
 0x278   : > { %1620 = vst [vmem:[#allocation1 + $0x4] ss:$9 sm:$0xff] %v1302_v14 }
 0x279   : > { %1621 = vst [vmem:[#allocation1 + $0x5] ss:$9 sm:$0xff] %v1414_v31  ;;  %1901 = vrot.lane.b32.xlu1 %v1855_v37, %s4850_s26  ;;  %1789 = vrot.lane.b32.xlu2 %v1743_v30, %s4851_s27  ;;  %v1744_v29 = vsel %vm473_vm2, %v1741_v57, %v1743_v30  ;;  %v1856_v21 = vsel %vm586_vm3, %v1853_v9, %v1855_v37  ;;  %v5656_v9 = vpop.permute.xlu2 %1987  ;;  %v1423_v57 = vrot.slane %v5653_v1, 3  ;;  %v1283_v31 = vpop.f32.mrf.mxu0  ;;  %v1455_v37 = vld [vmem:[%s7235_s3 + $0x68] sm:$0xff] }
 0x27a   : > { %1622 = vst [vmem:[#allocation1 + $0x6] ss:$9 sm:$0xff] %v1415_v7  ;;  %v1968_v43 = vsel %vm699_vm1, %v1965_v17, %v1967_v47  ;;  %v1457_v17 = vld [vmem:[%s7235_s3 + $0x78] sm:$0xff] }
 0x27b   : > { %1623 = vst [vmem:[#allocation1 + $0x7] ss:$9 sm:$0xff] %v1416_v33  ;;  %2316 = vmatpush.msra.mxu1 %v1457_v17 }
 0x27d   : > { %2317 = vmatpush.msra.mxu1 %v1456_v19 }
 0x27f   : > { %1787 = vrot.lane.b32.xlu0 %v1744_v29, %s4851_s27  ;;  %2318 = vmatpush.msra.mxu1 %v1455_v37  ;;  %v1451_v37 = vld [vmem:[%s7235_s3 + $0x48] sm:$0xff] }
 0x281   : > { %1899 = vrot.lane.b32.xlu1 %v1856_v21, %s4850_s26  ;;  %2011 = vrot.lane.b32.xlu2 %v1968_v43, %s4849_s25  ;;  %v5676_v4 = vpop.permute.xlu2 %1883  ;;  %v5692_v21 = vpop.permute.xlu1 %1875 }
 0x282   : > { %v1624_v61 = vld [vmem:[#allocation1] sm:$0xff]  ;;  %v5694_v43 = vpop.permute.xlu0 %1763 }
 0x283   : > { %1625 = vst [vmem:[#allocation1] ss:$9 sm:$0xff] %v1417_v59  ;;  %v5670_v14 = vsel %vm392_vm0, %v1465_v15, %v1624_v61  ;;  %v1454_v59 = vld [vmem:[%s7235_s3 + $0x60] sm:$0xff]  ;;  %v1453_v61 = vld [vmem:[%s7235_s3 + $0x58] sm:$0xff]  ;;  %v1452_v15 = vld [vmem:[%s7235_s3 + $0x50] sm:$0xff] }
 0x284   : > { %1626 = vst [vmem:[#allocation1 + $0x1] ss:$9 sm:$0xff] %v1418_v51  ;;  %v1857_v30 = vrot.slane %v5670_v14, 2  ;;  %v1745_v33 = vrot.slane %v5670_v14, 1  ;;  %2319 = vmatpush.msra.mxu1 %v1454_v59 }
 0x285   : > { %1628 = vst [vmem:[#allocation1 + $0x3] ss:$9 sm:$0xff] %v1420_v63  ;;  %v1427_v63 = vrot.slane %v5653_v1, 7 }
 0x286   : > { %1627 = vst [vmem:[#allocation1 + $0x2] ss:$9 sm:$0xff] %v1419_v5  ;;  %v1969_v5 = vrot.slane %v5670_v14, 3  ;;  %2320 = vmatpush.msra.mxu1 %v1453_v61  ;;  %v1450_v61 = vld [vmem:[%s7235_s3 + $0x40] sm:$0xff] }
 0x287   : > { %1629 = vst [vmem:[#allocation1 + $0x4] ss:$9 sm:$0xff] %v5653_v1 }
 0x288   : > { %1630 = vst [vmem:[#allocation1 + $0x5] ss:$9 sm:$0xff] %v1421_v3  ;;  %v1481_v3 = vperm.slane %v1426_v22, 0  ;;  %2321 = vmatpush.msra.mxu1 %v1452_v15  ;;  %v1448_v15 = vld [vmem:[%s7235_s3 + $0x30] sm:$0xff] }
 0x289   : > { %1631 = vst [vmem:[#allocation1 + $0x6] ss:$9 sm:$0xff] %v1422_v41  ;;  %2013 = vrot.lane.b32.xlu2 %v1967_v47, %s4849_s25  ;;  %v1284_v47 = vadd.f32 %v5352_v36, %v1283_v31  ;;  %v5709_v41 = vpop.permute.xlu2 %1993 }
 0x28a   : > { %1632 = vst [vmem:[#allocation1 + $0x7] ss:$9 sm:$0xff] %v1423_v57  ;;  %2322 = vmatpush.msra.mxu1 %v1451_v37 }
 0x28b   : > { %v5701_v51 = vmax.f32 %v1284_v47, 0.0  ;;  %v5732_v47 = vpop.permute.xlu0 %1767 }
 0x28c   : > { %2323 = vmatpush.msra.mxu1 %v1450_v61 }
 0x28d   : > { %v1428_v17 = vrot.slane %v5701_v51, 1  ;;  %v1434_v61 = vrot.slane %v5701_v51, 7 }
 0x291   : > { %v5680_v24 = vld [vmem:[#allocation1] sm:$0xff] }
 0x292   : > { %1634 = vst [vmem:[#allocation1] ss:$9 sm:$0xff] %v1424_v20  ;;  %v1858_v7 = vrot.slane %v5680_v24, 2  ;;  %v1746_v44 = vrot.slane %v5680_v24, 1  ;;  %v1970_v36 = vrot.slane %v5680_v24, 3 }
 0x293   : > { %1635 = vst [vmem:[#allocation1 + $0x1] ss:$9 sm:$0xff] %v1425_v27  ;;  %v1429_v27 = vrot.slane %v5701_v51, 2  ;;  %v5761_v37 = vpop.permute.xlu0 %1991 }
 0x294   : > { %1636 = vst [vmem:[#allocation1 + $0x2] ss:$9 sm:$0xff] %v1426_v22  ;;  %v1859_v49 = vsel %vm586_vm3, %v1857_v30, %v1858_v7  ;;  %v1747_v29 = vsel %vm473_vm2, %v1745_v33, %v1746_v44  ;;  %v1971_v19 = vsel %vm699_vm1, %v1969_v5, %v1970_v36  ;;  %v1430_v30 = vrot.slane %v5701_v51, 3  ;;  %v5730_v33 = vpop.permute.xlu1 %1879  ;;  %v1286_v5 = vpop.f32.mrf.mxu0 }
 0x295   : > { %1903 = vrot.lane.b32.xlu1 %v1859_v49, %s4850_s26  ;;  %1791 = vrot.lane.b32.xlu0 %v1747_v29, %s4851_s27  ;;  %v1431_v49 = vrot.slane %v5701_v51, 4 }
 0x29b   : > { %v1637_v57 = vld [vmem:[#allocation1] sm:$0xff] }
 0x29c   : > { %1638 = vst [vmem:[#allocation1 + $0x2] ss:$9 sm:$0xff] %v1427_v63  ;;  %v5719_v20 = vsel %vm1690_vm8, %v1637_v57, %v1481_v3 }
 0x29d   : > { %1639 = vst [vmem:[#allocation1 + $0x3] ss:$9 sm:$0xff] %v5701_v51  ;;  %2015 = vrot.lane.b32.xlu0 %v1971_v19, %s4849_s25  ;;  %v7242_v22 = vrot.slane %v5719_v20, 3  ;;  %v1860_v31 = vrot.slane %v5719_v20, 2  ;;  %v1748_v3 = vrot.slane %v5719_v20, 1  ;;  %v5755_v19 = vpop.permute.xlu2 %1997 }
 0x29e   : > { %1640 = vst [vmem:[#allocation1 + $0x4] ss:$9 sm:$0xff] %v1428_v17 }
 0x29f   : > { %1641 = vst [vmem:[#allocation1 + $0x5] ss:$9 sm:$0xff] %v1429_v27  ;;  %v1973_v29 = vsel %vm699_vm1, %v1970_v36, %v7242_v22  ;;  %v1861_v59 = vsel %vm586_vm3, %v1858_v7, %v1860_v31  ;;  %v1449_v36 = vld [vmem:[%s7235_s3 + $0x38] sm:$0xff]  ;;  %v4836_v7 = vld [vmem:[%s7234_s2] ss:$0 sm:$0xff]  ;;  %v1749_v17 = vsel %vm473_vm2, %v1746_v44, %v1748_v3  ;;  %v1447_v27 = vld [vmem:[%s7235_s3 + $0x28] sm:$0xff]  ;;  %v5768_v44 = vpop.permute.xlu1 %1995 }
 0x2a0   : > { %1642 = vst [vmem:[#allocation1 + $0x6] ss:$9 sm:$0xff] %v1430_v30  ;;  %2017 = vrot.lane.b32.xlu2 %v1973_v29, %s4849_s25  ;;  %1905 = vrot.lane.b32.xlu1 %v1861_v59, %s4850_s26  ;;  %v1287_v57 = vadd.f32 %v4836_v7, %v1286_v5  ;;  %v1432_v30 = vrot.slane %v5701_v51, 5  ;;  %v1433_v29 = vrot.slane %v5701_v51, 6  ;;  %v1446_v5 = vld [vmem:[%s7235_s3 + $0x20] sm:$0xff]  ;;  %v1445_v7 = vld [vmem:[%s7235_s3 + $0x18] sm:$0xff] }
 0x2a1   : > { %1643 = vst [vmem:[#allocation1 + $0x7] ss:$9 sm:$0xff] %v1431_v49  ;;  %2324 = vmatpush.msra.mxu1 %v1449_v36 }
 0x2a2   : > { %v5764_v49 = vmax.f32 %v1287_v57, 0.0  ;;  %v1444_v57 = vld [vmem:[%s7235_s3 + $0x10] sm:$0xff] }
 0x2a3   : > { %2325 = vmatpush.msra.mxu1 %v1448_v15 }
 0x2a4   : > { %v1435_v36 = vrot.slane %v5764_v49, 1  ;;  %v1437_v51 = vrot.slane %v5764_v49, 3  ;;  %v1438_v15 = vrot.slane %v5764_v49, 4  ;;  %v1441_v1 = vrot.slane %v5764_v49, 7 }
 0x2a5   : > { %1793 = vrot.lane.b32.xlu0 %v1749_v17, %s4851_s27  ;;  %2326 = vmatpush.msra.mxu1 %v1447_v27  ;;  %v5786_v17 = vpop.permute.xlu2 %2001  ;;  %v1443_v27 = vld [vmem:[%s7235_s3 + $0x8] sm:$0xff] }
 0x2a7   : > { %2327 = vmatpush.msra.mxu1 %v1446_v5  ;;  %v2053_v5 = vsel %vm2051_vm9, %v5364_v8, %v5635_v39 }
 0x2a8   : > { %v1644_v59 = vld [vmem:[#allocation1] sm:$0xff]  ;;  %1907 = vrot.lane.b32.xlu2 %v1860_v31, %s4850_s26  ;;  %v1436_v31 = vrot.slane %v5764_v49, 2 }
 0x2a9   : > { %1645 = vst [vmem:[#allocation1] ss:$9 sm:$0xff] %v1432_v30  ;;  %2328 = vmatpush.msra.mxu1 %v1445_v7  ;;  %v5791_v30 = vpop.permute.xlu1 %1881 }
 0x2aa   : > { %1646 = vst [vmem:[#allocation1 + $0x1] ss:$9 sm:$0xff] %v1433_v29  ;;  %v1442_v29 = vld [vmem:[%s7235_s3] sm:$0xff] }
 0x2ab   : > { %1647 = vst [vmem:[#allocation1 + $0x2] ss:$9 sm:$0xff] %v1434_v61  ;;  %2329 = vmatpush.msra.mxu1 %v1444_v57  ;;  %v1466_v61 = vperm.slane %v1427_v63, 0  ;;  %v2052_v63 = vsel %vm2051_vm9, %v5360_v0, %v5613_v35 }
 0x2ac   : > { %1648 = vst [vmem:[#allocation1 + $0x3] ss:$9 sm:$0xff] %v5764_v49 }
 0x2ad   : > { %1649 = vst [vmem:[#allocation1 + $0x4] ss:$9 sm:$0xff] %v1435_v36  ;;  %1795 = vrot.lane.b32.xlu0 %v1748_v3, %s4851_s27  ;;  %2330 = vmatpush.msra.mxu1 %v1443_v27  ;;  %v5793_v3 = vpop.permute.xlu0 %1771  ;;  %v2078_v36 = vsel %vm2076_vm10, %v2053_v5, %v5630_v26  ;;  %v5806_v7 = vsel %vm392_vm0, %v1466_v61, %v1644_v59  ;;  %v5823_v27 = vpop.permute.xlu2 %1999 }
 0x2ae   : > { %1650 = vst [vmem:[#allocation1 + $0x5] ss:$9 sm:$0xff] %v1436_v31  ;;  %v1439_v31 = vrot.slane %v5764_v49, 5  ;;  %v2103_v8 = vsel %vm2101_vm11, %v2078_v36, %v5597_v54  ;;  %v1750_v26 = vrot.slane %v5806_v7, 1  ;;  %v1974_v57 = vrot.slane %v5806_v7, 3 }
 0x2af   : > { %1651 = vst [vmem:[#allocation1 + $0x6] ss:$9 sm:$0xff] %v1437_v51  ;;  %2331 = vmatpush.msra.mxu1 %v1442_v29  ;;  %v1440_v51 = vrot.slane %v5764_v49, 6  ;;  %v1862_v0 = vrot.slane %v5806_v7, 2  ;;  %v2153_v54 = vrot.slane %v2103_v8, 2  ;;  %v2077_v36 = vsel %vm2076_vm10, %v2052_v63, %v5593_v58 }
 0x2b0   : > { %1652 = vst [vmem:[#allocation1 + $0x7] ss:$9 sm:$0xff] %v1438_v15  ;;  %v2155_v22 = vrot.slane %v2103_v8, 6  ;;  %v2056_v58 = vsel %vm2051_vm9, %v5414_v50, %v5694_v43  ;;  %v2102_v63 = vsel %vm2101_vm11, %v2077_v36, %v5564_v18 }
 0x2b1   : > { %v5828_v5 = vpop.permute.xlu1 %1773 }
 0x2b5   : > { %v1770_v29 = vpop.permute.xlu0 %1769  ;;  %v5853_v43 = vpop.permute.xlu2 %2003 }
 0x2b7   : > { %v5816_v39 = vld [vmem:[#allocation1] sm:$0xff] }
 0x2b8   : > { %1654 = vst [vmem:[#allocation1] ss:$9 sm:$0xff] %v1439_v31  ;;  %v1751_v59 = vrot.slane %v5816_v39, 1  ;;  %v1975_v15 = vrot.slane %v5816_v39, 3  ;;  %v1863_v49 = vrot.slane %v5816_v39, 2  ;;  %v2154_v31 = vrot.slane %v2103_v8, 4 }
 0x2b9   : > { %1655 = vst [vmem:[#allocation1 + $0x1] ss:$9 sm:$0xff] %v1440_v51 }
 0x2ba   : > { %1656 = vst [vmem:[#allocation1 + $0x2] ss:$9 sm:$0xff] %v1441_v1  ;;  %v1752_v35 = vsel %vm473_vm2, %v1750_v26, %v1751_v59  ;;  %v1976_v61 = vsel %vm699_vm1, %v1974_v57, %v1975_v15  ;;  %v1864_v51 = vsel %vm586_vm3, %v1862_v0, %v1863_v49  ;;  %v2055_v26 = vsel %vm2051_vm9, %v5410_v28, %v5649_v13 }
 0x2bb   : > { %2209 = vst [vmem:[#allocation1 + $0x20] ss:$4 sm:$0xff] %v2103_v8  ;;  %1797 = vrot.lane.b32.xlu1 %v1752_v35, %s4851_s27  ;;  %2021 = vrot.lane.b32.xlu2 %v1976_v61, %s4849_s25  ;;  %v2080_v57 = vsel %vm2076_vm10, %v2055_v26, %v5647_v48  ;;  %v2081_v8 = vsel %vm2076_vm10, %v2056_v58, %v5692_v21  ;;  %v1482_v0 = vperm.slane %v1441_v1, 0  ;;  %v2151_v35 = vrot.slane %v2102_v63, 4  ;;  %v5864_v61 = vpop.permute.xlu1 %1889 }
 0x2bc   : > { %2211 = vst [vmem:[#allocation1 + $0x21] ss:$4 sm:$0xff] %v2153_v54  ;;  %1909 = vrot.lane.b32.xlu0 %v1864_v51, %s4850_s26  ;;  %v2150_v54 = vrot.slane %v2102_v63, 2  ;;  %v2105_v28 = vsel %vm2101_vm11, %v2080_v57, %v5662_v56  ;;  %v5857_v48 = vsel %vm2101_vm11, %v2081_v8, %v5656_v9  ;;  %v7243_v21 = vrot.slane %v5719_v20, 3 }
 0x2bd   : > { %2213 = vst [vmem:[#allocation1 + $0x22] ss:$4 sm:$0xff] %v2154_v31  ;;  %v1886_v18 = vpop.permute.xlu0 %1885  ;;  %v2158_v36 = vrot.slane %v2105_v28, 6  ;;  %v2160_v26 = vrot.slane %v5857_v48, 4  ;;  %v2059_v57 = vsel %vm2051_vm9, %v5459_v25, %v1770_v29  ;;  %v5896_v29 = vpop.permute.xlu2 %1783 }
 0x2be   : > { %2215 = vst [vmem:[#allocation1 + $0x23] ss:$4 sm:$0xff] %v2155_v22  ;;  %v2152_v22 = vrot.slane %v2102_v63, 6 }
 0x2c1   : > { %v1657_v13 = vld [vmem:[#allocation1] sm:$0xff] }
 0x2c2   : > { %2201 = vst [vmem:[#allocation1] ss:$4 sm:$0xff] %v2102_v63  ;;  %v5851_v50 = vsel %vm1690_vm8, %v1657_v13, %v1482_v0  ;;  %v2159_v63 = vrot.slane %v5857_v48, 2 }
 0x2c3   : > { %2203 = vst [vmem:[#allocation1 + $0x1] ss:$4 sm:$0xff] %v2150_v54  ;;  %2019 = vrot.lane.b32.xlu1 %v7243_v21, %s4849_s25  ;;  %v1977_v56 = vrot.slane %v5851_v50, 3  ;;  %v1753_v1 = vrot.slane %v5851_v50, 1  ;;  %v1865_v58 = vrot.slane %v5851_v50, 2  ;;  %v2084_v54 = vsel %vm2076_vm10, %v2059_v57, %v5791_v30 }
 0x2c4   : > { %2205 = vst [vmem:[#allocation1 + $0x2] ss:$4 sm:$0xff] %v2151_v35  ;;  %v2157_v30 = vrot.slane %v2105_v28, 4 }
 0x2c5   : > { %v2217_v31 = vld.sshfl [vmem:[#allocation1 + $0x20] sm:$0xff pattern:$0x73625140]  ;;  %2207 = vst [vmem:[#allocation1 + $0x3] ss:$4 sm:$0xff] %v2152_v22  ;;  %v1978_v51 = vsel %vm699_vm1, %v1975_v15, %v1977_v56  ;;  %v1754_v9 = vsel %vm473_vm2, %v1751_v59, %v1753_v1  ;;  %v2054_v59 = vsel %vm2051_vm9, %v5390_v55, %v5578_v38  ;;  %v2058_v15 = vsel %vm2051_vm9, %v5455_v23, %v5732_v47  ;;  %v1888_v55 = vpop.permute.xlu1 %1887  ;;  %v5890_v38 = vpop.permute.xlu0 %1777 }
 0x2c6   : > { %2222 = vst [vmem:[#allocation1 + $0x20] ss:$4 sm:$0xff] %v2158_v36  ;;  %2023 = vrot.lane.b32.xlu2 %v1978_v51, %s4849_s25  ;;  %1799 = vrot.lane.b32.xlu0 %v1754_v9, %s4851_s27  ;;  %v2079_v8 = vsel %vm2076_vm10, %v2054_v59, %v5611_v11  ;;  %v1866_v0 = vsel %vm586_vm3, %v1863_v49, %v1865_v58  ;;  %v2156_v49 = vrot.slane %v2105_v28, 2 }
 0x2c7   : > { %2223 = vst [vmem:[#allocation1 + $0x21] ss:$4 sm:$0xff] %v5857_v48  ;;  %v2083_v25 = vsel %vm2076_vm10, %v2058_v15, %v5730_v33  ;;  %v2104_v23 = vsel %vm2101_vm11, %v2079_v8, %v5588_v45  ;;  %v2109_v33 = vsel %vm2101_vm11, %v2084_v54, %v5709_v41  ;;  %v2061_v22 = vsel %vm2051_vm9, %v5500_v16, %v5828_v5 }
 0x2c8   : > { %2225 = vst [vmem:[#allocation1 + $0x23] ss:$4 sm:$0xff] %v2160_v26  ;;  %v2108_v11 = vsel %vm2101_vm11, %v2083_v25, %v5761_v37  ;;  %v2165_v37 = vrot.slane %v2109_v33, 2  ;;  %v2086_v41 = vsel %vm2076_vm10, %v2061_v22, %v1886_v18  ;;  %v2161_v5 = vrot.slane %v5857_v48, 6  ;;  %v5915_v18 = vpop.permute.xlu2 %2007 }
 0x2c9   : > { %2224 = vst [vmem:[#allocation1 + $0x22] ss:$4 sm:$0xff] %v2159_v63  ;;  %v2163_v45 = vrot.slane %v2108_v11, 4  ;;  %v2164_v13 = vrot.slane %v2108_v11, 6  ;;  %v2111_v16 = vsel %vm2101_vm11, %v2086_v41, %v5755_v19  ;;  %v2166_v8 = vrot.slane %v2109_v33, 4 }
 0x2ca   : > { %v2170_v19 = vrot.slane %v2111_v16, 6 }
 0x2cb   : > { %1911 = vrot.lane.b32.xlu1 %v1866_v0, %s4850_s26 }
 0x2cc   : > { %v2216_v47 = vld.sshfl [vmem:[#allocation1] sm:$0xff pattern:$0x73625140] }
 0x2cd   : > { %2218 = vst [vmem:[#allocation1] ss:$4 sm:$0xff] %v2104_v23  ;;  %2332 = vmatmul.f32.vlgmr.msra.gmra.mxu1 %v2216_v47  ;;  %v1892_v21 = vpop.permute.xlu1 %1891 }
 0x2ce   : > { %2219 = vst [vmem:[#allocation1 + $0x1] ss:$4 sm:$0xff] %v2105_v28  ;;  %2025 = vrot.lane.b32.xlu2 %v1977_v56, %s4849_s25  ;;  %1801 = vrot.lane.b32.xlu0 %v1753_v1, %s4851_s27  ;;  %v1776_v28 = vpop.permute.xlu0 %1775  ;;  %v2057_v56 = vsel %vm2051_vm9, %v5437_v10, %v5620_v34  ;;  %v2168_v10 = vrot.slane %v2111_v16, 2  ;;  %v2162_v34 = vrot.slane %v2108_v11, 2 }
 0x2cf   : > { %2220 = vst [vmem:[#allocation1 + $0x2] ss:$4 sm:$0xff] %v2156_v49  ;;  %v2082_v1 = vsel %vm2076_vm10, %v2057_v56, %v5664_v6  ;;  %v2062_v36 = vsel %vm2051_vm9, %v5505_v32, %v1776_v28  ;;  %v2169_v6 = vrot.slane %v2111_v16, 4  ;;  %v2060_v32 = vsel %vm2051_vm9, %v5481_v52, %v5793_v3 }
 0x2d0   : > { %2221 = vst [vmem:[#allocation1 + $0x3] ss:$4 sm:$0xff] %v2157_v30  ;;  %v2227_v35 = vld.sshfl [vmem:[#allocation1 + $0x20] sm:$0xff pattern:$0x73625140]  ;;  %v2107_v9 = vsel %vm2101_vm11, %v2082_v1, %v5639_v46  ;;  %v2085_v59 = vsel %vm2076_vm10, %v2060_v32, %v5676_v4  ;;  %v2006_v15 = vpop.permute.xlu2 %2005  ;;  %v2063_v4 = vsel %vm2051_vm9, %v5525_v42, %v5890_v38 }
 0x2d1   : > { %2232 = vst [vmem:[#allocation1 + $0x20] ss:$4 sm:$0xff] %v2163_v45  ;;  %v2066_v45 = vsel %vm2051_vm9, %v5571_v53, %v5896_v29 }
 0x2d2   : > { %2233 = vst [vmem:[#allocation1 + $0x21] ss:$4 sm:$0xff] %v2164_v13 }
 0x2d3   : > { %2234 = vst [vmem:[#allocation1 + $0x22] ss:$4 sm:$0xff] %v2109_v33  ;;  %1913 = vrot.lane.b32.xlu1 %v1865_v58, %s4850_s26 }
 0x2d4   : > { %2235 = vst [vmem:[#allocation1 + $0x23] ss:$4 sm:$0xff] %v2165_v37 }
 0x2d5   : > { %2335 = vmatmul.f32.gmra.mxu1 %v2217_v31  ;;  %v2087_v31 = vsel %vm2076_vm10, %v2062_v36, %v1888_v55  ;;  %v1896_v58 = vpop.permute.xlu1 %1895 }
 0x2d6   : > { %v1780_v26 = vpop.permute.xlu0 %1779  ;;  %v2112_v46 = vsel %vm2101_vm11, %v2087_v31, %v5823_v27  ;;  %v2110_v27 = vsel %vm2101_vm11, %v2085_v59, %v5768_v44  ;;  %v2088_v44 = vsel %vm2076_vm10, %v2063_v4, %v5864_v61 }
 0x2d7   : > { %v2226_v51 = vld.sshfl [vmem:[#allocation1] sm:$0xff pattern:$0x73625140]  ;;  %v2064_v63 = vsel %vm2051_vm9, %v5545_v62, %v1780_v26  ;;  %v2167_v62 = vrot.slane %v2109_v33, 6  ;;  %v2171_v49 = vrot.slane %v2112_v46, 2  ;;  %v2172_v38 = vrot.slane %v2112_v46, 4 }
 0x2d8   : > { %2228 = vst [vmem:[#allocation1] ss:$4 sm:$0xff] %v2161_v5  ;;  %v2089_v57 = vsel %vm2076_vm10, %v2064_v63, %v1892_v21  ;;  %v1790_v47 = vpop.permute.xlu2 %1789  ;;  %v2173_v13 = vrot.slane %v2112_v46, 6 }
 0x2d9   : > { %2229 = vst [vmem:[#allocation1 + $0x1] ss:$4 sm:$0xff] %v2107_v9  ;;  %v2114_v52 = vsel %vm2101_vm11, %v2089_v57, %v5853_v43 }
 0x2da   : > { %2230 = vst [vmem:[#allocation1 + $0x2] ss:$4 sm:$0xff] %v2108_v11  ;;  %v2175_v25 = vrot.slane %v2114_v52, 4  ;;  %v2176_v55 = vrot.slane %v2114_v52, 6  ;;  %v2174_v23 = vrot.slane %v2114_v52, 2  ;;  %v2113_v11 = vsel %vm2101_vm11, %v2088_v44, %v5786_v17 }
 0x2db   : > { %2231 = vst [vmem:[#allocation1 + $0x3] ss:$4 sm:$0xff] %v2162_v34  ;;  %v5922_v48 = vld.sshfl [vmem:[#allocation1 + $0x20] sm:$0xff pattern:$0x73625140] }
 0x2dc   : > { %2242 = vst [vmem:[#allocation1 + $0x20] ss:$4 sm:$0xff] %v2168_v10 }
 0x2dd   : > { %2243 = vst [vmem:[#allocation1 + $0x21] ss:$4 sm:$0xff] %v2169_v6  ;;  %2338 = vmatmul.f32.gmra.mxu1 %v2226_v51  ;;  %v1894_v0 = vpop.permute.xlu1 %1893  ;;  %v2069_v51 = vsel %vm2051_vm9, %v5628_v40, %v1790_v47 }
 0x2de   : > { %2244 = vst [vmem:[#allocation1 + $0x22] ss:$4 sm:$0xff] %v2170_v19  ;;  %v1782_v54 = vpop.permute.xlu0 %1781 }
 0x2df   : > { %2245 = vst [vmem:[#allocation1 + $0x23] ss:$4 sm:$0xff] %v2112_v46  ;;  %v2065_v61 = vsel %vm2051_vm9, %v5550_v2, %v1782_v54 }
 0x2e0   : > { %v2090_v17 = vsel %vm2076_vm10, %v2065_v61, %v1894_v0  ;;  %v2012_v21 = vpop.permute.xlu2 %2011 }
 0x2e1   : > { %v2115_v29 = vsel %vm2101_vm11, %v2090_v17, %v2006_v15 }
 0x2e2   : > { %v2236_v3 = vld.sshfl [vmem:[#allocation1] sm:$0xff pattern:$0x73625140]  ;;  %v2178_v5 = vrot.slane %v2115_v29, 4  ;;  %v2179_v36 = vrot.slane %v2115_v29, 6 }
 0x2e3   : > { %2240 = vst [vmem:[#allocation1 + $0x2] ss:$4 sm:$0xff] %v2110_v27 }
 0x2e4   : > { %2238 = vst [vmem:[#allocation1] ss:$4 sm:$0xff] %v2166_v8 }
 0x2e5   : > { %2239 = vst [vmem:[#allocation1 + $0x1] ss:$4 sm:$0xff] %v2167_v62  ;;  %2341 = vmatmul.f32.gmra.mxu1 %v2227_v35  ;;  %v1898_v33 = vpop.permute.xlu1 %1897  ;;  %v2091_v35 = vsel %vm2076_vm10, %v2066_v45, %v1896_v58 }
 0x2e6   : > { %2241 = vst [vmem:[#allocation1 + $0x3] ss:$4 sm:$0xff] %v2111_v16  ;;  %v5941_v43 = vld.sshfl [vmem:[#allocation1 + $0x20] sm:$0xff pattern:$0x73625140]  ;;  %v1786_v42 = vpop.permute.xlu0 %1785  ;;  %v2116_v22 = vsel %vm2101_vm11, %v2091_v35, %v5915_v18 }
 0x2e7   : > { %2252 = vst [vmem:[#allocation1 + $0x20] ss:$4 sm:$0xff] %v2114_v52  ;;  %v2067_v37 = vsel %vm2051_vm9, %v5600_v60, %v1786_v42  ;;  %v2177_v60 = vrot.slane %v2115_v29, 2 }
 0x2e8   : > { %2254 = vst [vmem:[#allocation1 + $0x22] ss:$4 sm:$0xff] %v2175_v25  ;;  %v2092_v2 = vsel %vm2076_vm10, %v2067_v37, %v1898_v33  ;;  %v2014_v19 = vpop.permute.xlu2 %2013 }
 0x2e9   : > { %2255 = vst [vmem:[#allocation1 + $0x23] ss:$4 sm:$0xff] %v2176_v55 }
 0x2ea   : > { %2253 = vst [vmem:[#allocation1 + $0x21] ss:$4 sm:$0xff] %v2174_v23 }
 0x2ed   : > { %v2246_v30 = vld.sshfl [vmem:[#allocation1] sm:$0xff pattern:$0x73625140]  ;;  %2344 = vmatmul.f32.gmra.mxu1 %v2236_v3  ;;  %v1902_v28 = vpop.permute.xlu1 %1901 }
 0x2ee   : > { %2251 = vst [vmem:[#allocation1 + $0x3] ss:$4 sm:$0xff] %v2113_v11  ;;  %v2010_v41 = vpop.permute.xlu0 %2009  ;;  %v2094_v34 = vsel %vm2076_vm10, %v2069_v51, %v1902_v28 }
 0x2ef   : > { %2248 = vst [vmem:[#allocation1] ss:$4 sm:$0xff] %v2171_v49  ;;  %v2117_v56 = vsel %vm2101_vm11, %v2092_v2, %v2010_v41  ;;  %v2119_v58 = vsel %vm2101_vm11, %v2094_v34, %v2014_v19  ;;  %v5997_v34 = vld [vmem:[%s7236_s4] ss:$0 sm:$0xff] }
 0x2f0   : > { %2249 = vst [vmem:[#allocation1 + $0x1] ss:$4 sm:$0xff] %v2172_v38  ;;  %v2180_v1 = vrot.slane %v2117_v56, 2  ;;  %v2181_v16 = vrot.slane %v2117_v56, 4  ;;  %v2182_v40 = vrot.slane %v2117_v56, 6 }
 0x2f1   : > { %2250 = vst [vmem:[#allocation1 + $0x2] ss:$4 sm:$0xff] %v2173_v13  ;;  %v2257_v53 = vld.sshfl [vmem:[#allocation1 + $0x20] sm:$0xff pattern:$0x73625140] }
 0x2f2   : > { %2262 = vst [vmem:[#allocation1 + $0x20] ss:$4 sm:$0xff] %v2116_v22 }
 0x2f3   : > { %2263 = vst [vmem:[#allocation1 + $0x21] ss:$4 sm:$0xff] %v2117_v56 }
 0x2f4   : > { %2264 = vst [vmem:[#allocation1 + $0x22] ss:$4 sm:$0xff] %v2180_v1 }
 0x2f5   : > { %2347 = vmatmul.f32.gmra.mxu1 %v5922_v48  ;;  %2265 = vst [vmem:[#allocation1 + $0x23] ss:$4 sm:$0xff] %v2181_v16  ;;  %v1900_v9 = vpop.permute.xlu1 %1899 }
 0x2f6   : > { %v1788_v10 = vpop.permute.xlu0 %1787 }
 0x2f7   : > { %v2068_v6 = vsel %vm2051_vm9, %v5605_v12, %v1788_v10 }
 0x2f8   : > { %v2256_v18 = vld.sshfl [vmem:[#allocation1] sm:$0xff pattern:$0x73625140]  ;;  %v2093_v31 = vsel %vm2076_vm10, %v2068_v6, %v1900_v9 }
 0x2f9   : > { %2258 = vst [vmem:[#allocation1] ss:$4 sm:$0xff] %v2115_v29  ;;  %v2118_v48 = vsel %vm2101_vm11, %v2093_v31, %v2012_v21 }
 0x2fa   : > { %2259 = vst [vmem:[#allocation1 + $0x1] ss:$4 sm:$0xff] %v2177_v60  ;;  %v2185_v32 = vrot.slane %v2118_v48, 6  ;;  %v2183_v46 = vrot.slane %v2118_v48, 2  ;;  %v2184_v57 = vrot.slane %v2118_v48, 4  ;;  %v2018_v55 = vpop.permute.xlu2 %2017 }
 0x2fb   : > { %2260 = vst [vmem:[#allocation1 + $0x2] ss:$4 sm:$0xff] %v2178_v5 }
 0x2fc   : > { %2261 = vst [vmem:[#allocation1 + $0x3] ss:$4 sm:$0xff] %v2179_v36  ;;  %v2267_v26 = vld.sshfl [vmem:[#allocation1 + $0x20] sm:$0xff pattern:$0x73625140] }
 0x2fd   : > { %2350 = vmatmul.f32.gmra.mxu1 %v2246_v30  ;;  %2273 = vst [vmem:[#allocation1 + $0x21] ss:$4 sm:$0xff] %v2119_v58 }
 0x2fe   : > { %2272 = vst [vmem:[#allocation1 + $0x20] ss:$4 sm:$0xff] %v2185_v32 }
 0x302   : > { %v1908_v42 = vpop.permute.xlu2 %1907 }
 0x303   : > { %v2266_v63 = vld.sshfl [vmem:[#allocation1] sm:$0xff pattern:$0x73625140] }
 0x304   : > { %2268 = vst [vmem:[#allocation1] ss:$4 sm:$0xff] %v2182_v40 }
 0x305   : > { %2353 = vmatmul.f32.gmra.mxu1 %v5941_v43  ;;  %2269 = vst [vmem:[#allocation1 + $0x1] ss:$4 sm:$0xff] %v2118_v48 }
 0x306   : > { %2270 = vst [vmem:[#allocation1 + $0x2] ss:$4 sm:$0xff] %v2183_v46 }
 0x307   : > { %2271 = vst [vmem:[#allocation1 + $0x3] ss:$4 sm:$0xff] %v2184_v57  ;;  %v1792_v12 = vpop.permute.xlu0 %1791  ;;  %v1904_v59 = vpop.permute.xlu1 %1903 }
 0x308   : > { %v2070_v15 = vsel %vm2051_vm9, %v5670_v14, %v1792_v12 }
 0x309   : > { %v2095_v52 = vsel %vm2076_vm10, %v2070_v15, %v1904_v59 }
 0x30d   : > { %2356 = vmatmul.f32.gmra.mxu1 %v2256_v18 }
 0x30e   : > { %v2276_v54 = vld.sshfl [vmem:[#allocation1] sm:$0xff pattern:$0x73625140] }
 0x30f   : > { %v2016_v3 = vpop.permute.xlu0 %2015 }
 0x310   : > { %v2120_v27 = vsel %vm2101_vm11, %v2095_v52, %v2016_v3 }
 0x311   : > { %v2186_v8 = vrot.slane %v2120_v27, 2  ;;  %v2187_v62 = vrot.slane %v2120_v27, 4  ;;  %v2188_v0 = vrot.slane %v2120_v27, 6  ;;  %2274 = vst [vmem:[#allocation1 + $0x22] ss:$4 sm:$0xff] %v2120_v27 }
 0x312   : > { %v1906_v4 = vpop.permute.xlu1 %1905 }
 0x313   : > { %2275 = vst [vmem:[#allocation1 + $0x23] ss:$4 sm:$0xff] %v2186_v8 }
 0x314   : > { %2278 = vst [vmem:[#allocation1] ss:$4 sm:$0xff] %v2187_v62 }
 0x315   : > { %2359 = vmatmul.f32.gmra.mxu1 %v2257_v53  ;;  %2279 = vst [vmem:[#allocation1 + $0x1] ss:$4 sm:$0xff] %v2188_v0  ;;  %v2022_v45 = vpop.permute.xlu2 %2021 }
 0x317   : > { %v1794_v25 = vpop.permute.xlu0 %1793 }
 0x318   : > { %v2071_v14 = vsel %vm2051_vm9, %v5680_v24, %v1794_v25 }
 0x319   : > { %v2096_v43 = vsel %vm2076_vm10, %v2071_v14, %v1906_v4 }
 0x31a   : > { %v2121_v23 = vsel %vm2101_vm11, %v2096_v43, %v2018_v55  ;;  %v2277_v49 = vld.sshfl [vmem:[#allocation1 + $0x20] sm:$0xff pattern:$0x73625140] }
 0x31b   : > { %v2189_v44 = vrot.slane %v2121_v23, 2  ;;  %v2190_v47 = vrot.slane %v2121_v23, 4  ;;  %v2191_v11 = vrot.slane %v2121_v23, 6  ;;  %2280 = vst [vmem:[#allocation1 + $0x2] ss:$4 sm:$0xff] %v2121_v23 }
 0x31d   : > { %2362 = vmatmul.f32.gmra.mxu1 %v2266_v63  ;;  %2281 = vst [vmem:[#allocation1 + $0x3] ss:$4 sm:$0xff] %v2189_v44 }
 0x31e   : > { %2282 = vst [vmem:[#allocation1 + $0x20] ss:$4 sm:$0xff] %v2190_v47 }
 0x31f   : > { %2283 = vst [vmem:[#allocation1 + $0x21] ss:$4 sm:$0xff] %v2191_v11  ;;  %v1796_v33 = vpop.permute.xlu0 %1795 }
 0x320   : > { %v2072_v53 = vsel %vm2051_vm9, %v5719_v20, %v1796_v33  ;;  %v2024_v21 = vpop.permute.xlu2 %2023 }
 0x324   : > { %v2286_v22 = vld.sshfl [vmem:[#allocation1] sm:$0xff pattern:$0x73625140] }
 0x325   : > { %2365 = vmatmul.f32.gmra.mxu1 %v2267_v26 }
 0x328   : > { %v2026_v9 = vpop.permute.xlu2 %2025 }
 0x32d   : > { %2368 = vmatmul.f32.gmra.mxu1 %v2276_v54  ;;  %v1798_v38 = vpop.permute.xlu1 %1797 }
 0x32e   : > { %v2073_v24 = vsel %vm2051_vm9, %v5806_v7, %v1798_v38  ;;  %v1910_v30 = vpop.permute.xlu0 %1909  ;;  %v2097_v7 = vsel %vm2076_vm10, %v2072_v53, %v1908_v42 }
 0x32f   : > { %v2098_v13 = vsel %vm2076_vm10, %v2073_v24, %v1910_v30 }
 0x330   : > { %v2123_v61 = vsel %vm2101_vm11, %v2098_v13, %v2022_v45 }
 0x331   : > { %v2192_v35 = vrot.slane %v2123_v61, 2  ;;  %v2193_v17 = vrot.slane %v2123_v61, 4  ;;  %v2194_v37 = vrot.slane %v2123_v61, 6  ;;  %2285 = vst [vmem:[#allocation1 + $0x23] ss:$4 sm:$0xff] %v2123_v61 }
 0x333   : > { %2288 = vst [vmem:[#allocation1] ss:$4 sm:$0xff] %v2192_v35 }
 0x334   : > { %2289 = vst [vmem:[#allocation1 + $0x1] ss:$4 sm:$0xff] %v2193_v17 }
 0x335   : > { %2371 = vmatmul.f32.gmra.mxu1 %v2277_v49  ;;  %2290 = vst [vmem:[#allocation1 + $0x2] ss:$4 sm:$0xff] %v2194_v37  ;;  %v2020_v29 = vpop.permute.xlu1 %2019 }
 0x336   : > { %v2122_v2 = vsel %vm2101_vm11, %v2097_v7, %v2020_v29 }
 0x337   : > { %2284 = vst [vmem:[#allocation1 + $0x22] ss:$4 sm:$0xff] %v2122_v2 }
 0x338   : > { %v1800_v41 = vpop.permute.xlu0 %1799 }
 0x339   : > { %v2074_v28 = vsel %vm2051_vm9, %v5816_v39, %v1800_v41 }
 0x33d   : > { %2374 = vmatmul.f32.gmra.mxu1 %v2286_v22  ;;  %v1912_v56 = vpop.permute.xlu1 %1911 }
 0x33e   : > { %v2099_v1 = vsel %vm2076_vm10, %v2074_v28, %v1912_v56  ;;  %v2287_v36 = vld.sshfl [vmem:[#allocation1 + $0x20] sm:$0xff pattern:$0x73625140] }
 0x33f   : > { %v2124_v20 = vsel %vm2101_vm11, %v2099_v1, %v2024_v21 }
 0x340   : > { %v2195_v16 = vrot.slane %v2124_v20, 2  ;;  %v2196_v60 = vrot.slane %v2124_v20, 4  ;;  %v2197_v5 = vrot.slane %v2124_v20, 6  ;;  %2291 = vst [vmem:[#allocation1 + $0x3] ss:$4 sm:$0xff] %v2124_v20  ;;  %v1802_v18 = vpop.permute.xlu0 %1801 }
 0x341   : > { %v2075_v51 = vsel %vm2051_vm9, %v5851_v50, %v1802_v18 }
 0x342   : > { %2292 = vst [vmem:[#allocation1 + $0x20] ss:$4 sm:$0xff] %v2195_v16 }
 0x343   : > { %2293 = vst [vmem:[#allocation1 + $0x21] ss:$4 sm:$0xff] %v2196_v60 }
 0x344   : > { %2294 = vst [vmem:[#allocation1 + $0x22] ss:$4 sm:$0xff] %v2197_v5 }
 0x345   : > { %2377 = vmatmul.f32.gmra.mxu1 %v2287_v36  ;;  %v1914_v39 = vpop.permute.xlu1 %1913 }
 0x346   : > { %v2100_v10 = vsel %vm2076_vm10, %v2075_v51, %v1914_v39 }
 0x347   : > { %v2125_v6 = vsel %vm2101_vm11, %v2100_v10, %v2026_v9  ;;  %v2296_v31 = vld.sshfl [vmem:[#allocation1] sm:$0xff pattern:$0x73625140] }
 0x348   : > { %2295 = vst [vmem:[#allocation1 + $0x23] ss:$4 sm:$0xff] %v2125_v6 }
 0x34a   : > { %v2333_v19 = vpop.f32.mrf.mxu1 }
 0x34b   : > { %v2334_v48 = vadd.f32 %v5997_v34, %v2333_v19 }
 0x34d   : > { %v2387_v26 = vmax.f32 %v2334_v48, 0.0  ;;  %2380 = vmatmul.f32.gmra.mxu1 %v2296_v31 }
 0x34f   : > { %v2423_v50 = vrot.slane %v2387_v26, 2  ;;  %v2424_v58 = vrot.slane %v2387_v26, 4  ;;  %2523 = vst [vmem:[#allocation1 + $0x1] ss:$4 sm:$0xff] %v2387_v26  ;;  %v2425_v40 = vrot.slane %v2387_v26, 6  ;;  %v2506_v8 = vperm.slane %v2387_v26, 0 }
 0x350   : > { %v2297_v32 = vld.sshfl [vmem:[#allocation1 + $0x20] sm:$0xff pattern:$0x73625140] }
 0x351   : > { %2525 = vst [vmem:[#allocation1 + $0x2] ss:$4 sm:$0xff] %v2423_v50 }
 0x352   : > { %2527 = vst [vmem:[#allocation1 + $0x3] ss:$4 sm:$0xff] %v2424_v58  ;;  %v2336_v46 = vpop.f32.mrf.mxu1 }
 0x353   : > { %2529 = vst [vmem:[#allocation1 + $0x20] ss:$4 sm:$0xff] %v2425_v40  ;;  %v2337_v63 = vadd.f32 %v5997_v34, %v2336_v46  ;;  %v2504_v46 = vld [vmem:[%s7237_s5 + $0x78] sm:$0xff] }
 0x354   : > { %3442 = vmatpush.msrb.mxu0 %v2504_v46  ;;  %4637 = vmatpush.msra.mxu2 %v2504_v46  ;;  %v2501_v46 = vld [vmem:[%s7237_s5 + $0x60] sm:$0xff] }
 0x355   : > { %v2388_v57 = vmax.f32 %v2337_v63, 0.0  ;;  %2383 = vmatmul.f32.gmra.mxu1 %v2297_v32 }
 0x357   : > { %v2426_v12 = vrot.slane %v2388_v57, 2  ;;  %v2427_v59 = vrot.slane %v2388_v57, 4  ;;  %v2428_v15 = vrot.slane %v2388_v57, 6  ;;  %2531 = vst [vmem:[#allocation1 + $0x21] ss:$4 sm:$0xff] %v2388_v57 }
 0x359   : > { %v2536_v52 = vld.sshfl [vmem:[#allocation1] sm:$0xff pattern:$0x73625140]  ;;  %2533 = vst [vmem:[#allocation1 + $0x22] ss:$4 sm:$0xff] %v2426_v12 }
 0x35a   : > { %2535 = vst [vmem:[#allocation1 + $0x23] ss:$4 sm:$0xff] %v2427_v59  ;;  %v2339_v3 = vpop.f32.mrf.mxu1  ;;  %v6004_v0 = vsel %vm392_vm0, %v2506_v8, %v2536_v52 }
 0x35b   : > { %2538 = vst [vmem:[#allocation1] ss:$4 sm:$0xff] %v2428_v15  ;;  %v2340_v27 = vadd.f32 %v5997_v34, %v2339_v3  ;;  %v2906_v55 = vrot.slane %v6004_v0, 3  ;;  %v2794_v43 = vrot.slane %v6004_v0, 2  ;;  %v2682_v11 = vrot.slane %v6004_v0, 1 }
 0x35d   : > { %v2389_v62 = vmax.f32 %v2340_v27, 0.0 }
 0x35f   : > { %v2429_v54 = vrot.slane %v2389_v62, 2  ;;  %v2430_v25 = vrot.slane %v2389_v62, 4  ;;  %2539 = vst [vmem:[#allocation1 + $0x1] ss:$4 sm:$0xff] %v2389_v62  ;;  %v2431_v4 = vrot.slane %v2389_v62, 6  ;;  %v2514_v45 = vperm.slane %v2389_v62, 1 }
 0x361   : > { %v6006_v14 = vld.sshfl [vmem:[#allocation1 + $0x20] sm:$0xff pattern:$0x73625140]  ;;  %v2507_v36 = vperm.slane %v2429_v54, 0 }
 0x362   : > { %2541 = vst [vmem:[#allocation1 + $0x21] ss:$4 sm:$0xff] %v2429_v54  ;;  %v2342_v23 = vpop.f32.mrf.mxu1  ;;  %v2907_v44 = vrot.slane %v6006_v14, 3  ;;  %v2795_v47 = vrot.slane %v6006_v14, 2  ;;  %v2683_v49 = vrot.slane %v6006_v14, 1 }
 0x363   : > { %2542 = vst [vmem:[#allocation1 + $0x22] ss:$4 sm:$0xff] %v2430_v25  ;;  %v2343_v33 = vadd.f32 %v5997_v34, %v2342_v23 }
 0x364   : > { %2543 = vst [vmem:[#allocation1 + $0x23] ss:$4 sm:$0xff] %v2431_v4  ;;  %v2908_v42 = vsel %vm699_vm1, %v2906_v55, %v2907_v44  ;;  %v2796_v38 = vsel %vm586_vm3, %v2794_v43, %v2795_v47  ;;  %v2684_v24 = vsel %vm473_vm2, %v2682_v11, %v2683_v49  ;;  %v2503_v4 = vld [vmem:[%s7237_s5 + $0x70] sm:$0xff] }
 0x365   : > { %v2390_v30 = vmax.f32 %v2343_v33, 0.0  ;;  %2946 = vrot.lane.b32.xlu2 %v2908_v42, %s4849_s25  ;;  %2834 = vrot.lane.b32.xlu1 %v2796_v38, %s4850_s26 }
 0x366   : > { %v2540_v13 = vld.sshfl [vmem:[#allocation1] sm:$0xff pattern:$0x73625140]  ;;  %2722 = vrot.lane.b32.xlu0 %v2684_v24, %s4851_s27  ;;  %3443 = vmatpush.msrb.mxu0 %v2503_v4 }
 0x367   : > { %v2432_v61 = vrot.slane %v2390_v30, 2  ;;  %v2433_v35 = vrot.slane %v2390_v30, 4  ;;  %v2434_v17 = vrot.slane %v2390_v30, 6  ;;  %2545 = vst [vmem:[#allocation1] ss:$4 sm:$0xff] %v2390_v30  ;;  %v6022_v37 = vsel %vm2657_vm12, %v2540_v13, %v2514_v45  ;;  %4638 = vmatpush.msra.mxu2 %v2503_v4  ;;  %v2502_v30 = vld [vmem:[%s7237_s5 + $0x68] sm:$0xff] }
 0x368   : > { %v2797_v7 = vrot.slane %v6022_v37, 2  ;;  %v2909_v29 = vrot.slane %v6022_v37, 3  ;;  %v2685_v2 = vrot.slane %v6022_v37, 1  ;;  %3444 = vmatpush.msrb.mxu0 %v2502_v30 }
 0x369   : > { %2546 = vst [vmem:[#allocation1 + $0x1] ss:$4 sm:$0xff] %v2432_v61  ;;  %4639 = vmatpush.msra.mxu2 %v2502_v30 }
 0x36a   : > { %2547 = vst [vmem:[#allocation1 + $0x2] ss:$4 sm:$0xff] %v2433_v35  ;;  %v2345_v22 = vpop.f32.mrf.mxu1  ;;  %v2910_v5 = vsel %vm699_vm1, %v2907_v44, %v2909_v29  ;;  %v2798_v18 = vsel %vm586_vm3, %v2795_v47, %v2797_v7  ;;  %v2686_v39 = vsel %vm473_vm2, %v2683_v49, %v2685_v2  ;;  %3445 = vmatpush.msrb.mxu0 %v2501_v46 }
 0x36b   : > { %2548 = vst [vmem:[#allocation1 + $0x3] ss:$4 sm:$0xff] %v2434_v17  ;;  %v2346_v53 = vadd.f32 %v5997_v34, %v2345_v22  ;;  %v2544_v28 = vld.sshfl [vmem:[#allocation1 + $0x20] sm:$0xff pattern:$0x73625140]  ;;  %4640 = vmatpush.msra.mxu2 %v2501_v46 }
 0x36c   : > { %v6049_v31 = vsel %vm392_vm0, %v2507_v36, %v2544_v28 }
 0x36d   : > { %v6028_v41 = vmax.f32 %v2346_v53, 0.0  ;;  %2838 = vrot.lane.b32.xlu2 %v2797_v7, %s4850_s26  ;;  %2950 = vrot.lane.b32.xlu1 %v2909_v29, %s4849_s25  ;;  %v2911_v32 = vrot.slane %v6049_v31, 3  ;;  %v2687_v40 = vrot.slane %v6049_v31, 1  ;;  %v2799_v57 = vrot.slane %v6049_v31, 2 }
 0x36e   : > { %2726 = vrot.lane.b32.xlu0 %v2685_v2, %s4851_s27 }
 0x36f   : > { %v2435_v21 = vrot.slane %v6028_v41, 2  ;;  %v2436_v56 = vrot.slane %v6028_v41, 4  ;;  %2549 = vst [vmem:[#allocation1 + $0x20] ss:$4 sm:$0xff] %v6028_v41  ;;  %v2437_v1 = vrot.slane %v6028_v41, 6 }
 0x371   : > { %2550 = vst [vmem:[#allocation1 + $0x21] ss:$4 sm:$0xff] %v2435_v21  ;;  %v2515_v3 = vperm.slane %v2435_v21, 1  ;;  %v2508_v17 = vperm.slane %v2436_v56, 0 }
 0x372   : > { %v6037_v20 = vld.sshfl [vmem:[#allocation1] sm:$0xff pattern:$0x73625140]  ;;  %v2348_v16 = vpop.f32.mrf.mxu1 }
 0x373   : > { %2553 = vst [vmem:[#allocation1 + $0x1] ss:$4 sm:$0xff] %v2436_v56  ;;  %v2349_v60 = vadd.f32 %v5997_v34, %v2348_v16  ;;  %v2912_v48 = vrot.slane %v6037_v20, 3  ;;  %v2688_v26 = vrot.slane %v6037_v20, 1  ;;  %v2800_v50 = vrot.slane %v6037_v20, 2 }
 0x374   : > { %2554 = vst [vmem:[#allocation1 + $0x2] ss:$4 sm:$0xff] %v2437_v1 }
 0x375   : > { %v2392_v51 = vmax.f32 %v2349_v60, 0.0  ;;  %2948 = vrot.lane.b32.xlu2 %v2910_v5, %s4849_s25  ;;  %2836 = vrot.lane.b32.xlu1 %v2798_v18, %s4850_s26  ;;  %v2913_v12 = vsel %vm699_vm1, %v2911_v32, %v2912_v48  ;;  %v2689_v59 = vsel %vm473_vm2, %v2687_v40, %v2688_v26  ;;  %v2801_v52 = vsel %vm586_vm3, %v2799_v57, %v2800_v50 }
 0x376   : > { %2724 = vrot.lane.b32.xlu0 %v2686_v39, %s4851_s27 }
 0x377   : > { %v2438_v9 = vrot.slane %v2392_v51, 2  ;;  %v2439_v10 = vrot.slane %v2392_v51, 4  ;;  %v2440_v6 = vrot.slane %v2392_v51, 6  ;;  %2555 = vst [vmem:[#allocation1 + $0x3] ss:$4 sm:$0xff] %v2392_v51 }
 0x378   : > { %v2552_v19 = vld.sshfl [vmem:[#allocation1 + $0x20] sm:$0xff pattern:$0x73625140] }
 0x379   : > { %2556 = vst [vmem:[#allocation1 + $0x20] ss:$4 sm:$0xff] %v2438_v9  ;;  %v6075_v54 = vsel %vm2657_vm12, %v2552_v19, %v2515_v3 }
 0x37a   : > { %2557 = vst [vmem:[#allocation1 + $0x21] ss:$4 sm:$0xff] %v2439_v10  ;;  %v2351_v58 = vpop.f32.mrf.mxu1  ;;  %v2914_v43 = vrot.slane %v6075_v54, 3  ;;  %v2802_v23 = vrot.slane %v6075_v54, 2  ;;  %v2690_v44 = vrot.slane %v6075_v54, 1 }
 0x37b   : > { %2558 = vst [vmem:[#allocation1 + $0x22] ss:$4 sm:$0xff] %v2440_v6  ;;  %v2352_v63 = vadd.f32 %v5997_v34, %v2351_v58 }
 0x37c   : > { %v2915_v61 = vsel %vm699_vm1, %v2912_v48, %v2914_v43  ;;  %v2803_v35 = vsel %vm586_vm3, %v2800_v50, %v2802_v23  ;;  %v2691_v53 = vsel %vm473_vm2, %v2688_v26, %v2690_v44 }
 0x37d   : > { %v6065_v15 = vmax.f32 %v2352_v63, 0.0  ;;  %2952 = vrot.lane.b32.xlu2 %v2913_v12, %s4849_s25  ;;  %2728 = vrot.lane.b32.xlu1 %v2689_v59, %s4851_s27 }
 0x37e   : > { %2840 = vrot.lane.b32.xlu0 %v2801_v52, %s4850_s26  ;;  %v2560_v62 = vld.sshfl [vmem:[#allocation1] sm:$0xff pattern:$0x73625140] }
 0x37f   : > { %v2441_v27 = vrot.slane %v6065_v15, 2  ;;  %v2442_v8 = vrot.slane %v6065_v15, 4  ;;  %2559 = vst [vmem:[#allocation1 + $0x23] ss:$4 sm:$0xff] %v6065_v15  ;;  %v2443_v47 = vrot.slane %v6065_v15, 6  ;;  %v6115_v41 = vsel %vm392_vm0, %v2508_v17, %v2560_v62  ;;  %v2500_v62 = vld [vmem:[%s7237_s5 + $0x58] sm:$0xff] }
 0x380   : > { %v2916_v60 = vrot.slane %v6115_v41, 3  ;;  %v2692_v5 = vrot.slane %v6115_v41, 1  ;;  %v2804_v36 = vrot.slane %v6115_v41, 2  ;;  %3446 = vmatpush.msrb.mxu0 %v2500_v62  ;;  %4641 = vmatpush.msra.mxu2 %v2500_v62 }
 0x381   : > { %2562 = vst [vmem:[#allocation1] ss:$4 sm:$0xff] %v2441_v27  ;;  %v2516_v6 = vperm.slane %v2442_v8, 1 }
 0x382   : > { %2563 = vst [vmem:[#allocation1 + $0x1] ss:$4 sm:$0xff] %v2442_v8  ;;  %v2354_v25 = vpop.f32.mrf.mxu1 }
 0x383   : > { %v2355_v55 = vadd.f32 %v5997_v34, %v2354_v25 }
 0x385   : > { %v2394_v11 = vmax.f32 %v2355_v55, 0.0  ;;  %2956 = vrot.lane.b32.xlu1 %v2914_v43, %s4849_s25  ;;  %2844 = vrot.lane.b32.xlu2 %v2802_v23, %s4850_s26 }
 0x386   : > { %v6089_v49 = vld.sshfl [vmem:[#allocation1 + $0x20] sm:$0xff pattern:$0x73625140]  ;;  %2732 = vrot.lane.b32.xlu0 %v2690_v44, %s4851_s27  ;;  %v2509_v44 = vperm.slane %v2443_v47, 0 }
 0x387   : > { %2565 = vst [vmem:[#allocation1 + $0x21] ss:$4 sm:$0xff] %v2443_v47  ;;  %v2444_v33 = vrot.slane %v2394_v11, 2  ;;  %v2445_v42 = vrot.slane %v2394_v11, 4  ;;  %v2446_v38 = vrot.slane %v2394_v11, 6  ;;  %v2917_v21 = vrot.slane %v6089_v49, 3 }
 0x388   : > { %2566 = vst [vmem:[#allocation1 + $0x22] ss:$4 sm:$0xff] %v2394_v11  ;;  %v2693_v56 = vrot.slane %v6089_v49, 1  ;;  %v2805_v1 = vrot.slane %v6089_v49, 2 }
 0x389   : > { %v2564_v24 = vld.sshfl [vmem:[#allocation1] sm:$0xff pattern:$0x73625140]  ;;  %2567 = vst [vmem:[#allocation1 + $0x23] ss:$4 sm:$0xff] %v2444_v33  ;;  %v2918_v51 = vsel %vm699_vm1, %v2916_v60, %v2917_v21 }
 0x38a   : > { %2569 = vst [vmem:[#allocation1] ss:$4 sm:$0xff] %v2445_v42  ;;  %v2357_v45 = vpop.f32.mrf.mxu1  ;;  %v2694_v39 = vsel %vm473_vm2, %v2692_v5, %v2693_v56  ;;  %v2806_v10 = vsel %vm586_vm3, %v2804_v36, %v2805_v1  ;;  %v6144_v58 = vsel %vm2657_vm12, %v2564_v24, %v2516_v6  ;;  %v2499_v42 = vld [vmem:[%s7237_s5 + $0x50] sm:$0xff] }
 0x38b   : > { %2570 = vst [vmem:[#allocation1 + $0x1] ss:$4 sm:$0xff] %v2446_v38  ;;  %v2358_v13 = vadd.f32 %v5997_v34, %v2357_v45  ;;  %v2919_v57 = vrot.slane %v6144_v58, 3  ;;  %v2807_v12 = vrot.slane %v6144_v58, 2  ;;  %v2695_v59 = vrot.slane %v6144_v58, 1  ;;  %3447 = vmatpush.msrb.mxu0 %v2499_v42  ;;  %4642 = vmatpush.msra.mxu2 %v2499_v42 }
 0x38d   : > { %v6102_v22 = vmax.f32 %v2358_v13, 0.0  ;;  %2954 = vrot.lane.b32.xlu2 %v2915_v61, %s4849_s25  ;;  %2842 = vrot.lane.b32.xlu1 %v2803_v35, %s4850_s26  ;;  %v2920_v43 = vsel %vm699_vm1, %v2917_v21, %v2919_v57  ;;  %v2808_v23 = vsel %vm586_vm3, %v2805_v1, %v2807_v12  ;;  %v2696_v33 = vsel %vm473_vm2, %v2693_v56, %v2695_v59 }
 0x38e   : > { %2730 = vrot.lane.b32.xlu0 %v2691_v53, %s4851_s27 }
 0x38f   : > { %v2447_v7 = vrot.slane %v6102_v22, 2  ;;  %v2448_v29 = vrot.slane %v6102_v22, 4  ;;  %v2449_v2 = vrot.slane %v6102_v22, 6  ;;  %2571 = vst [vmem:[#allocation1 + $0x2] ss:$4 sm:$0xff] %v6102_v22 }
 0x390   : > { %v6117_v28 = vld.sshfl [vmem:[#allocation1 + $0x20] sm:$0xff pattern:$0x73625140] }
 0x391   : > { %2572 = vst [vmem:[#allocation1 + $0x3] ss:$4 sm:$0xff] %v2447_v7  ;;  %v6183_v15 = vsel %vm392_vm0, %v2509_v44, %v6117_v28 }
 0x392   : > { %2573 = vst [vmem:[#allocation1 + $0x20] ss:$4 sm:$0xff] %v2448_v29  ;;  %v2360_v16 = vpop.f32.mrf.mxu1  ;;  %v2921_v17 = vrot.slane %v6183_v15, 3  ;;  %v2809_v53 = vrot.slane %v6183_v15, 2  ;;  %v2697_v29 = vrot.slane %v6183_v15, 1 }
 0x393   : > { %2574 = vst [vmem:[#allocation1 + $0x21] ss:$4 sm:$0xff] %v2449_v2  ;;  %v2361_v18 = vadd.f32 %v5997_v34, %v2360_v16  ;;  %v2517_v16 = vperm.slane %v2449_v2, 1 }
 0x395   : > { %v6130_v9 = vmax.f32 %v2361_v18, 0.0  ;;  %2958 = vrot.lane.b32.xlu2 %v2918_v51, %s4849_s25  ;;  %2734 = vrot.lane.b32.xlu1 %v2694_v39, %s4851_s27  ;;  %v2498_v39 = vld [vmem:[%s7237_s5 + $0x48] sm:$0xff] }
 0x396   : > { %2846 = vrot.lane.b32.xlu0 %v2806_v10, %s4850_s26  ;;  %3448 = vmatpush.msrb.mxu0 %v2498_v39 }
 0x397   : > { %v2450_v19 = vrot.slane %v6130_v9, 2  ;;  %v2451_v48 = vrot.slane %v6130_v9, 4  ;;  %v2452_v50 = vrot.slane %v6130_v9, 6  ;;  %4643 = vmatpush.msra.mxu2 %v2498_v39 }
 0x398   : > { %v6140_v26 = vld.sshfl [vmem:[#allocation1] sm:$0xff pattern:$0x73625140] }
 0x399   : > { %2577 = vst [vmem:[#allocation1 + $0x1] ss:$4 sm:$0xff] %v6130_v9  ;;  %v2922_v30 = vrot.slane %v6140_v26, 3  ;;  %v2810_v45 = vrot.slane %v6140_v26, 2  ;;  %v2698_v61 = vrot.slane %v6140_v26, 1 }
 0x39a   : > { %v6147_v32 = vld.sshfl [vmem:[#allocation1 + $0x20] sm:$0xff pattern:$0x73625140]  ;;  %2578 = vst [vmem:[#allocation1 + $0x2] ss:$4 sm:$0xff] %v2450_v19  ;;  %v2363_v40 = vpop.f32.mrf.mxu1 }
 0x39b   : > { %2579 = vst [vmem:[#allocation1 + $0x3] ss:$4 sm:$0xff] %v2451_v48  ;;  %v2364_v63 = vadd.f32 %v5997_v34, %v2363_v40  ;;  %v2923_v28 = vsel %vm699_vm1, %v2921_v17, %v2922_v30  ;;  %v2811_v21 = vsel %vm586_vm3, %v2809_v53, %v2810_v45  ;;  %v2699_v1 = vsel %vm473_vm2, %v2697_v29, %v2698_v61 }
 0x39c   : > { %2580 = vst [vmem:[#allocation1 + $0x20] ss:$4 sm:$0xff] %v2452_v50  ;;  %v6209_v51 = vsel %vm2657_vm12, %v6147_v32, %v2517_v16  ;;  %v2494_v16 = vld [vmem:[%s7237_s5 + $0x28] sm:$0xff] }
 0x39d   : > { %v2397_v52 = vmax.f32 %v2364_v63, 0.0  ;;  %2962 = vrot.lane.b32.xlu2 %v2919_v57, %s4849_s25  ;;  %2850 = vrot.lane.b32.xlu1 %v2807_v12, %s4850_s26  ;;  %v2924_v10 = vrot.slane %v6209_v51, 3  ;;  %v2812_v6 = vrot.slane %v6209_v51, 2  ;;  %v2700_v19 = vrot.slane %v6209_v51, 1  ;;  %v2497_v63 = vld [vmem:[%s7237_s5 + $0x40] sm:$0xff] }
 0x39e   : > { %2738 = vrot.lane.b32.xlu0 %v2695_v59, %s4851_s27  ;;  %3449 = vmatpush.msrb.mxu0 %v2497_v63 }
 0x39f   : > { %v2453_v3 = vrot.slane %v2397_v52, 2  ;;  %v2454_v27 = vrot.slane %v2397_v52, 4  ;;  %v2455_v8 = vrot.slane %v2397_v52, 6  ;;  %2581 = vst [vmem:[#allocation1 + $0x21] ss:$4 sm:$0xff] %v2397_v52  ;;  %4644 = vmatpush.msra.mxu2 %v2497_v63  ;;  %v2925_v52 = vsel %vm699_vm1, %v2922_v30, %v2924_v10 }
 0x3a0   : > { %v2701_v62 = vsel %vm473_vm2, %v2698_v61, %v2700_v19 }
 0x3a1   : > { %2582 = vst [vmem:[#allocation1 + $0x22] ss:$4 sm:$0xff] %v2453_v3  ;;  %v2813_v3 = vsel %vm586_vm3, %v2810_v45, %v2812_v6 }
 0x3a2   : > { %v6162_v25 = vld.sshfl [vmem:[#allocation1] sm:$0xff pattern:$0x73625140]  ;;  %2583 = vst [vmem:[#allocation1 + $0x23] ss:$4 sm:$0xff] %v2454_v27  ;;  %v2366_v4 = vpop.f32.mrf.mxu1  ;;  %v2510_v27 = vperm.slane %v6130_v9, 0 }
 0x3a3   : > { %2586 = vst [vmem:[#allocation1] ss:$4 sm:$0xff] %v2455_v8  ;;  %v2367_v55 = vadd.f32 %v5997_v34, %v2366_v4 }
 0x3a5   : > { %v6169_v11 = vmax.f32 %v2367_v55, 0.0  ;;  %2960 = vrot.lane.b32.xlu2 %v2920_v43, %s4849_s25  ;;  %2848 = vrot.lane.b32.xlu1 %v2808_v23, %s4850_s26  ;;  %v6248_v23 = vsel %vm392_vm0, %v2510_v27, %v6162_v25  ;;  %v2496_v25 = vld [vmem:[%s7237_s5 + $0x38] sm:$0xff] }
 0x3a6   : > { %2736 = vrot.lane.b32.xlu0 %v2696_v33, %s4851_s27  ;;  %v2702_v30 = vrot.slane %v6248_v23, 1  ;;  %3450 = vmatpush.msrb.mxu0 %v2496_v25 }
 0x3a7   : > { %v2456_v38 = vrot.slane %v6169_v11, 2  ;;  %v2457_v24 = vrot.slane %v6169_v11, 4  ;;  %2587 = vst [vmem:[#allocation1 + $0x1] ss:$4 sm:$0xff] %v6169_v11  ;;  %v2458_v47 = vrot.slane %v6169_v11, 6  ;;  %v2518_v45 = vperm.slane %v6169_v11, 1  ;;  %4645 = vmatpush.msra.mxu2 %v2496_v25 }
 0x3a9   : > { %v6188_v13 = vld.sshfl [vmem:[#allocation1 + $0x20] sm:$0xff pattern:$0x73625140] }
 0x3aa   : > { %2589 = vst [vmem:[#allocation1 + $0x21] ss:$4 sm:$0xff] %v2456_v38  ;;  %v2369_v35 = vpop.f32.mrf.mxu1  ;;  %v2927_v9 = vrot.slane %v6188_v13, 3  ;;  %v2703_v33 = vrot.slane %v6188_v13, 1  ;;  %v2815_v42 = vrot.slane %v6188_v13, 2 }
 0x3ab   : > { %2590 = vst [vmem:[#allocation1 + $0x22] ss:$4 sm:$0xff] %v2457_v24  ;;  %v2370_v7 = vadd.f32 %v5997_v34, %v2369_v35  ;;  %v2814_v35 = vrot.slane %v6248_v23, 2 }
 0x3ac   : > { %2591 = vst [vmem:[#allocation1 + $0x23] ss:$4 sm:$0xff] %v2458_v47  ;;  %v2926_v47 = vrot.slane %v6248_v23, 3  ;;  %v2704_v53 = vsel %vm473_vm2, %v2702_v30, %v2703_v33 }
 0x3ad   : > { %v2399_v56 = vmax.f32 %v2370_v7, 0.0  ;;  %2964 = vrot.lane.b32.xlu2 %v2923_v28, %s4849_s25  ;;  %2852 = vrot.lane.b32.xlu1 %v2811_v21, %s4850_s26  ;;  %v2816_v29 = vsel %vm586_vm3, %v2814_v35, %v2815_v42  ;;  %v2495_v21 = vld [vmem:[%s7237_s5 + $0x30] sm:$0xff] }
 0x3ae   : > { %v6204_v60 = vld.sshfl [vmem:[#allocation1] sm:$0xff pattern:$0x73625140]  ;;  %2740 = vrot.lane.b32.xlu0 %v2699_v1, %s4851_s27  ;;  %v2928_v17 = vsel %vm699_vm1, %v2926_v47, %v2927_v9  ;;  %3451 = vmatpush.msrb.mxu0 %v2495_v21 }
 0x3af   : > { %v2459_v5 = vrot.slane %v2399_v56, 2  ;;  %v2460_v18 = vrot.slane %v2399_v56, 4  ;;  %v2461_v36 = vrot.slane %v2399_v56, 6  ;;  %2593 = vst [vmem:[#allocation1] ss:$4 sm:$0xff] %v2399_v56  ;;  %v6276_v28 = vsel %vm2657_vm12, %v6204_v60, %v2518_v45  ;;  %4646 = vmatpush.msra.mxu2 %v2495_v21 }
 0x3b0   : > { %3452 = vmatpush.msrb.mxu0 %v2494_v16 }
 0x3b1   : > { %2594 = vst [vmem:[#allocation1 + $0x1] ss:$4 sm:$0xff] %v2459_v5  ;;  %v2929_v5 = vrot.slane %v6276_v28, 3  ;;  %4647 = vmatpush.msra.mxu2 %v2494_v16 }
 0x3b2   : > { %2595 = vst [vmem:[#allocation1 + $0x2] ss:$4 sm:$0xff] %v2460_v18  ;;  %v2372_v22 = vpop.f32.mrf.mxu1  ;;  %v2493_v18 = vld [vmem:[%s7237_s5 + $0x20] sm:$0xff] }
 0x3b3   : > { %2596 = vst [vmem:[#allocation1 + $0x3] ss:$4 sm:$0xff] %v2461_v36  ;;  %v2373_v2 = vadd.f32 %v5997_v34, %v2372_v22  ;;  %v6222_v50 = vld.sshfl [vmem:[#allocation1 + $0x20] sm:$0xff pattern:$0x73625140]  ;;  %3453 = vmatpush.msrb.mxu0 %v2493_v18  ;;  %v2817_v22 = vrot.slane %v6276_v28, 2  ;;  %4648 = vmatpush.msra.mxu2 %v2493_v18 }
 0x3b5   : > { %v6218_v48 = vmax.f32 %v2373_v2, 0.0  ;;  %2968 = vrot.lane.b32.xlu1 %v2924_v10, %s4849_s25  ;;  %2856 = vrot.lane.b32.xlu2 %v2812_v6, %s4850_s26  ;;  %v2492_v2 = vld [vmem:[%s7237_s5 + $0x18] sm:$0xff]  ;;  %v2930_v10 = vsel %vm699_vm1, %v2927_v9, %v2929_v5  ;;  %v2705_v6 = vrot.slane %v6276_v28, 1  ;;  %v2490_v9 = vld [vmem:[%s7237_s5 + $0x8] sm:$0xff] }
 0x3b6   : > { %2744 = vrot.lane.b32.xlu0 %v2700_v19, %s4851_s27  ;;  %3454 = vmatpush.msrb.mxu0 %v2492_v2  ;;  %v2511_v19 = vperm.slane %v2456_v38, 0 }
 0x3b7   : > { %v2462_v32 = vrot.slane %v6218_v48, 2  ;;  %v2463_v40 = vrot.slane %v6218_v48, 4  ;;  %2597 = vst [vmem:[#allocation1 + $0x20] ss:$4 sm:$0xff] %v6218_v48  ;;  %v2464_v46 = vrot.slane %v6218_v48, 6  ;;  %4649 = vmatpush.msra.mxu2 %v2492_v2 }
 0x3b9   : > { %2598 = vst [vmem:[#allocation1 + $0x21] ss:$4 sm:$0xff] %v2462_v32 }
 0x3ba   : > { %v6234_v57 = vld.sshfl [vmem:[#allocation1] sm:$0xff pattern:$0x73625140]  ;;  %v2375_v12 = vpop.f32.mrf.mxu1 }
 0x3bb   : > { %2601 = vst [vmem:[#allocation1 + $0x1] ss:$4 sm:$0xff] %v2463_v40  ;;  %v2376_v59 = vadd.f32 %v5997_v34, %v2375_v12  ;;  %v2491_v12 = vld [vmem:[%s7237_s5 + $0x10] sm:$0xff]  ;;  %v2708_v27 = vrot.slane %v6234_v57, 1 }
 0x3bc   : > { %2602 = vst [vmem:[#allocation1 + $0x2] ss:$4 sm:$0xff] %v2464_v46  ;;  %3455 = vmatpush.msrb.mxu0 %v2491_v12  ;;  %4650 = vmatpush.msra.mxu2 %v2491_v12 }
 0x3bd   : > { %v2401_v8 = vmax.f32 %v2376_v59, 0.0  ;;  %2966 = vrot.lane.b32.xlu2 %v2925_v52, %s4849_s25  ;;  %2854 = vrot.lane.b32.xlu1 %v2813_v3, %s4850_s26  ;;  %v6318_v3 = vsel %vm392_vm0, %v2511_v19, %v6222_v50  ;;  %v2818_v50 = vsel %vm586_vm3, %v2815_v42, %v2817_v22 }
 0x3be   : > { %2742 = vrot.lane.b32.xlu0 %v2701_v62, %s4851_s27  ;;  %3456 = vmatpush.msrb.mxu0 %v2490_v9  ;;  %v2931_v16 = vrot.slane %v6318_v3, 3 }
 0x3bf   : > { %v2465_v4 = vrot.slane %v2401_v8, 2  ;;  %v2466_v55 = vrot.slane %v2401_v8, 4  ;;  %v2467_v43 = vrot.slane %v2401_v8, 6  ;;  %2603 = vst [vmem:[#allocation1 + $0x3] ss:$4 sm:$0xff] %v2401_v8  ;;  %v2947_v47 = vpop.permute.xlu2 %2946  ;;  %4651 = vmatpush.msra.mxu2 %v2490_v9 }
 0x3c0   : > { %v6250_v44 = vld.sshfl [vmem:[#allocation1 + $0x20] sm:$0xff pattern:$0x73625140] }
 0x3c1   : > { %2604 = vst [vmem:[#allocation1 + $0x20] ss:$4 sm:$0xff] %v2465_v4  ;;  %v2707_v4 = vrot.slane %v6318_v3, 1 }
 0x3c2   : > { %2605 = vst [vmem:[#allocation1 + $0x21] ss:$4 sm:$0xff] %v2466_v55  ;;  %v2378_v24 = vpop.f32.mrf.mxu1 }
 0x3c3   : > { %2606 = vst [vmem:[#allocation1 + $0x22] ss:$4 sm:$0xff] %v2467_v43  ;;  %v2379_v61 = vadd.f32 %v5997_v34, %v2378_v24  ;;  %v2709_v43 = vsel %vm473_vm2, %v2707_v4, %v2708_v27 }
 0x3c5   : > { %v6267_v7 = vmax.f32 %v2379_v61, 0.0  ;;  %2970 = vrot.lane.b32.xlu2 %v2928_v17, %s4849_s25  ;;  %2746 = vrot.lane.b32.xlu1 %v2704_v53, %s4851_s27  ;;  %v2820_v17 = vrot.slane %v6234_v57, 2  ;;  %v2932_v53 = vrot.slane %v6234_v57, 3 }
 0x3c6   : > { %2858 = vrot.lane.b32.xlu0 %v2816_v29, %s4850_s26  ;;  %v6288_v60 = vld.sshfl [vmem:[#allocation1] sm:$0xff pattern:$0x73625140] }
 0x3c7   : > { %v2468_v56 = vrot.slane %v6267_v7, 2  ;;  %v2469_v1 = vrot.slane %v6267_v7, 4  ;;  %2607 = vst [vmem:[#allocation1 + $0x23] ss:$4 sm:$0xff] %v6267_v7  ;;  %v2470_v46 = vrot.slane %v6267_v7, 6 }
 0x3c9   : > { %2610 = vst [vmem:[#allocation1] ss:$4 sm:$0xff] %v2468_v56  ;;  %v2819_v56 = vrot.slane %v6318_v3, 2 }
 0x3ca   : > { %2611 = vst [vmem:[#allocation1 + $0x1] ss:$4 sm:$0xff] %v2469_v1  ;;  %v2381_v36 = vpop.f32.mrf.mxu1 }
 0x3cb   : > { %v2382_v39 = vadd.f32 %v5997_v34, %v2381_v36  ;;  %v2821_v18 = vsel %vm586_vm3, %v2819_v56, %v2820_v17  ;;  %v2933_v36 = vsel %vm699_vm1, %v2931_v16, %v2932_v53 }
 0x3cd   : > { %v2403_v63 = vmax.f32 %v2382_v39, 0.0  ;;  %2972 = vrot.lane.b32.xlu2 %v2930_v10, %s4849_s25  ;;  %2862 = vrot.lane.b32.xlu1 %v2817_v22, %s4850_s26  ;;  %v2519_v39 = vperm.slane %v2462_v32, 1  ;;  %v6370_v10 = vpop.permute.xlu2 %2838 }
 0x3ce   : > { %v6311_v59 = vld.sshfl [vmem:[#allocation1 + $0x20] sm:$0xff pattern:$0x73625140]  ;;  %2750 = vrot.lane.b32.xlu0 %v2705_v6, %s4851_s27 }
 0x3cf   : > { %2613 = vst [vmem:[#allocation1 + $0x21] ss:$4 sm:$0xff] %v2470_v46  ;;  %v2471_v11 = vrot.slane %v2403_v63, 2  ;;  %v2472_v38 = vrot.slane %v2403_v63, 4  ;;  %v2473_v52 = vrot.slane %v2403_v63, 6  ;;  %v2825_v16 = vrot.slane %v6311_v59, 2 }
 0x3d0   : > { %2614 = vst [vmem:[#allocation1 + $0x22] ss:$4 sm:$0xff] %v2403_v63 }
 0x3d1   : > { %v6321_v8 = vld.sshfl [vmem:[#allocation1] sm:$0xff pattern:$0x73625140]  ;;  %2615 = vst [vmem:[#allocation1 + $0x23] ss:$4 sm:$0xff] %v2471_v11 }
 0x3d2   : > { %2617 = vst [vmem:[#allocation1] ss:$4 sm:$0xff] %v2472_v38  ;;  %v2384_v62 = vpop.f32.mrf.mxu1 }
 0x3d3   : > { %2618 = vst [vmem:[#allocation1 + $0x1] ss:$4 sm:$0xff] %v2473_v52  ;;  %v2385_v55 = vadd.f32 %v5997_v34, %v2384_v62  ;;  %v2489_v34 = vld [vmem:[%s7237_s5] sm:$0xff] }
 0x3d4   : > { %3457 = vmatpush.msrb.mxu0 %v2489_v34  ;;  %4652 = vmatpush.msra.mxu2 %v2489_v34 }
 0x3d5   : > { %v6334_v24 = vmax.f32 %v2385_v55, 0.0  ;;  %2860 = vrot.lane.b32.xlu1 %v2818_v50, %s4850_s26  ;;  %2752 = vrot.lane.b32.xlu2 %v2709_v43, %s4851_s27 }
 0x3d6   : > { %2974 = vrot.lane.b32.xlu0 %v2929_v5, %s4849_s25 }
 0x3d7   : > { %v2474_v42 = vrot.slane %v6334_v24, 2  ;;  %v2475_v30 = vrot.slane %v6334_v24, 4  ;;  %v2476_v25 = vrot.slane %v6334_v24, 6  ;;  %2619 = vst [vmem:[#allocation1 + $0x2] ss:$4 sm:$0xff] %v6334_v24  ;;  %v2835_v45 = vpop.permute.xlu1 %2834 }
 0x3d8   : > { %v6346_v61 = vld.sshfl [vmem:[#allocation1 + $0x20] sm:$0xff pattern:$0x73625140]  ;;  %v2723_v35 = vpop.permute.xlu0 %2722 }
 0x3d9   : > { %2620 = vst [vmem:[#allocation1 + $0x3] ss:$4 sm:$0xff] %v2474_v42  ;;  %v3018_v29 = vsel %vm2051_vm9, %v6004_v0, %v2723_v35  ;;  %v2706_v0 = vsel %vm473_vm2, %v2703_v33, %v2705_v6  ;;  %v6378_v33 = vsel %vm2657_vm12, %v6250_v44, %v2519_v39  ;;  %v2512_v35 = vperm.slane %v2463_v40, 0 }
 0x3da   : > { %2621 = vst [vmem:[#allocation1 + $0x20] ss:$4 sm:$0xff] %v2475_v30  ;;  %v3042_v21 = vsel %vm2076_vm10, %v3018_v29, %v2835_v45  ;;  %v2934_v11 = vrot.slane %v6378_v33, 3  ;;  %v2822_v38 = vrot.slane %v6378_v33, 2  ;;  %v2710_v62 = vrot.slane %v6378_v33, 1 }
 0x3db   : > { %2622 = vst [vmem:[#allocation1 + $0x21] ss:$4 sm:$0xff] %v2476_v25  ;;  %v3066_v5 = vsel %vm2101_vm11, %v3042_v21, %v2947_v47  ;;  %v2949_v47 = vpop.permute.xlu2 %2948  ;;  %v2937_v40 = vrot.slane %v6311_v59, 3  ;;  %v2520_v39 = vperm.slane %v2469_v1, 1 }
 0x3dc   : > { %v3117_v22 = vrot.slane %v3066_v5, 4  ;;  %v3114_v12 = vrot.slane %v3066_v5, 1  ;;  %v3115_v32 = vrot.slane %v3066_v5, 2  ;;  %v3116_v52 = vrot.slane %v3066_v5, 3 }
 0x3dd   : > { %2864 = vrot.lane.b32.xlu1 %v2821_v18, %s4850_s26  ;;  %2976 = vrot.lane.b32.xlu2 %v2933_v36, %s4849_s25  ;;  %v3118_v4 = vrot.slane %v3066_v5, 5  ;;  %v3119_v44 = vrot.slane %v3066_v5, 6  ;;  %v3120_v55 = vrot.slane %v3066_v5, 7  ;;  %v2935_v30 = vsel %vm699_vm1, %v2932_v53, %v2934_v11 }
 0x3de   : > { %2748 = vrot.lane.b32.xlu0 %v2706_v0, %s4851_s27  ;;  %v2823_v45 = vsel %vm586_vm3, %v2820_v17, %v2822_v38  ;;  %v6404_v53 = vsel %vm392_vm0, %v2512_v35, %v6288_v60 }
 0x3df   : > { %v6368_v2 = vpop.permute.xlu1 %2950  ;;  %v2936_v0 = vrot.slane %v6404_v53, 3  ;;  %v2824_v60 = vrot.slane %v6404_v53, 2 }
 0x3e0   : > { %v6372_v19 = vld.sshfl [vmem:[#allocation1] sm:$0xff pattern:$0x73625140]  ;;  %v6374_v63 = vpop.permute.xlu0 %2726 }
 0x3e1   : > { %3253 = vst [vmem:[#allocation1 + $0x4] ss:$9 sm:$0xff] %v3117_v22 }
 0x3e2   : > { %v6380_v6 = vld.sshfl [vmem:[#allocation1 + $0x20] sm:$0xff pattern:$0x73625140] }
 0x3e3   : > { %3245 = vst [vmem:[#allocation1] ss:$9 sm:$0xff] %v3066_v5 }
 0x3e4   : > { %3247 = vst [vmem:[#allocation1 + $0x1] ss:$9 sm:$0xff] %v3114_v12  ;;  %v2712_v12 = vrot.slane %v6404_v53, 1 }
 0x3e5   : > { %3249 = vst [vmem:[#allocation1 + $0x2] ss:$9 sm:$0xff] %v3115_v32  ;;  %2980 = vrot.lane.b32.xlu2 %v2934_v11, %s4849_s25  ;;  %2868 = vrot.lane.b32.xlu1 %v2822_v38, %s4850_s26  ;;  %v2938_v11 = vsel %vm699_vm1, %v2936_v0, %v2937_v40  ;;  %v2826_v38 = vsel %vm586_vm3, %v2824_v60, %v2825_v16  ;;  %v2830_v0 = vrot.slane %v6372_v19, 2 }
 0x3e6   : > { %3251 = vst [vmem:[#allocation1 + $0x3] ss:$9 sm:$0xff] %v3116_v52  ;;  %2756 = vrot.lane.b32.xlu0 %v2710_v62, %s4851_s27  ;;  %v6425_v52 = vsel %vm2657_vm12, %v6321_v8, %v2520_v39 }
 0x3e7   : > { %3255 = vst [vmem:[#allocation1 + $0x5] ss:$9 sm:$0xff] %v3118_v4  ;;  %v2837_v50 = vpop.permute.xlu1 %2836  ;;  %v2953_v4 = vpop.permute.xlu2 %2952  ;;  %v2939_v7 = vrot.slane %v6425_v52, 3 }
 0x3e8   : > { %3257 = vst [vmem:[#allocation1 + $0x6] ss:$9 sm:$0xff] %v3119_v44  ;;  %v2725_v43 = vpop.permute.xlu0 %2724 }
 0x3e9   : > { %3259 = vst [vmem:[#allocation1 + $0x7] ss:$9 sm:$0xff] %v3120_v55  ;;  %v3019_v9 = vsel %vm2051_vm9, %v6006_v14, %v2725_v43  ;;  %v2711_v14 = vsel %vm473_vm2, %v2708_v27, %v2710_v62  ;;  %v2713_v27 = vrot.slane %v6311_v59, 1  ;;  %v3020_v62 = vsel %vm2051_vm9, %v6022_v37, %v6374_v63 }
 0x3ea   : > { %v3043_v34 = vsel %vm2076_vm10, %v3019_v9, %v2837_v50  ;;  %v2827_v55 = vrot.slane %v6425_v52, 2  ;;  %v3044_v50 = vsel %vm2076_vm10, %v3020_v62, %v6370_v10 }
 0x3eb   : > { %v3067_v42 = vsel %vm2101_vm11, %v3043_v34, %v2949_v47  ;;  %v2714_v1 = vsel %vm473_vm2, %v2712_v12, %v2713_v27  ;;  %v3068_v37 = vsel %vm2101_vm11, %v3044_v50, %v6368_v2  ;;  %v2715_v47 = vrot.slane %v6425_v52, 1 }
 0x3ec   : > { %v3121_v29 = vrot.slane %v3067_v42, 1  ;;  %v3122_v21 = vrot.slane %v3067_v42, 2  ;;  %v3123_v56 = vrot.slane %v3067_v42, 3  ;;  %v3124_v5 = vrot.slane %v3067_v42, 4 }
 0x3ed   : > { %2978 = vrot.lane.b32.xlu2 %v2935_v30, %s4849_s25  ;;  %2866 = vrot.lane.b32.xlu1 %v2823_v45, %s4850_s26  ;;  %v3125_v18 = vrot.slane %v3067_v42, 5  ;;  %v3126_v22 = vrot.slane %v3067_v42, 6  ;;  %v3127_v32 = vrot.slane %v3067_v42, 7  ;;  %v2828_v9 = vsel %vm586_vm3, %v2825_v16, %v2827_v55 }
 0x3ee   : > { %2754 = vrot.lane.b32.xlu0 %v2711_v14, %s4851_s27  ;;  %v3128_v10 = vrot.slane %v3068_v37, 1  ;;  %v3129_v30 = vrot.slane %v3068_v37, 2  ;;  %v2716_v16 = vsel %vm473_vm2, %v2713_v27, %v2715_v47  ;;  %v2521_v27 = vperm.slane %v2476_v25, 1 }
 0x3ef   : > { %v2729_v36 = vpop.permute.xlu1 %2728  ;;  %v6457_v35 = vpop.permute.xlu2 %2844 }
 0x3f0   : > { %v3260_v17 = vld [vmem:[#allocation1] sm:$0xff]  ;;  %v2841_v48 = vpop.permute.xlu0 %2840  ;;  %v3021_v44 = vsel %vm2051_vm9, %v6049_v31, %v2729_v36  ;;  %v2513_v31 = vperm.slane %v2470_v46, 0  ;;  %v2718_v46 = vrot.slane %v6372_v19, 1 }
 0x3f1   : > { %3261 = vst [vmem:[#allocation1] ss:$9 sm:$0xff] %v3067_v42  ;;  %3458 = vmatmul.f32.vlgmr.msrb.gmra.mxu0 %v3260_v17  ;;  %v3045_v43 = vsel %vm2076_vm10, %v3021_v44, %v2841_v48 }
 0x3f2   : > { %3262 = vst [vmem:[#allocation1 + $0x1] ss:$9 sm:$0xff] %v3121_v29  ;;  %v3069_v34 = vsel %vm2101_vm11, %v3045_v43, %v2953_v4  ;;  %v6453_v2 = vsel %vm392_vm0, %v2513_v31, %v6346_v61 }
 0x3f3   : > { %3263 = vst [vmem:[#allocation1 + $0x2] ss:$9 sm:$0xff] %v3122_v21  ;;  %v3130_v45 = vrot.slane %v3069_v34, 1  ;;  %v3131_v14 = vrot.slane %v3069_v34, 2  ;;  %v3132_v29 = vrot.slane %v3069_v34, 3  ;;  %v2717_v21 = vrot.slane %v6453_v2, 1 }
 0x3f4   : > { %3264 = vst [vmem:[#allocation1 + $0x3] ss:$9 sm:$0xff] %v3123_v56  ;;  %v3133_v17 = vrot.slane %v3069_v34, 4  ;;  %v2940_v56 = vsel %vm699_vm1, %v2937_v40, %v2939_v7  ;;  %v2942_v40 = vrot.slane %v6372_v19, 3  ;;  %v2941_v60 = vrot.slane %v6453_v2, 3 }
 0x3f5   : > { %3265 = vst [vmem:[#allocation1 + $0x4] ss:$9 sm:$0xff] %v3124_v5  ;;  %2982 = vrot.lane.b32.xlu2 %v2938_v11, %s4849_s25  ;;  %2870 = vrot.lane.b32.xlu1 %v2826_v38, %s4850_s26  ;;  %v2719_v48 = vsel %vm473_vm2, %v2717_v21, %v2718_v46  ;;  %v6486_v38 = vsel %vm2657_vm12, %v6380_v6, %v2521_v27  ;;  %v3135_v24 = vrot.slane %v3069_v34, 6 }
 0x3f6   : > { %3266 = vst [vmem:[#allocation1 + $0x5] ss:$9 sm:$0xff] %v3125_v18  ;;  %2758 = vrot.lane.b32.xlu0 %v2714_v1, %s4851_s27  ;;  %v3136_v1 = vrot.slane %v3069_v34, 7  ;;  %v2832_v50 = vrot.slane %v6486_v38, 2  ;;  %v2720_v6 = vrot.slane %v6486_v38, 1 }
 0x3f7   : > { %3267 = vst [vmem:[#allocation1 + $0x6] ss:$9 sm:$0xff] %v3126_v22  ;;  %v6441_v63 = vpop.permute.xlu1 %2956  ;;  %v2955_v39 = vpop.permute.xlu2 %2954  ;;  %v2829_v22 = vrot.slane %v6453_v2, 2 }
 0x3f8   : > { %3268 = vst [vmem:[#allocation1 + $0x7] ss:$9 sm:$0xff] %v3127_v32  ;;  %v6436_v8 = vpop.permute.xlu0 %2732  ;;  %v3134_v32 = vrot.slane %v3069_v34, 5  ;;  %v2833_v31 = vsel %vm586_vm3, %v2830_v0, %v2832_v50 }
 0x3f9   : > { %v2831_v11 = vsel %vm586_vm3, %v2829_v22, %v2830_v0 }
 0x3fd   : > { %2874 = vrot.lane.b32.xlu2 %v2827_v55, %s4850_s26  ;;  %2872 = vrot.lane.b32.xlu1 %v2828_v9, %s4850_s26  ;;  %v2944_v55 = vrot.slane %v6486_v38, 3 }
 0x3fe   : > { %2762 = vrot.lane.b32.xlu0 %v2715_v47, %s4851_s27 }
 0x3ff   : > { %v3269_v42 = vld [vmem:[#allocation1] sm:$0xff]  ;;  %v2843_v5 = vpop.permute.xlu1 %2842  ;;  %v2945_v47 = vsel %vm699_vm1, %v2942_v40, %v2944_v55 }
 0x400   : > { %3270 = vst [vmem:[#allocation1] ss:$9 sm:$0xff] %v3068_v37  ;;  %3461 = vmatmul.f32.gmra.mxu0 %v3269_v42  ;;  %v2731_v61 = vpop.permute.xlu0 %2730  ;;  %v2959_v42 = vpop.permute.xlu2 %2958 }
 0x401   : > { %3271 = vst [vmem:[#allocation1 + $0x1] ss:$9 sm:$0xff] %v3128_v10  ;;  %v3022_v18 = vsel %vm2051_vm9, %v6037_v20, %v2731_v61  ;;  %v2943_v20 = vsel %vm699_vm1, %v2941_v60, %v2942_v40  ;;  %v3023_v10 = vsel %vm2051_vm9, %v6075_v54, %v6436_v8 }
 0x402   : > { %3272 = vst [vmem:[#allocation1 + $0x2] ss:$9 sm:$0xff] %v3129_v30  ;;  %v3046_v36 = vsel %vm2076_vm10, %v3022_v18, %v2843_v5 }
 0x403   : > { %3273 = vst [vmem:[#allocation1 + $0x3] ss:$9 sm:$0xff] %v3069_v34  ;;  %v3070_v12 = vsel %vm2101_vm11, %v3046_v36, %v2955_v39  ;;  %v2721_v34 = vsel %vm473_vm2, %v2718_v46, %v2720_v6 }
 0x404   : > { %3274 = vst [vmem:[#allocation1 + $0x4] ss:$9 sm:$0xff] %v3130_v45  ;;  %v3137_v62 = vrot.slane %v3070_v12, 1  ;;  %v3138_v4 = vrot.slane %v3070_v12, 2  ;;  %v3139_v43 = vrot.slane %v3070_v12, 3  ;;  %v3140_v37 = vrot.slane %v3070_v12, 4 }
 0x405   : > { %3275 = vst [vmem:[#allocation1 + $0x5] ss:$9 sm:$0xff] %v3131_v14  ;;  %2984 = vrot.lane.b32.xlu2 %v2940_v56, %s4849_s25  ;;  %2764 = vrot.lane.b32.xlu1 %v2719_v48, %s4851_s27  ;;  %v3047_v45 = vsel %vm2076_vm10, %v3023_v10, %v6457_v35  ;;  %v3141_v46 = vrot.slane %v3070_v12, 5  ;;  %v3142_v21 = vrot.slane %v3070_v12, 6  ;;  %v3143_v54 = vrot.slane %v3070_v12, 7 }
 0x406   : > { %3276 = vst [vmem:[#allocation1 + $0x6] ss:$9 sm:$0xff] %v3132_v29  ;;  %2760 = vrot.lane.b32.xlu0 %v2716_v16, %s4851_s27  ;;  %v3071_v29 = vsel %vm2101_vm11, %v3047_v45, %v6441_v63 }
 0x407   : > { %3277 = vst [vmem:[#allocation1 + $0x7] ss:$9 sm:$0xff] %v3133_v17  ;;  %v2735_v9 = vpop.permute.xlu1 %2734  ;;  %v3144_v8 = vrot.slane %v3071_v29, 1  ;;  %v3145_v35 = vrot.slane %v3071_v29, 2 }
 0x408   : > { %v2847_v44 = vpop.permute.xlu0 %2846  ;;  %v3024_v30 = vsel %vm2051_vm9, %v6115_v41, %v2735_v9  ;;  %v2963_v56 = vpop.permute.xlu2 %2962 }
 0x409   : > { %v3048_v14 = vsel %vm2076_vm10, %v3024_v30, %v2847_v44 }
 0x40a   : > { %v3072_v41 = vsel %vm2101_vm11, %v3048_v14, %v2959_v42 }
 0x40b   : > { %v3146_v63 = vrot.slane %v3072_v41, 1  ;;  %v3147_v40 = vrot.slane %v3072_v41, 2  ;;  %v3148_v0 = vrot.slane %v3072_v41, 3  ;;  %v3149_v27 = vrot.slane %v3072_v41, 4 }
 0x40c   : > { %v3150_v22 = vrot.slane %v3072_v41, 5 }
 0x40d   : > { %2988 = vrot.lane.b32.xlu2 %v2943_v20, %s4849_s25  ;;  %2986 = vrot.lane.b32.xlu1 %v2939_v7, %s4849_s25  ;;  %v3152_v20 = vrot.slane %v3072_v41, 7 }
 0x40e   : > { %v3278_v25 = vld [vmem:[#allocation1] sm:$0xff]  ;;  %2876 = vrot.lane.b32.xlu0 %v2831_v11, %s4850_s26 }
 0x40f   : > { %3279 = vst [vmem:[#allocation1] ss:$9 sm:$0xff] %v3134_v32  ;;  %3464 = vmatmul.f32.vlgmr.msra.gmra.mxu2 %v3278_v25  ;;  %v2851_v61 = vpop.permute.xlu1 %2850 }
 0x410   : > { %3280 = vst [vmem:[#allocation1 + $0x1] ss:$9 sm:$0xff] %v3135_v24  ;;  %v2739_v7 = vpop.permute.xlu0 %2738  ;;  %v2961_v36 = vpop.permute.xlu2 %2960 }
 0x411   : > { %3281 = vst [vmem:[#allocation1 + $0x2] ss:$9 sm:$0xff] %v3136_v1  ;;  %v3026_v11 = vsel %vm2051_vm9, %v6144_v58, %v2739_v7 }
 0x412   : > { %3282 = vst [vmem:[#allocation1 + $0x3] ss:$9 sm:$0xff] %v3070_v12  ;;  %v3151_v12 = vrot.slane %v3072_v41, 6  ;;  %v3050_v25 = vsel %vm2076_vm10, %v3026_v11, %v2851_v61 }
 0x413   : > { %3283 = vst [vmem:[#allocation1 + $0x4] ss:$9 sm:$0xff] %v3137_v62 }
 0x414   : > { %3284 = vst [vmem:[#allocation1 + $0x5] ss:$9 sm:$0xff] %v3138_v4 }
 0x415   : > { %3285 = vst [vmem:[#allocation1 + $0x6] ss:$9 sm:$0xff] %v3139_v43  ;;  %2990 = vrot.lane.b32.xlu2 %v2945_v47, %s4849_s25  ;;  %2878 = vrot.lane.b32.xlu1 %v2833_v31, %s4850_s26  ;;  %v3074_v43 = vsel %vm2101_vm11, %v3050_v25, %v2963_v56 }
 0x416   : > { %3286 = vst [vmem:[#allocation1 + $0x7] ss:$9 sm:$0xff] %v3140_v37  ;;  %2766 = vrot.lane.b32.xlu0 %v2721_v34, %s4851_s27  ;;  %v3160_v9 = vrot.slane %v3074_v43, 1  ;;  %v3161_v30 = vrot.slane %v3074_v43, 2 }
 0x417   : > { %v2849_v5 = vpop.permute.xlu1 %2848 }
 0x418   : > { %v2737_v48 = vpop.permute.xlu0 %2736  ;;  %v2965_v58 = vpop.permute.xlu2 %2964 }
 0x419   : > { %v3025_v16 = vsel %vm2051_vm9, %v6089_v49, %v2737_v48 }
 0x41a   : > { %v3049_v18 = vsel %vm2076_vm10, %v3025_v16, %v2849_v5 }
 0x41b   : > { %v3073_v39 = vsel %vm2101_vm11, %v3049_v18, %v2961_v36 }
 0x41c   : > { %v3153_v32 = vrot.slane %v3073_v39, 1  ;;  %v3154_v24 = vrot.slane %v3073_v39, 2  ;;  %v3155_v1 = vrot.slane %v3073_v39, 3  ;;  %v3159_v37 = vrot.slane %v3073_v39, 7 }
 0x41d   : > { %v3287_v17 = vld [vmem:[#allocation1] sm:$0xff]  ;;  %2992 = vrot.lane.b32.xlu2 %v2944_v55, %s4849_s25  ;;  %2880 = vrot.lane.b32.xlu1 %v2832_v50, %s4850_s26  ;;  %v3156_v55 = vrot.slane %v3073_v39, 4  ;;  %v3157_v50 = vrot.slane %v3073_v39, 5 }
 0x41e   : > { %3288 = vst [vmem:[#allocation1] ss:$9 sm:$0xff] %v3141_v46  ;;  %3467 = vmatmul.f32.gmra.mxu2 %v3287_v17  ;;  %2768 = vrot.lane.b32.xlu0 %v2720_v6, %s4851_s27  ;;  %v3158_v6 = vrot.slane %v3073_v39, 6 }
 0x41f   : > { %3289 = vst [vmem:[#allocation1 + $0x1] ss:$9 sm:$0xff] %v3142_v21  ;;  %v2853_v4 = vpop.permute.xlu1 %2852 }
 0x420   : > { %3290 = vst [vmem:[#allocation1 + $0x2] ss:$9 sm:$0xff] %v3143_v54  ;;  %v2741_v49 = vpop.permute.xlu0 %2740  ;;  %v2857_v45 = vpop.permute.xlu2 %2856 }
 0x421   : > { %3291 = vst [vmem:[#allocation1 + $0x3] ss:$9 sm:$0xff] %v3071_v29  ;;  %v3027_v47 = vsel %vm2051_vm9, %v6183_v15, %v2741_v49 }
 0x422   : > { %3292 = vst [vmem:[#allocation1 + $0x4] ss:$9 sm:$0xff] %v3144_v8  ;;  %v3051_v31 = vsel %vm2076_vm10, %v3027_v47, %v2853_v4 }
 0x423   : > { %3293 = vst [vmem:[#allocation1 + $0x5] ss:$9 sm:$0xff] %v3145_v35  ;;  %v3075_v42 = vsel %vm2101_vm11, %v3051_v31, %v2965_v58 }
 0x424   : > { %3294 = vst [vmem:[#allocation1 + $0x6] ss:$9 sm:$0xff] %v3072_v41  ;;  %v3162_v14 = vrot.slane %v3075_v42, 1  ;;  %v3163_v46 = vrot.slane %v3075_v42, 2  ;;  %v3164_v29 = vrot.slane %v3075_v42, 3  ;;  %v3165_v21 = vrot.slane %v3075_v42, 4 }
 0x425   : > { %3295 = vst [vmem:[#allocation1 + $0x7] ss:$9 sm:$0xff] %v3146_v63  ;;  %v3166_v15 = vrot.slane %v3075_v42, 5  ;;  %v3167_v41 = vrot.slane %v3075_v42, 6  ;;  %v3168_v56 = vrot.slane %v3075_v42, 7 }
 0x427   : > { %v2969_v34 = vpop.permute.xlu1 %2968 }
 0x428   : > { %v6519_v44 = vpop.permute.xlu0 %2744  ;;  %v2967_v35 = vpop.permute.xlu2 %2966 }
 0x42c   : > { %v3296_v60 = vld [vmem:[#allocation1] sm:$0xff] }
 0x42d   : > { %3297 = vst [vmem:[#allocation1] ss:$9 sm:$0xff] %v3147_v40  ;;  %3470 = vmatmul.f32.gmra.mxu2 %v3296_v60 }
 0x42e   : > { %3298 = vst [vmem:[#allocation1 + $0x1] ss:$9 sm:$0xff] %v3148_v0 }
 0x42f   : > { %3299 = vst [vmem:[#allocation1 + $0x2] ss:$9 sm:$0xff] %v3149_v27  ;;  %v2855_v17 = vpop.permute.xlu1 %2854  ;;  %v3029_v27 = vsel %vm2051_vm9, %v6209_v51, %v6519_v44 }
 0x430   : > { %3300 = vst [vmem:[#allocation1 + $0x3] ss:$9 sm:$0xff] %v3150_v22  ;;  %v2743_v10 = vpop.permute.xlu0 %2742  ;;  %v3053_v22 = vsel %vm2076_vm10, %v3029_v27, %v2857_v45 }
 0x431   : > { %3301 = vst [vmem:[#allocation1 + $0x4] ss:$9 sm:$0xff] %v3151_v12  ;;  %v3028_v61 = vsel %vm2051_vm9, %v6140_v26, %v2743_v10  ;;  %v3077_v49 = vsel %vm2101_vm11, %v3053_v22, %v2969_v34 }
 0x432   : > { %3302 = vst [vmem:[#allocation1 + $0x5] ss:$9 sm:$0xff] %v3152_v20  ;;  %v3052_v8 = vsel %vm2076_vm10, %v3028_v61, %v2855_v17  ;;  %v3177_v51 = vrot.slane %v3077_v49, 2 }
 0x433   : > { %3303 = vst [vmem:[#allocation1 + $0x6] ss:$9 sm:$0xff] %v3073_v39  ;;  %v3076_v63 = vsel %vm2101_vm11, %v3052_v8, %v2967_v35 }
 0x434   : > { %3304 = vst [vmem:[#allocation1 + $0x7] ss:$9 sm:$0xff] %v3153_v32  ;;  %v3169_v48 = vrot.slane %v3076_v63, 1  ;;  %v3170_v5 = vrot.slane %v3076_v63, 2  ;;  %v3171_v40 = vrot.slane %v3076_v63, 3  ;;  %v3172_v26 = vrot.slane %v3076_v63, 4  ;;  %v2971_v32 = vpop.permute.xlu2 %2970 }
 0x435   : > { %v3173_v36 = vrot.slane %v3076_v63, 5  ;;  %v3174_v0 = vrot.slane %v3076_v63, 6  ;;  %v3175_v11 = vrot.slane %v3076_v63, 7 }
 0x437   : > { %v2747_v60 = vpop.permute.xlu1 %2746 }
 0x438   : > { %v2859_v54 = vpop.permute.xlu0 %2858  ;;  %v3030_v39 = vsel %vm2051_vm9, %v6248_v23, %v2747_v60 }
 0x439   : > { %v3054_v20 = vsel %vm2076_vm10, %v3030_v39, %v2859_v54 }
 0x43b   : > { %v3305_v62 = vld [vmem:[#allocation1] sm:$0xff] }
 0x43c   : > { %3306 = vst [vmem:[#allocation1] ss:$9 sm:$0xff] %v3154_v24  ;;  %3473 = vmatmul.f32.gmra.mxu2 %v3305_v62  ;;  %v3078_v24 = vsel %vm2101_vm11, %v3054_v20, %v2971_v32  ;;  %v3176_v62 = vrot.slane %v3077_v49, 1 }
 0x43d   : > { %3307 = vst [vmem:[#allocation1 + $0x1] ss:$9 sm:$0xff] %v3155_v1  ;;  %v3178_v4 = vrot.slane %v3078_v24, 1  ;;  %v3179_v23 = vrot.slane %v3078_v24, 2  ;;  %v3180_v44 = vrot.slane %v3078_v24, 3  ;;  %v3181_v58 = vrot.slane %v3078_v24, 4 }
 0x43e   : > { %3308 = vst [vmem:[#allocation1 + $0x2] ss:$9 sm:$0xff] %v3156_v55  ;;  %v3182_v47 = vrot.slane %v3078_v24, 5  ;;  %v3183_v34 = vrot.slane %v3078_v24, 6  ;;  %v3184_v10 = vrot.slane %v3078_v24, 7 }
 0x43f   : > { %3309 = vst [vmem:[#allocation1 + $0x3] ss:$9 sm:$0xff] %v3157_v50  ;;  %v2863_v1 = vpop.permute.xlu1 %2862 }
 0x440   : > { %3310 = vst [vmem:[#allocation1 + $0x4] ss:$9 sm:$0xff] %v3158_v6  ;;  %v6530_v18 = vpop.permute.xlu0 %2750  ;;  %v2973_v6 = vpop.permute.xlu2 %2972 }
 0x441   : > { %3311 = vst [vmem:[#allocation1 + $0x5] ss:$9 sm:$0xff] %v3159_v37 }
 0x442   : > { %3312 = vst [vmem:[#allocation1 + $0x6] ss:$9 sm:$0xff] %v3074_v43 }
 0x443   : > { %3313 = vst [vmem:[#allocation1 + $0x7] ss:$9 sm:$0xff] %v3160_v9 }
 0x447   : > { %v2861_v43 = vpop.permute.xlu1 %2860 }
 0x448   : > { %v2975_v12 = vpop.permute.xlu0 %2974 }
 0x44a   : > { %v3314_v7 = vld [vmem:[#allocation1] sm:$0xff] }
 0x44b   : > { %3315 = vst [vmem:[#allocation1] ss:$9 sm:$0xff] %v3161_v30  ;;  %3476 = vmatmul.f32.gmra.mxu2 %v3314_v7 }
 0x44c   : > { %3316 = vst [vmem:[#allocation1 + $0x1] ss:$9 sm:$0xff] %v3075_v42 }
 0x44d   : > { %3317 = vst [vmem:[#allocation1 + $0x2] ss:$9 sm:$0xff] %v3162_v14  ;;  %v3032_v14 = vsel %vm2051_vm9, %v6276_v28, %v6530_v18 }
 0x44e   : > { %3318 = vst [vmem:[#allocation1 + $0x3] ss:$9 sm:$0xff] %v3163_v46 }
 0x44f   : > { %3319 = vst [vmem:[#allocation1 + $0x4] ss:$9 sm:$0xff] %v3164_v29  ;;  %v2865_v7 = vpop.permute.xlu1 %2864  ;;  %v3056_v29 = vsel %vm2076_vm10, %v3032_v14, %v2863_v1 }
 0x450   : > { %3320 = vst [vmem:[#allocation1 + $0x5] ss:$9 sm:$0xff] %v3165_v21  ;;  %v2749_v55 = vpop.permute.xlu0 %2748  ;;  %v3080_v61 = vsel %vm2101_vm11, %v3056_v29, %v2975_v12 }
 0x451   : > { %3321 = vst [vmem:[#allocation1 + $0x6] ss:$9 sm:$0xff] %v3166_v15  ;;  %v3031_v50 = vsel %vm2051_vm9, %v6188_v13, %v2749_v55  ;;  %v2753_v13 = vpop.permute.xlu2 %2752 }
 0x452   : > { %3322 = vst [vmem:[#allocation1 + $0x7] ss:$9 sm:$0xff] %v3167_v41  ;;  %v3055_v37 = vsel %vm2076_vm10, %v3031_v50, %v2861_v43  ;;  %v3033_v8 = vsel %vm2051_vm9, %v6318_v3, %v2753_v13 }
 0x453   : > { %v3079_v9 = vsel %vm2101_vm11, %v3055_v37, %v2973_v6  ;;  %v3057_v28 = vsel %vm2076_vm10, %v3033_v8, %v2865_v7 }
 0x454   : > { %v3185_v42 = vrot.slane %v3079_v9, 1  ;;  %v3186_v30 = vrot.slane %v3079_v9, 2  ;;  %v3187_v45 = vrot.slane %v3079_v9, 3  ;;  %v3188_v46 = vrot.slane %v3079_v9, 4 }
 0x455   : > { %v3189_v21 = vrot.slane %v3079_v9, 5  ;;  %v3190_v54 = vrot.slane %v3079_v9, 6  ;;  %v3191_v41 = vrot.slane %v3079_v9, 7 }
 0x458   : > { %v2757_v35 = vpop.permute.xlu0 %2756 }
 0x459   : > { %v3323_v16 = vld [vmem:[#allocation1] sm:$0xff]  ;;  %v2977_v17 = vpop.permute.xlu2 %2976  ;;  %v3035_v1 = vsel %vm2051_vm9, %v6378_v33, %v2757_v35 }
 0x45a   : > { %3324 = vst [vmem:[#allocation1] ss:$9 sm:$0xff] %v3168_v56  ;;  %3479 = vmatmul.f32.gmra.mxu2 %v3323_v16  ;;  %v3193_v56 = vrot.slane %v3080_v61, 2  ;;  %v3081_v16 = vsel %vm2101_vm11, %v3057_v28, %v2977_v17 }
 0x45b   : > { %3325 = vst [vmem:[#allocation1 + $0x1] ss:$9 sm:$0xff] %v3076_v63  ;;  %v3192_v63 = vrot.slane %v3080_v61, 1  ;;  %v3196_v3 = vrot.slane %v3081_v16, 3  ;;  %v3197_v27 = vrot.slane %v3081_v16, 4  ;;  %v3198_v39 = vrot.slane %v3081_v16, 5 }
 0x45c   : > { %3326 = vst [vmem:[#allocation1 + $0x2] ss:$9 sm:$0xff] %v3169_v48  ;;  %v2869_v48 = vpop.permute.xlu1 %2868  ;;  %v3199_v22 = vrot.slane %v3081_v16, 6  ;;  %v3200_v20 = vrot.slane %v3081_v16, 7 }
 0x45d   : > { %3327 = vst [vmem:[#allocation1 + $0x3] ss:$9 sm:$0xff] %v3170_v5 }
 0x45e   : > { %3328 = vst [vmem:[#allocation1 + $0x4] ss:$9 sm:$0xff] %v3171_v40  ;;  %v3194_v40 = vrot.slane %v3081_v16, 1 }
 0x45f   : > { %3329 = vst [vmem:[#allocation1 + $0x5] ss:$9 sm:$0xff] %v3172_v26  ;;  %v3195_v26 = vrot.slane %v3081_v16, 2 }
 0x460   : > { %3330 = vst [vmem:[#allocation1 + $0x6] ss:$9 sm:$0xff] %v3173_v36  ;;  %v2755_v18 = vpop.permute.xlu0 %2754 }
 0x461   : > { %3331 = vst [vmem:[#allocation1 + $0x7] ss:$9 sm:$0xff] %v3174_v0  ;;  %v2981_v5 = vpop.permute.xlu2 %2980  ;;  %v3034_v60 = vsel %vm2051_vm9, %v6234_v57, %v2755_v18 }
 0x464   : > { %v2867_v0 = vpop.permute.xlu1 %2866 }
 0x465   : > { %v3058_v12 = vsel %vm2076_vm10, %v3034_v60, %v2867_v0 }
 0x468   : > { %v3332_v25 = vld [vmem:[#allocation1] sm:$0xff] }
 0x469   : > { %3333 = vst [vmem:[#allocation1] ss:$9 sm:$0xff] %v3175_v11  ;;  %3482 = vmatmul.f32.gmra.mxu2 %v3332_v25  ;;  %v2979_v32 = vpop.permute.xlu2 %2978  ;;  %v2759_v11 = vpop.permute.xlu0 %2758 }
 0x46a   : > { %3334 = vst [vmem:[#allocation1 + $0x1] ss:$9 sm:$0xff] %v3077_v49  ;;  %v3082_v49 = vsel %vm2101_vm11, %v3058_v12, %v2979_v32  ;;  %v3036_v6 = vsel %vm2051_vm9, %v6404_v53, %v2759_v11 }
 0x46b   : > { %3335 = vst [vmem:[#allocation1 + $0x2] ss:$9 sm:$0xff] %v3176_v62  ;;  %v3202_v57 = vrot.slane %v3082_v49, 2  ;;  %v3203_v62 = vrot.slane %v3082_v49, 3  ;;  %v3207_v55 = vrot.slane %v3082_v49, 7 }
 0x46c   : > { %3336 = vst [vmem:[#allocation1 + $0x3] ss:$9 sm:$0xff] %v3177_v51  ;;  %v3204_v51 = vrot.slane %v3082_v49, 4  ;;  %v2871_v33 = vpop.permute.xlu1 %2870 }
 0x46d   : > { %3337 = vst [vmem:[#allocation1 + $0x4] ss:$9 sm:$0xff] %v3078_v24  ;;  %v3201_v24 = vrot.slane %v3082_v49, 1 }
 0x46e   : > { %3338 = vst [vmem:[#allocation1 + $0x5] ss:$9 sm:$0xff] %v3178_v4  ;;  %v3205_v4 = vrot.slane %v3082_v49, 5 }
 0x46f   : > { %3339 = vst [vmem:[#allocation1 + $0x6] ss:$9 sm:$0xff] %v3179_v23  ;;  %v3059_v23 = vsel %vm2076_vm10, %v3035_v1, %v2869_v48 }
 0x470   : > { %3340 = vst [vmem:[#allocation1 + $0x7] ss:$9 sm:$0xff] %v3180_v44  ;;  %v3206_v44 = vrot.slane %v3082_v49, 6  ;;  %v3083_v43 = vsel %vm2101_vm11, %v3059_v23, %v2981_v5 }
 0x471   : > { %v2983_v50 = vpop.permute.xlu2 %2982  ;;  %v2763_v37 = vpop.permute.xlu0 %2762 }
 0x477   : > { %v3341_v31 = vld [vmem:[#allocation1] sm:$0xff] }
 0x478   : > { %3342 = vst [vmem:[#allocation1] ss:$9 sm:$0xff] %v3181_v58  ;;  %3485 = vmatmul.f32.gmra.mxu2 %v3341_v31  ;;  %v3060_v58 = vsel %vm2076_vm10, %v3036_v6, %v2871_v33  ;;  %v3209_v31 = vrot.slane %v3083_v43, 2 }
 0x479   : > { %3343 = vst [vmem:[#allocation1 + $0x1] ss:$9 sm:$0xff] %v3182_v47  ;;  %v3084_v47 = vsel %vm2101_vm11, %v3060_v58, %v2983_v50 }
 0x47a   : > { %3344 = vst [vmem:[#allocation1 + $0x2] ss:$9 sm:$0xff] %v3183_v34  ;;  %v3212_v13 = vrot.slane %v3084_v47, 3  ;;  %v3213_v7 = vrot.slane %v3084_v47, 4  ;;  %v3214_v53 = vrot.slane %v3084_v47, 5  ;;  %v3215_v17 = vrot.slane %v3084_v47, 6 }
 0x47b   : > { %3345 = vst [vmem:[#allocation1 + $0x3] ss:$9 sm:$0xff] %v3184_v10  ;;  %v2875_v10 = vpop.permute.xlu2 %2874 }
 0x47c   : > { %3346 = vst [vmem:[#allocation1 + $0x4] ss:$9 sm:$0xff] %v3079_v9  ;;  %v3208_v9 = vrot.slane %v3083_v43, 1 }
 0x47d   : > { %3347 = vst [vmem:[#allocation1 + $0x5] ss:$9 sm:$0xff] %v3185_v42  ;;  %v3210_v42 = vrot.slane %v3084_v47, 1 }
 0x47e   : > { %3348 = vst [vmem:[#allocation1 + $0x6] ss:$9 sm:$0xff] %v3186_v30  ;;  %v3211_v30 = vrot.slane %v3084_v47, 2 }
 0x47f   : > { %3349 = vst [vmem:[#allocation1 + $0x7] ss:$9 sm:$0xff] %v3187_v45  ;;  %v2761_v45 = vpop.permute.xlu0 %2760 }
 0x480   : > { %v3037_v14 = vsel %vm2051_vm9, %v6311_v59, %v2761_v45 }
 0x486   : > { %v3350_v15 = vld [vmem:[#allocation1] sm:$0xff] }
 0x487   : > { %3351 = vst [vmem:[#allocation1] ss:$9 sm:$0xff] %v3188_v46  ;;  %3488 = vmatmul.f32.gmra.mxu2 %v3350_v15  ;;  %v2873_v46 = vpop.permute.xlu1 %2872 }
 0x488   : > { %3352 = vst [vmem:[#allocation1 + $0x1] ss:$9 sm:$0xff] %v3189_v21  ;;  %v3061_v29 = vsel %vm2076_vm10, %v3037_v14, %v2873_v46  ;;  %v2985_v21 = vpop.permute.xlu2 %2984 }
 0x489   : > { %3353 = vst [vmem:[#allocation1 + $0x2] ss:$9 sm:$0xff] %v3190_v54  ;;  %v3085_v15 = vsel %vm2101_vm11, %v3061_v29, %v2985_v21 }
 0x48a   : > { %3354 = vst [vmem:[#allocation1 + $0x3] ss:$9 sm:$0xff] %v3191_v41  ;;  %v3217_v41 = vrot.slane %v3085_v15, 1  ;;  %v3218_v8 = vrot.slane %v3085_v15, 2  ;;  %v3219_v35 = vrot.slane %v3085_v15, 3  ;;  %v3221_v59 = vrot.slane %v3085_v15, 5 }
 0x48b   : > { %3355 = vst [vmem:[#allocation1 + $0x4] ss:$9 sm:$0xff] %v3080_v61  ;;  %v3216_v61 = vrot.slane %v3084_v47, 7 }
 0x48c   : > { %3356 = vst [vmem:[#allocation1 + $0x5] ss:$9 sm:$0xff] %v3192_v63  ;;  %v3220_v63 = vrot.slane %v3085_v15, 4 }
 0x48d   : > { %3357 = vst [vmem:[#allocation1 + $0x6] ss:$9 sm:$0xff] %v3193_v56  ;;  %v2877_v56 = vpop.permute.xlu0 %2876 }
 0x48e   : > { %3358 = vst [vmem:[#allocation1 + $0x7] ss:$9 sm:$0xff] %v3081_v16 }
 0x48f   : > { %v2765_v28 = vpop.permute.xlu1 %2764 }
 0x490   : > { %v3039_v48 = vsel %vm2051_vm9, %v6453_v2, %v2765_v28  ;;  %v2989_v5 = vpop.permute.xlu2 %2988 }
 0x491   : > { %v3063_v16 = vsel %vm2076_vm10, %v3039_v48, %v2877_v56 }
 0x492   : > { %v3087_v18 = vsel %vm2101_vm11, %v3063_v16, %v2989_v5  ;;  %v3465_v48 = vpop.f32.mrf.mxu2 }
 0x493   : > { %v3226_v60 = vrot.slane %v3087_v18, 1 }
 0x495   : > { %v3359_v36 = vld [vmem:[#allocation1] sm:$0xff] }
 0x496   : > { %3360 = vst [vmem:[#allocation1] ss:$9 sm:$0xff] %v3194_v40  ;;  %3491 = vmatmul.f32.gmra.mxu2 %v3359_v36  ;;  %v3038_v40 = vsel %vm2051_vm9, %v6425_v52, %v2763_v37  ;;  %v2767_v52 = vpop.permute.xlu0 %2766 }
 0x497   : > { %3361 = vst [vmem:[#allocation1 + $0x1] ss:$9 sm:$0xff] %v3195_v26  ;;  %v3222_v26 = vrot.slane %v3085_v15, 6  ;;  %v2987_v36 = vpop.permute.xlu1 %2986 }
 0x498   : > { %3362 = vst [vmem:[#allocation1 + $0x2] ss:$9 sm:$0xff] %v3196_v3  ;;  %v3223_v3 = vrot.slane %v3085_v15, 7  ;;  %v2991_v11 = vpop.permute.xlu2 %2990 }
 0x499   : > { %3363 = vst [vmem:[#allocation1 + $0x3] ss:$9 sm:$0xff] %v3197_v27  ;;  %v3227_v27 = vrot.slane %v3087_v18, 2 }
 0x49a   : > { %3364 = vst [vmem:[#allocation1 + $0x4] ss:$9 sm:$0xff] %v3198_v39  ;;  %v3062_v39 = vsel %vm2076_vm10, %v3038_v40, %v2875_v10 }
 0x49b   : > { %3365 = vst [vmem:[#allocation1 + $0x5] ss:$9 sm:$0xff] %v3199_v22  ;;  %v3086_v2 = vsel %vm2101_vm11, %v3062_v39, %v2987_v36 }
 0x49c   : > { %3366 = vst [vmem:[#allocation1 + $0x6] ss:$9 sm:$0xff] %v3200_v20  ;;  %v3224_v22 = vrot.slane %v3086_v2, 1  ;;  %v3225_v12 = vrot.slane %v3086_v2, 2  ;;  %v3040_v20 = vsel %vm2051_vm9, %v6372_v19, %v2767_v52 }
 0x49d   : > { %3367 = vst [vmem:[#allocation1 + $0x7] ss:$9 sm:$0xff] %v3082_v49 }
 0x49e   : > { %v2769_v19 = vpop.permute.xlu0 %2768 }
 0x49f   : > { %v2879_v32 = vpop.permute.xlu1 %2878 }
 0x4a0   : > { %v3064_v49 = vsel %vm2076_vm10, %v3040_v20, %v2879_v32  ;;  %v2993_v33 = vpop.permute.xlu2 %2992 }
 0x4a1   : > { %v3088_v1 = vsel %vm2101_vm11, %v3064_v49, %v2991_v11 }
 0x4a2   : > { %v3233_v23 = vrot.slane %v3088_v1, 1  ;;  %v3235_v6 = vrot.slane %v3088_v1, 3  ;;  %v3236_v37 = vrot.slane %v3088_v1, 4 }
 0x4a4   : > { %v3368_v25 = vld [vmem:[#allocation1] sm:$0xff] }
 0x4a5   : > { %3369 = vst [vmem:[#allocation1] ss:$9 sm:$0xff] %v3201_v24  ;;  %3494 = vmatmul.f32.gmra.mxu2 %v3368_v25  ;;  %v3230_v24 = vrot.slane %v3087_v18, 5 }
 0x4a6   : > { %3370 = vst [vmem:[#allocation1 + $0x1] ss:$9 sm:$0xff] %v3202_v57  ;;  %v3231_v57 = vrot.slane %v3087_v18, 6 }
 0x4a7   : > { %3371 = vst [vmem:[#allocation1 + $0x2] ss:$9 sm:$0xff] %v3203_v62  ;;  %v3232_v62 = vrot.slane %v3087_v18, 7  ;;  %v2881_v50 = vpop.permute.xlu1 %2880 }
 0x4a8   : > { %3372 = vst [vmem:[#allocation1 + $0x3] ss:$9 sm:$0xff] %v3204_v51  ;;  %v3228_v51 = vrot.slane %v3087_v18, 3 }
 0x4a9   : > { %3373 = vst [vmem:[#allocation1 + $0x4] ss:$9 sm:$0xff] %v3205_v4  ;;  %v3229_v4 = vrot.slane %v3087_v18, 4 }
 0x4aa   : > { %3374 = vst [vmem:[#allocation1 + $0x5] ss:$9 sm:$0xff] %v3206_v44  ;;  %v3234_v44 = vrot.slane %v3088_v1, 2 }
 0x4ab   : > { %3375 = vst [vmem:[#allocation1 + $0x6] ss:$9 sm:$0xff] %v3207_v55  ;;  %v3041_v55 = vsel %vm2051_vm9, %v6486_v38, %v2769_v19  ;;  %v3239_v38 = vrot.slane %v3088_v1, 7 }
 0x4ac   : > { %3376 = vst [vmem:[#allocation1 + $0x7] ss:$9 sm:$0xff] %v3083_v43  ;;  %v3065_v43 = vsel %vm2076_vm10, %v3041_v55, %v2881_v50 }
 0x4b3   : > { %v3377_v34 = vld [vmem:[#allocation1] sm:$0xff] }
 0x4b4   : > { %3378 = vst [vmem:[#allocation1] ss:$9 sm:$0xff] %v3208_v9  ;;  %3497 = vmatmul.f32.gmra.mxu2 %v3377_v34  ;;  %v3089_v9 = vsel %vm2101_vm11, %v3065_v43, %v2993_v33  ;;  %v6589_v34 = vld [vmem:[%s7238_s6] ss:$0 sm:$0xff] }
 0x4b5   : > { %3379 = vst [vmem:[#allocation1 + $0x1] ss:$9 sm:$0xff] %v3209_v31  ;;  %v3238_v31 = vrot.slane %v3088_v1, 6  ;;  %v3240_v10 = vrot.slane %v3089_v9, 1  ;;  %v3466_v16 = vadd.f32 %v6589_v34, %v3465_v48 }
 0x4b6   : > { %3380 = vst [vmem:[#allocation1 + $0x2] ss:$9 sm:$0xff] %v3084_v47  ;;  %v3237_v47 = vrot.slane %v3088_v1, 5 }
 0x4b7   : > { %3381 = vst [vmem:[#allocation1 + $0x3] ss:$9 sm:$0xff] %v3210_v42  ;;  %v3459_v42 = vpop.f32.mrf.mxu0  ;;  %v6594_v5 = vmax.f32 %v3466_v16, 0.0 }
 0x4b8   : > { %3382 = vst [vmem:[#allocation1 + $0x4] ss:$9 sm:$0xff] %v3211_v30  ;;  %v3241_v30 = vrot.slane %v3089_v9, 2  ;;  %v3460_v45 = vadd.f32 %v6589_v34, %v3459_v42 }
 0x4b9   : > { %3383 = vst [vmem:[#allocation1 + $0x5] ss:$9 sm:$0xff] %v3212_v13  ;;  %v3568_v36 = vrot.slane %v6594_v5, 1  ;;  %v3572_v20 = vrot.slane %v6594_v5, 5  ;;  %v3573_v32 = vrot.slane %v6594_v5, 6  ;;  %v3570_v50 = vrot.slane %v6594_v5, 3 }
 0x4ba   : > { %3384 = vst [vmem:[#allocation1 + $0x6] ss:$9 sm:$0xff] %v3213_v7  ;;  %v3516_v13 = vmax.f32 %v3460_v45, 0.0 }
 0x4bb   : > { %3385 = vst [vmem:[#allocation1 + $0x7] ss:$9 sm:$0xff] %v3214_v53 }
 0x4bc   : > { %v3554_v7 = vrot.slane %v3516_v13, 1  ;;  %v3555_v14 = vrot.slane %v3516_v13, 2  ;;  %v3556_v46 = vrot.slane %v3516_v13, 3  ;;  %v3557_v29 = vrot.slane %v3516_v13, 4 }
 0x4bd   : > { %v3558_v21 = vrot.slane %v3516_v13, 5 }
 0x4c2   : > { %v3386_v54 = vld [vmem:[#allocation1] sm:$0xff] }
 0x4c3   : > { %3387 = vst [vmem:[#allocation1] ss:$9 sm:$0xff] %v3215_v17  ;;  %3500 = vmatmul.f32.gmra.mxu2 %v3386_v54  ;;  %v3559_v54 = vrot.slane %v3516_v13, 6 }
 0x4c4   : > { %3388 = vst [vmem:[#allocation1 + $0x1] ss:$9 sm:$0xff] %v3216_v61 }
 0x4c5   : > { %3389 = vst [vmem:[#allocation1 + $0x2] ss:$9 sm:$0xff] %v3085_v15  ;;  %v3462_v15 = vpop.f32.mrf.mxu0 }
 0x4c6   : > { %3390 = vst [vmem:[#allocation1 + $0x3] ss:$9 sm:$0xff] %v3217_v41  ;;  %v3463_v17 = vadd.f32 %v6589_v34, %v3462_v15  ;;  %v3560_v41 = vrot.slane %v3516_v13, 7 }
 0x4c7   : > { %3391 = vst [vmem:[#allocation1 + $0x4] ss:$9 sm:$0xff] %v3218_v8 }
 0x4c8   : > { %3392 = vst [vmem:[#allocation1 + $0x5] ss:$9 sm:$0xff] %v3219_v35  ;;  %v3517_v61 = vmax.f32 %v3463_v17, 0.0 }
 0x4c9   : > { %3393 = vst [vmem:[#allocation1 + $0x6] ss:$9 sm:$0xff] %v3220_v63 }
 0x4ca   : > { %3394 = vst [vmem:[#allocation1 + $0x7] ss:$9 sm:$0xff] %v3221_v59  ;;  %v3561_v35 = vrot.slane %v3517_v61, 1  ;;  %v3562_v63 = vrot.slane %v3517_v61, 2  ;;  %v3563_v59 = vrot.slane %v3517_v61, 3  ;;  %v3564_v28 = vrot.slane %v3517_v61, 4 }
 0x4cb   : > { %v3565_v56 = vrot.slane %v3517_v61, 5  ;;  %v3567_v40 = vrot.slane %v3517_v61, 7 }
 0x4d1   : > { %v3395_v0 = vld [vmem:[#allocation1] sm:$0xff] }
 0x4d2   : > { %3396 = vst [vmem:[#allocation1] ss:$9 sm:$0xff] %v3222_v26  ;;  %3503 = vmatmul.f32.gmra.mxu2 %v3395_v0  ;;  %v3468_v0 = vpop.f32.mrf.mxu2 }
 0x4d3   : > { %3397 = vst [vmem:[#allocation1 + $0x1] ss:$9 sm:$0xff] %v3223_v3  ;;  %v3569_v3 = vrot.slane %v6594_v5, 2 }
 0x4d4   : > { %3401 = vst [vmem:[#allocation1 + $0x5] ss:$9 sm:$0xff] %v3087_v18  ;;  %v3566_v18 = vrot.slane %v3517_v61, 6 }
 0x4d5   : > { %3402 = vst [vmem:[#allocation1 + $0x6] ss:$9 sm:$0xff] %v3226_v60  ;;  %v3704_v60 = vperm.slane %v3516_v13, 0 }
 0x4d6   : > { %3403 = vst [vmem:[#allocation1 + $0x7] ss:$9 sm:$0xff] %v3227_v27  ;;  %v3571_v27 = vrot.slane %v6594_v5, 4 }
 0x4d7   : > { %3398 = vst [vmem:[#allocation1 + $0x2] ss:$9 sm:$0xff] %v3086_v2  ;;  %v3469_v2 = vadd.f32 %v6589_v34, %v3468_v0 }
 0x4d8   : > { %3399 = vst [vmem:[#allocation1 + $0x3] ss:$9 sm:$0xff] %v3224_v22  ;;  %v3720_v22 = vperm.slane %v3569_v3, 0 }
 0x4d9   : > { %3400 = vst [vmem:[#allocation1 + $0x4] ss:$9 sm:$0xff] %v3225_v12 }
 0x4e0   : > { %v3404_v25 = vld [vmem:[#allocation1] sm:$0xff] }
 0x4e1   : > { %3407 = vst [vmem:[#allocation1 + $0x2] ss:$9 sm:$0xff] %v3230_v24  ;;  %3506 = vmatmul.f32.gmra.mxu2 %v3404_v25  ;;  %v3574_v24 = vrot.slane %v6594_v5, 7 }
 0x4e2   : > { %3408 = vst [vmem:[#allocation1 + $0x3] ss:$9 sm:$0xff] %v3231_v57 }
 0x4e3   : > { %3409 = vst [vmem:[#allocation1 + $0x4] ss:$9 sm:$0xff] %v3232_v62 }
 0x4e4   : > { %3405 = vst [vmem:[#allocation1] ss:$9 sm:$0xff] %v3228_v51 }
 0x4e5   : > { %3406 = vst [vmem:[#allocation1 + $0x1] ss:$9 sm:$0xff] %v3229_v4 }
 0x4e6   : > { %3410 = vst [vmem:[#allocation1 + $0x5] ss:$9 sm:$0xff] %v3088_v1 }
 0x4e7   : > { %3411 = vst [vmem:[#allocation1 + $0x6] ss:$9 sm:$0xff] %v3233_v23 }
 0x4e8   : > { %3412 = vst [vmem:[#allocation1 + $0x7] ss:$9 sm:$0xff] %v3234_v44  ;;  %v3519_v44 = vmax.f32 %v3469_v2, 0.0 }
 0x4ea   : > { %v3578_v45 = vrot.slane %v3519_v44, 4 }
 0x4ef   : > { %v3413_v58 = vld [vmem:[#allocation1] sm:$0xff] }
 0x4f0   : > { %3414 = vst [vmem:[#allocation1] ss:$9 sm:$0xff] %v3235_v6  ;;  %3509 = vmatmul.f32.gmra.mxu2 %v3413_v58 }
 0x4f1   : > { %3415 = vst [vmem:[#allocation1 + $0x1] ss:$9 sm:$0xff] %v3236_v37 }
 0x4f2   : > { %3416 = vst [vmem:[#allocation1 + $0x2] ss:$9 sm:$0xff] %v3237_v47 }
 0x4f3   : > { %3417 = vst [vmem:[#allocation1 + $0x3] ss:$9 sm:$0xff] %v3238_v31  ;;  %v3575_v31 = vrot.slane %v3519_v44, 1 }
 0x4f4   : > { %3418 = vst [vmem:[#allocation1 + $0x4] ss:$9 sm:$0xff] %v3239_v38  ;;  %v3471_v38 = vpop.f32.mrf.mxu2 }
 0x4f5   : > { %3419 = vst [vmem:[#allocation1 + $0x5] ss:$9 sm:$0xff] %v3089_v9 }
 0x4f6   : > { %3420 = vst [vmem:[#allocation1 + $0x6] ss:$9 sm:$0xff] %v3240_v10  ;;  %v3576_v10 = vrot.slane %v3519_v44, 2 }
 0x4f7   : > { %3421 = vst [vmem:[#allocation1 + $0x7] ss:$9 sm:$0xff] %v3241_v30  ;;  %v3577_v30 = vrot.slane %v3519_v44, 3 }
 0x4fc   : > { %v3474_v48 = vpop.f32.mrf.mxu2 }
 0x4fe   : > { %v3422_v53 = vld [vmem:[#allocation1] sm:$0xff] }
 0x4ff   : > { %3737 = vst [vmem:[#allocation1 + $0x2] ss:$9 sm:$0xff] %v3516_v13  ;;  %3512 = vmatmul.f32.gmra.mxu2 %v3422_v53  ;;  %v3472_v13 = vadd.f32 %v6589_v34, %v3471_v38  ;;  %v3580_v53 = vrot.slane %v3519_v44, 6 }
 0x500   : > { %3739 = vst [vmem:[#allocation1 + $0x3] ss:$9 sm:$0xff] %v3554_v7  ;;  %v3579_v7 = vrot.slane %v3519_v44, 5 }
 0x501   : > { %3741 = vst [vmem:[#allocation1 + $0x4] ss:$9 sm:$0xff] %v3555_v14  ;;  %v3581_v14 = vrot.slane %v3519_v44, 7 }
 0x502   : > { %3743 = vst [vmem:[#allocation1 + $0x5] ss:$9 sm:$0xff] %v3556_v46  ;;  %v6636_v46 = vmax.f32 %v3472_v13, 0.0 }
 0x503   : > { %3745 = vst [vmem:[#allocation1 + $0x6] ss:$9 sm:$0xff] %v3557_v29  ;;  %v3705_v29 = vperm.slane %v3570_v50, 0 }
 0x504   : > { %3747 = vst [vmem:[#allocation1 + $0x7] ss:$9 sm:$0xff] %v3558_v21  ;;  %v3582_v15 = vrot.slane %v6636_v46, 1  ;;  %v3583_v17 = vrot.slane %v6636_v46, 2  ;;  %v3588_v2 = vrot.slane %v6636_v46, 7 }
 0x50b   : > { %v3748_v8 = vld [vmem:[#allocation1] sm:$0xff] }
 0x50c   : > { %3749 = vst [vmem:[#allocation1] ss:$9 sm:$0xff] %v3559_v54  ;;  %v6603_v39 = vsel %vm392_vm0, %v3704_v60, %v3748_v8  ;;  %v3475_v60 = vadd.f32 %v6589_v34, %v3474_v48 }
 0x50d   : > { %3751 = vst [vmem:[#allocation1 + $0x1] ss:$9 sm:$0xff] %v3560_v41  ;;  %v4199_v25 = vrot.slane %v6603_v39, 3  ;;  %v4087_v1 = vrot.slane %v6603_v39, 2  ;;  %v3975_v4 = vrot.slane %v6603_v39, 1 }
 0x50e   : > { %3752 = vst [vmem:[#allocation1 + $0x2] ss:$9 sm:$0xff] %v3517_v61  ;;  %v3584_v61 = vrot.slane %v6636_v46, 3 }
 0x50f   : > { %3753 = vst [vmem:[#allocation1 + $0x3] ss:$9 sm:$0xff] %v3561_v35 }
 0x510   : > { %3754 = vst [vmem:[#allocation1 + $0x4] ss:$9 sm:$0xff] %v3562_v63 }
 0x511   : > { %3755 = vst [vmem:[#allocation1 + $0x5] ss:$9 sm:$0xff] %v3563_v59 }
 0x512   : > { %3756 = vst [vmem:[#allocation1 + $0x6] ss:$9 sm:$0xff] %v3564_v28 }
 0x513   : > { %3757 = vst [vmem:[#allocation1 + $0x7] ss:$9 sm:$0xff] %v3565_v56  ;;  %v3585_v56 = vrot.slane %v6636_v46, 4 }
 0x51a   : > { %v6596_v26 = vld [vmem:[#allocation1] sm:$0xff] }
 0x51b   : > { %3759 = vst [vmem:[#allocation1] ss:$9 sm:$0xff] %v3566_v18  ;;  %v4200_v12 = vrot.slane %v6596_v26, 3  ;;  %v4088_v52 = vrot.slane %v6596_v26, 2  ;;  %v3976_v11 = vrot.slane %v6596_v26, 1 }
 0x51c   : > { %3760 = vst [vmem:[#allocation1 + $0x1] ss:$9 sm:$0xff] %v3567_v40  ;;  %v3586_v40 = vrot.slane %v6636_v46, 5 }
 0x51d   : > { %3761 = vst [vmem:[#allocation1 + $0x2] ss:$9 sm:$0xff] %v6594_v5  ;;  %v4201_v19 = vsel %vm699_vm1, %v4199_v25, %v4200_v12  ;;  %v4089_v55 = vsel %vm586_vm3, %v4087_v1, %v4088_v52  ;;  %v3977_v6 = vsel %vm473_vm2, %v3975_v4, %v3976_v11  ;;  %v3587_v4 = vrot.slane %v6636_v46, 6 }
 0x51e   : > { %3762 = vst [vmem:[#allocation1 + $0x3] ss:$9 sm:$0xff] %v3568_v36 }
 0x51f   : > { %3763 = vst [vmem:[#allocation1 + $0x4] ss:$9 sm:$0xff] %v3569_v3 }
 0x526   : > { %v3764_v49 = vld [vmem:[#allocation1] sm:$0xff] }
 0x527   : > { %v6613_v57 = vsel %vm699_vm1, %v3764_v49, %v3720_v22  ;;  %3766 = vst [vmem:[#allocation1 + $0x3] ss:$9 sm:$0xff] %v3571_v27  ;;  %v3521_v27 = vmax.f32 %v3475_v60, 0.0  ;;  %v3721_v22 = vperm.slane %v3586_v40, 0 }
 0x528   : > { %v4202_v62 = vrot.slane %v6613_v57, 3  ;;  %3767 = vst [vmem:[#allocation1 + $0x4] ss:$9 sm:$0xff] %v3572_v20  ;;  %v4090_v51 = vrot.slane %v6613_v57, 2  ;;  %v3978_v23 = vrot.slane %v6613_v57, 1 }
 0x529   : > { %3768 = vst [vmem:[#allocation1 + $0x5] ss:$9 sm:$0xff] %v3573_v32  ;;  %v3590_v32 = vrot.slane %v3521_v27, 2  ;;  %v3591_v25 = vrot.slane %v3521_v27, 3 }
 0x52a   : > { %v4203_v43 = vsel %vm699_vm1, %v4200_v12, %v4202_v62  ;;  %3769 = vst [vmem:[#allocation1 + $0x6] ss:$9 sm:$0xff] %v3574_v24  ;;  %v4091_v33 = vsel %vm586_vm3, %v4088_v52, %v4090_v51  ;;  %v3979_v37 = vsel %vm473_vm2, %v3976_v11, %v3978_v23  ;;  %v3589_v52 = vrot.slane %v3521_v27, 1 }
 0x52b   : > { %v4677_v58 = vpack.i.bf16 %v4203_v43, %v4201_v19  ;;  %3770 = vst [vmem:[#allocation1 + $0x7] ss:$9 sm:$0xff] %v3519_v44  ;;  %v4672_v9 = vpack.i.bf16 %v4091_v33, %v4089_v55  ;;  %v4667_v47 = vpack.i.bf16 %v3979_v37, %v3977_v6  ;;  %v3477_v55 = vpop.f32.mrf.mxu2  ;;  %v3592_v43 = vrot.slane %v3521_v27, 4 }
 0x52c   : > { %3765 = vst [vmem:[#allocation1 + $0x2] ss:$9 sm:$0xff] %v3570_v50  ;;  %v3478_v50 = vadd.f32 %v6589_v34, %v3477_v55  ;;  %v3593_v33 = vrot.slane %v3521_v27, 5  ;;  %v3701_v55 = vld [vmem:[%s7239_s7 + $0x70] sm:$0xff] }
 0x52d   : > { %4678 = vrot.lane.b32.xlu2 %v4677_v58, %s4849_s25  ;;  %4673 = vrot.lane.b32.xlu1 %v4672_v9, %s4850_s26  ;;  %v3594_v58 = vrot.slane %v3521_v27, 6  ;;  %v3595_v9 = vrot.slane %v3521_v27, 7 }
 0x52e   : > { %4668 = vrot.lane.b32.xlu0 %v4667_v47, %s4851_s27  ;;  %v3522_v6 = vmax.f32 %v3478_v50, 0.0 }
 0x530   : > { %v3596_v47 = vrot.slane %v3522_v6, 1  ;;  %v3598_v38 = vrot.slane %v3522_v6, 3 }
 0x533   : > { %v3771_v42 = vld [vmem:[#allocation1] sm:$0xff] }
 0x534   : > { %3772 = vst [vmem:[#allocation1] ss:$9 sm:$0xff] %v3575_v31  ;;  %v6640_v21 = vsel %vm392_vm0, %v3705_v29, %v3771_v42  ;;  %v3597_v31 = vrot.slane %v3522_v6, 2  ;;  %v3599_v42 = vrot.slane %v3522_v6, 4 }
 0x535   : > { %3773 = vst [vmem:[#allocation1 + $0x1] ss:$9 sm:$0xff] %v3576_v10  ;;  %v4204_v41 = vrot.slane %v6640_v21, 3  ;;  %v4092_v8 = vrot.slane %v6640_v21, 2  ;;  %v3980_v59 = vrot.slane %v6640_v21, 1  ;;  %v3480_v10 = vpop.f32.mrf.mxu2 }
 0x536   : > { %3774 = vst [vmem:[#allocation1 + $0x2] ss:$9 sm:$0xff] %v3577_v30  ;;  %v3481_v30 = vadd.f32 %v6589_v34, %v3480_v10 }
 0x537   : > { %3775 = vst [vmem:[#allocation1 + $0x3] ss:$9 sm:$0xff] %v3578_v45  ;;  %v3600_v45 = vrot.slane %v3522_v6, 5 }
 0x538   : > { %3776 = vst [vmem:[#allocation1 + $0x4] ss:$9 sm:$0xff] %v3579_v7  ;;  %v3601_v7 = vrot.slane %v3522_v6, 6 }
 0x539   : > { %3777 = vst [vmem:[#allocation1 + $0x5] ss:$9 sm:$0xff] %v3580_v53  ;;  %v3602_v53 = vrot.slane %v3522_v6, 7 }
 0x53a   : > { %3778 = vst [vmem:[#allocation1 + $0x6] ss:$9 sm:$0xff] %v3581_v14  ;;  %v6684_v14 = vmax.f32 %v3481_v30, 0.0 }
 0x53b   : > { %3779 = vst [vmem:[#allocation1 + $0x7] ss:$9 sm:$0xff] %v6636_v46  ;;  %v3706_v46 = vperm.slane %v3587_v4, 0 }
 0x542   : > { %v6645_v54 = vld [vmem:[#allocation1] sm:$0xff] }
 0x543   : > { %v4205_v35 = vrot.slane %v6645_v54, 3  ;;  %3781 = vst [vmem:[#allocation1] ss:$9 sm:$0xff] %v3582_v15  ;;  %v4093_v63 = vrot.slane %v6645_v54, 2  ;;  %v3981_v28 = vrot.slane %v6645_v54, 1  ;;  %v3604_v15 = vrot.slane %v6684_v14, 2 }
 0x544   : > { %3782 = vst [vmem:[#allocation1 + $0x1] ss:$9 sm:$0xff] %v3583_v17  ;;  %v3722_v17 = vperm.slane %v6684_v14, 0 }
 0x545   : > { %v4206_v16 = vsel %vm699_vm1, %v4204_v41, %v4205_v35  ;;  %3783 = vst [vmem:[#allocation1 + $0x2] ss:$9 sm:$0xff] %v3584_v61  ;;  %v4094_v5 = vsel %vm586_vm3, %v4092_v8, %v4093_v63  ;;  %v3982_v18 = vsel %vm473_vm2, %v3980_v59, %v3981_v28  ;;  %v3605_v8 = vrot.slane %v6684_v14, 3 }
 0x546   : > { %v4692_v36 = vpack.i.bf16 %v4206_v16, %v4202_v62  ;;  %3784 = vst [vmem:[#allocation1 + $0x3] ss:$9 sm:$0xff] %v3585_v56  ;;  %v4687_v3 = vpack.i.bf16 %v4094_v5, %v4090_v51  ;;  %v4682_v0 = vpack.i.bf16 %v3982_v18, %v3978_v23 }
 0x547   : > { %3785 = vst [vmem:[#allocation1 + $0x4] ss:$9 sm:$0xff] %v3586_v40 }
 0x548   : > { %4693 = vrot.lane.b32.xlu2 %v4692_v36, %s4849_s25  ;;  %4688 = vrot.lane.b32.xlu1 %v4687_v3, %s4850_s26  ;;  %v3608_v3 = vrot.slane %v6684_v14, 6 }
 0x549   : > { %4683 = vrot.lane.b32.xlu0 %v4682_v0, %s4851_s27  ;;  %v3483_v0 = vpop.f32.mrf.mxu2 }
 0x54e   : > { %v3786_v12 = vld [vmem:[#allocation1] sm:$0xff] }
 0x54f   : > { %v6668_v20 = vsel %vm699_vm1, %v3786_v12, %v3721_v22  ;;  %3788 = vst [vmem:[#allocation1 + $0x3] ss:$9 sm:$0xff] %v3588_v2  ;;  %v3603_v2 = vrot.slane %v6684_v14, 1 }
 0x550   : > { %v4207_v49 = vrot.slane %v6668_v20, 3  ;;  %3789 = vst [vmem:[#allocation1 + $0x4] ss:$9 sm:$0xff] %v3521_v27  ;;  %v4095_v11 = vrot.slane %v6668_v20, 2  ;;  %v3983_v24 = vrot.slane %v6668_v20, 1 }
 0x551   : > { %3790 = vst [vmem:[#allocation1 + $0x5] ss:$9 sm:$0xff] %v3589_v52 }
 0x552   : > { %v4208_v1 = vsel %vm699_vm1, %v4205_v35, %v4207_v49  ;;  %3791 = vst [vmem:[#allocation1 + $0x6] ss:$9 sm:$0xff] %v3590_v32  ;;  %v4096_v62 = vsel %vm586_vm3, %v4093_v63, %v4095_v11  ;;  %v3984_v51 = vsel %vm473_vm2, %v3981_v28, %v3983_v24  ;;  %v3606_v35 = vrot.slane %v6684_v14, 4 }
 0x553   : > { %v4707_v23 = vpack.i.bf16 %v4207_v49, %v4208_v1  ;;  %3792 = vst [vmem:[#allocation1 + $0x7] ss:$9 sm:$0xff] %v3591_v25  ;;  %v4702_v44 = vpack.i.bf16 %v4095_v11, %v4096_v62  ;;  %v4697_v19 = vpack.i.bf16 %v3983_v24, %v3984_v51  ;;  %v3607_v28 = vrot.slane %v6684_v14, 5 }
 0x554   : > { %3787 = vst [vmem:[#allocation1 + $0x2] ss:$9 sm:$0xff] %v3587_v4  ;;  %v3484_v25 = vadd.f32 %v6589_v34, %v3483_v0  ;;  %v3609_v62 = vrot.slane %v6684_v14, 7 }
 0x555   : > { %4708 = vrot.lane.b32.xlu2 %v4707_v23, %s4849_s25  ;;  %4703 = vrot.lane.b32.xlu1 %v4702_v44, %s4850_s26 }
 0x556   : > { %4698 = vrot.lane.b32.xlu0 %v4697_v19, %s4851_s27  ;;  %v3524_v1 = vmax.f32 %v3484_v25, 0.0  ;;  %v3702_v19 = vld [vmem:[%s7239_s7 + $0x78] sm:$0xff] }
 0x557   : > { %4466 = vmatpush.msra.mxu3 %v3702_v19 }
 0x558   : > { %v3610_v4 = vrot.slane %v3524_v1, 1  ;;  %v3611_v23 = vrot.slane %v3524_v1, 2  ;;  %v3612_v44 = vrot.slane %v3524_v1, 3  ;;  %v3613_v50 = vrot.slane %v3524_v1, 4 }
 0x559   : > { %4467 = vmatpush.msra.mxu3 %v3701_v55 }
 0x55b   : > { %v3793_v37 = vld [vmem:[#allocation1] sm:$0xff] }
 0x55c   : > { %3794 = vst [vmem:[#allocation1] ss:$9 sm:$0xff] %v3592_v43  ;;  %v6688_v29 = vsel %vm392_vm0, %v3706_v46, %v3793_v37  ;;  %v3486_v43 = vpop.f32.mrf.mxu2  ;;  %v3615_v37 = vrot.slane %v3524_v1, 6 }
 0x55d   : > { %3795 = vst [vmem:[#allocation1 + $0x1] ss:$9 sm:$0xff] %v3593_v33  ;;  %v4209_v48 = vrot.slane %v6688_v29, 3  ;;  %v4097_v16 = vrot.slane %v6688_v29, 2  ;;  %v3985_v40 = vrot.slane %v6688_v29, 1  ;;  %v3614_v33 = vrot.slane %v3524_v1, 5 }
 0x55e   : > { %3796 = vst [vmem:[#allocation1 + $0x2] ss:$9 sm:$0xff] %v3594_v58  ;;  %v3487_v58 = vadd.f32 %v6589_v34, %v3486_v43  ;;  %v3699_v43 = vld [vmem:[%s7239_s7 + $0x60] sm:$0xff] }
 0x55f   : > { %3797 = vst [vmem:[#allocation1 + $0x3] ss:$9 sm:$0xff] %v3595_v9  ;;  %v3707_v9 = vperm.slane %v3603_v2, 0 }
 0x560   : > { %3798 = vst [vmem:[#allocation1 + $0x4] ss:$9 sm:$0xff] %v3522_v6  ;;  %v3700_v6 = vld [vmem:[%s7239_s7 + $0x68] sm:$0xff] }
 0x561   : > { %3799 = vst [vmem:[#allocation1 + $0x5] ss:$9 sm:$0xff] %v3596_v47  ;;  %4468 = vmatpush.msra.mxu3 %v3700_v6  ;;  %v6736_v47 = vmax.f32 %v3487_v58, 0.0 }
 0x562   : > { %3800 = vst [vmem:[#allocation1 + $0x6] ss:$9 sm:$0xff] %v3597_v31 }
 0x563   : > { %3801 = vst [vmem:[#allocation1 + $0x7] ss:$9 sm:$0xff] %v3598_v38  ;;  %v3616_v38 = vrot.slane %v3524_v1, 7  ;;  %v3617_v10 = vrot.slane %v6736_v47, 1  ;;  %4469 = vmatpush.msra.mxu3 %v3699_v43 }
 0x56a   : > { %v6682_v13 = vld [vmem:[#allocation1] sm:$0xff] }
 0x56b   : > { %3803 = vst [vmem:[#allocation1] ss:$9 sm:$0xff] %v3599_v42  ;;  %v4210_v61 = vrot.slane %v6682_v13, 3  ;;  %v4098_v41 = vrot.slane %v6682_v13, 2  ;;  %v3986_v59 = vrot.slane %v6682_v13, 1 }
 0x56c   : > { %3804 = vst [vmem:[#allocation1 + $0x1] ss:$9 sm:$0xff] %v3600_v45 }
 0x56d   : > { %3805 = vst [vmem:[#allocation1 + $0x2] ss:$9 sm:$0xff] %v3601_v7  ;;  %v4211_v60 = vsel %vm699_vm1, %v4209_v48, %v4210_v61  ;;  %v4099_v27 = vsel %vm586_vm3, %v4097_v16, %v4098_v41  ;;  %v3987_v52 = vsel %vm473_vm2, %v3985_v40, %v3986_v59  ;;  %v3621_v16 = vrot.slane %v6736_v47, 5 }
 0x56e   : > { %3806 = vst [vmem:[#allocation1 + $0x3] ss:$9 sm:$0xff] %v3602_v53 }
 0x56f   : > { %3807 = vst [vmem:[#allocation1 + $0x4] ss:$9 sm:$0xff] %v6684_v14 }
 0x576   : > { %v3808_v63 = vld [vmem:[#allocation1] sm:$0xff] }
 0x577   : > { %v6699_v56 = vsel %vm699_vm1, %v3808_v63, %v3722_v17  ;;  %3810 = vst [vmem:[#allocation1 + $0x3] ss:$9 sm:$0xff] %v3604_v15  ;;  %v3618_v15 = vrot.slane %v6736_v47, 2 }
 0x578   : > { %v4212_v5 = vrot.slane %v6699_v56, 3  ;;  %3811 = vst [vmem:[#allocation1 + $0x4] ss:$9 sm:$0xff] %v3605_v8  ;;  %v4100_v18 = vrot.slane %v6699_v56, 2  ;;  %v3988_v36 = vrot.slane %v6699_v56, 1  ;;  %v3619_v8 = vrot.slane %v6736_v47, 3 }
 0x579   : > { %3812 = vst [vmem:[#allocation1 + $0x5] ss:$9 sm:$0xff] %v3606_v35  ;;  %v3489_v35 = vpop.f32.mrf.mxu2 }
 0x57a   : > { %v4213_v22 = vsel %vm699_vm1, %v4210_v61, %v4212_v5  ;;  %3813 = vst [vmem:[#allocation1 + $0x6] ss:$9 sm:$0xff] %v3607_v28  ;;  %v4101_v12 = vsel %vm586_vm3, %v4098_v41, %v4100_v18  ;;  %v3989_v32 = vsel %vm473_vm2, %v3986_v59, %v3988_v36  ;;  %v3490_v48 = vadd.f32 %v6589_v34, %v3489_v35 }
 0x57b   : > { %v4722_v49 = vpack.i.bf16 %v4213_v22, %v4211_v60  ;;  %3814 = vst [vmem:[#allocation1 + $0x7] ss:$9 sm:$0xff] %v3608_v3  ;;  %v4717_v11 = vpack.i.bf16 %v4101_v12, %v4099_v27  ;;  %v4712_v24 = vpack.i.bf16 %v3989_v32, %v3987_v52  ;;  %v3622_v3 = vrot.slane %v6736_v47, 6 }
 0x57c   : > { %3809 = vst [vmem:[#allocation1 + $0x2] ss:$9 sm:$0xff] %v3603_v2  ;;  %v3526_v40 = vmax.f32 %v3490_v48, 0.0 }
 0x57d   : > { %4723 = vrot.lane.b32.xlu2 %v4722_v49, %s4849_s25  ;;  %4718 = vrot.lane.b32.xlu1 %v4717_v11, %s4850_s26  ;;  %v3620_v49 = vrot.slane %v6736_v47, 4 }
 0x57e   : > { %4713 = vrot.lane.b32.xlu0 %v4712_v24, %s4851_s27  ;;  %v3624_v22 = vrot.slane %v3526_v40, 1  ;;  %v3628_v19 = vrot.slane %v3526_v40, 5  ;;  %v3630_v6 = vrot.slane %v3526_v40, 7 }
 0x583   : > { %v3815_v51 = vld [vmem:[#allocation1] sm:$0xff] }
 0x584   : > { %3816 = vst [vmem:[#allocation1] ss:$9 sm:$0xff] %v3609_v62  ;;  %v6739_v31 = vsel %vm392_vm0, %v3707_v9, %v3815_v51  ;;  %v3625_v51 = vrot.slane %v3526_v40, 2  ;;  %v3696_v9 = vld [vmem:[%s7239_s7 + $0x48] sm:$0xff] }
 0x585   : > { %3817 = vst [vmem:[#allocation1 + $0x1] ss:$9 sm:$0xff] %v3524_v1  ;;  %v4214_v30 = vrot.slane %v6739_v31, 3  ;;  %v4102_v45 = vrot.slane %v6739_v31, 2  ;;  %v3990_v14 = vrot.slane %v6739_v31, 1  ;;  %v3492_v1 = vpop.f32.mrf.mxu2 }
 0x586   : > { %3818 = vst [vmem:[#allocation1 + $0x2] ss:$9 sm:$0xff] %v3610_v4  ;;  %v3493_v62 = vadd.f32 %v6589_v34, %v3492_v1  ;;  %v3626_v4 = vrot.slane %v3526_v40, 3 }
 0x587   : > { %3819 = vst [vmem:[#allocation1 + $0x3] ss:$9 sm:$0xff] %v3611_v23 }
 0x588   : > { %3820 = vst [vmem:[#allocation1 + $0x4] ss:$9 sm:$0xff] %v3612_v44  ;;  %v3627_v44 = vrot.slane %v3526_v40, 4  ;;  %v6783_v55 = vmax.f32 %v3493_v62, 0.0 }
 0x589   : > { %3821 = vst [vmem:[#allocation1 + $0x5] ss:$9 sm:$0xff] %v3613_v50  ;;  %v3629_v50 = vrot.slane %v3526_v40, 6 }
 0x58a   : > { %3822 = vst [vmem:[#allocation1 + $0x6] ss:$9 sm:$0xff] %v3614_v33  ;;  %v3698_v33 = vld [vmem:[%s7239_s7 + $0x58] sm:$0xff]  ;;  %v3631_v58 = vrot.slane %v6783_v55, 1 }
 0x58b   : > { %3823 = vst [vmem:[#allocation1 + $0x7] ss:$9 sm:$0xff] %v3615_v37  ;;  %v3697_v37 = vld [vmem:[%s7239_s7 + $0x50] sm:$0xff]  ;;  %4470 = vmatpush.msra.mxu3 %v3698_v33 }
 0x58c   : > { %v3689_v33 = vld [vmem:[%s7239_s7 + $0x10] sm:$0xff] }
 0x58d   : > { %4471 = vmatpush.msra.mxu3 %v3697_v37 }
 0x58f   : > { %4472 = vmatpush.msra.mxu3 %v3696_v9 }
 0x592   : > { %v6742_v42 = vld [vmem:[#allocation1] sm:$0xff] }
 0x593   : > { %v4215_v7 = vrot.slane %v6742_v42, 3  ;;  %3825 = vst [vmem:[#allocation1] ss:$9 sm:$0xff] %v3616_v38  ;;  %v4103_v53 = vrot.slane %v6742_v42, 2  ;;  %v3991_v46 = vrot.slane %v6742_v42, 1  ;;  %v3694_v38 = vld [vmem:[%s7239_s7 + $0x38] sm:$0xff] }
 0x594   : > { %3826 = vst [vmem:[#allocation1 + $0x1] ss:$9 sm:$0xff] %v6736_v47 }
 0x595   : > { %v4216_v17 = vsel %vm699_vm1, %v4214_v30, %v4215_v7  ;;  %3827 = vst [vmem:[#allocation1 + $0x2] ss:$9 sm:$0xff] %v3617_v10  ;;  %v4104_v61 = vsel %vm586_vm3, %v4102_v45, %v4103_v53  ;;  %v3992_v41 = vsel %vm473_vm2, %v3990_v14, %v3991_v46  ;;  %v3693_v10 = vld [vmem:[%s7239_s7 + $0x30] sm:$0xff]  ;;  %v3632_v30 = vrot.slane %v6783_v55, 2  ;;  %v3495_v14 = vpop.f32.mrf.mxu2 }
 0x596   : > { %v4737_v63 = vpack.i.bf16 %v4216_v17, %v4212_v5  ;;  %3828 = vst [vmem:[#allocation1 + $0x3] ss:$9 sm:$0xff] %v3618_v15  ;;  %v4732_v59 = vpack.i.bf16 %v4104_v61, %v4100_v18  ;;  %v4727_v28 = vpack.i.bf16 %v3992_v41, %v3988_v36  ;;  %v3723_v5 = vperm.slane %v3619_v8, 0 }
 0x597   : > { %3829 = vst [vmem:[#allocation1 + $0x4] ss:$9 sm:$0xff] %v3619_v8  ;;  %v3623_v18 = vrot.slane %v6736_v47, 7  ;;  %v3695_v47 = vld [vmem:[%s7239_s7 + $0x40] sm:$0xff]  ;;  %v3633_v45 = vrot.slane %v6783_v55, 3  ;;  %v3636_v15 = vrot.slane %v6783_v55, 6  ;;  %v3496_v17 = vadd.f32 %v6589_v34, %v3495_v14 }
 0x598   : > { %4738 = vrot.lane.b32.xlu2 %v4737_v63, %s4849_s25  ;;  %4733 = vrot.lane.b32.xlu1 %v4732_v59, %s4850_s26  ;;  %v3708_v41 = vperm.slane %v3620_v49, 0 }
 0x599   : > { %4728 = vrot.lane.b32.xlu0 %v4727_v28, %s4851_s27  ;;  %4473 = vmatpush.msra.mxu3 %v3695_v47  ;;  %v6816_v61 = vmax.f32 %v3496_v17, 0.0  ;;  %v3724_v35 = vperm.slane %v3636_v15, 0 }
 0x59b   : > { %4474 = vmatpush.msra.mxu3 %v3694_v38  ;;  %v3638_v48 = vrot.slane %v6816_v61, 1  ;;  %v3688_v38 = vld [vmem:[%s7239_s7 + $0x8] sm:$0xff]  ;;  %v3643_v14 = vrot.slane %v6816_v61, 6 }
 0x59d   : > { %4475 = vmatpush.msra.mxu3 %v3693_v10  ;;  %v3642_v10 = vrot.slane %v6816_v61, 5 }
 0x59e   : > { %v3830_v0 = vld [vmem:[#allocation1] sm:$0xff] }
 0x59f   : > { %v6770_v36 = vsel %vm699_vm1, %v3830_v0, %v3723_v5  ;;  %3832 = vst [vmem:[#allocation1 + $0x3] ss:$9 sm:$0xff] %v3621_v16  ;;  %v3639_v16 = vrot.slane %v6816_v61, 2  ;;  %v4674_v37 = vpop.permute.xlu1 %4673 }
 0x5a0   : > { %v4217_v60 = vrot.slane %v6770_v36, 3  ;;  %3833 = vst [vmem:[#allocation1 + $0x4] ss:$9 sm:$0xff] %v3622_v3  ;;  %v4105_v27 = vrot.slane %v6770_v36, 2  ;;  %v3993_v2 = vrot.slane %v6770_v36, 1  ;;  %v4669_v43 = vpop.permute.xlu0 %4668 }
 0x5a1   : > { %3834 = vst [vmem:[#allocation1 + $0x5] ss:$9 sm:$0xff] %v3623_v18  ;;  %v4671_v9 = vunpack.i.h.bf16 %v4669_v43  ;;  %v4670_v47 = vunpack.i.l.bf16 %v4669_v43 }
 0x5a2   : > { %v4218_v12 = vsel %vm699_vm1, %v4215_v7, %v4217_v60  ;;  %3835 = vst [vmem:[#allocation1 + $0x6] ss:$9 sm:$0xff] %v3526_v40  ;;  %v4106_v52 = vsel %vm586_vm3, %v4103_v53, %v4105_v27  ;;  %v3994_v32 = vsel %vm473_vm2, %v3991_v46, %v3993_v2  ;;  %v3634_v53 = vrot.slane %v6783_v55, 4 }
 0x5a3   : > { %v4752_v11 = vpack.i.bf16 %v4217_v60, %v4218_v12  ;;  %3836 = vst [vmem:[#allocation1 + $0x7] ss:$9 sm:$0xff] %v3624_v22  ;;  %v4747_v24 = vpack.i.bf16 %v4105_v27, %v4106_v52  ;;  %v4742_v25 = vpack.i.bf16 %v3993_v2, %v3994_v32  ;;  %v3635_v46 = vrot.slane %v6783_v55, 5 }
 0x5a4   : > { %3831 = vst [vmem:[#allocation1 + $0x2] ss:$9 sm:$0xff] %v3620_v49  ;;  %v3640_v60 = vrot.slane %v6816_v61, 3  ;;  %v3641_v12 = vrot.slane %v6816_v61, 4  ;;  %v4311_v17 = vsel %vm2051_vm9, %v6603_v39, %v4670_v47 }
 0x5a5   : > { %4753 = vrot.lane.b32.xlu2 %v4752_v11, %s4849_s25  ;;  %4748 = vrot.lane.b32.xlu1 %v4747_v24, %s4850_s26  ;;  %v3692_v11 = vld [vmem:[%s7239_s7 + $0x28] sm:$0xff]  ;;  %v3691_v24 = vld [vmem:[%s7239_s7 + $0x20] sm:$0xff] }
 0x5a6   : > { %4743 = vrot.lane.b32.xlu0 %v4742_v25, %s4851_s27  ;;  %4476 = vmatpush.msra.mxu3 %v3692_v11 }
 0x5a8   : > { %4477 = vmatpush.msra.mxu3 %v3691_v24 }
 0x5ab   : > { %v3837_v23 = vld [vmem:[#allocation1] sm:$0xff] }
 0x5ac   : > { %3838 = vst [vmem:[#allocation1] ss:$9 sm:$0xff] %v3625_v51  ;;  %v6819_v8 = vsel %vm392_vm0, %v3708_v41, %v3837_v23  ;;  %v3637_v51 = vrot.slane %v6783_v55, 7  ;;  %v3644_v41 = vrot.slane %v6816_v61, 7 }
 0x5ad   : > { %3839 = vst [vmem:[#allocation1 + $0x1] ss:$9 sm:$0xff] %v3626_v4  ;;  %v4219_v3 = vrot.slane %v6819_v8, 3  ;;  %v4107_v0 = vrot.slane %v6819_v8, 2  ;;  %v3995_v18 = vrot.slane %v6819_v8, 1  ;;  %v3498_v4 = vpop.f32.mrf.mxu2 }
 0x5ae   : > { %3840 = vst [vmem:[#allocation1 + $0x2] ss:$9 sm:$0xff] %v3627_v44 }
 0x5af   : > { %3841 = vst [vmem:[#allocation1 + $0x3] ss:$9 sm:$0xff] %v3628_v19 }
 0x5b0   : > { %3842 = vst [vmem:[#allocation1 + $0x4] ss:$9 sm:$0xff] %v3629_v50  ;;  %v3690_v50 = vld [vmem:[%s7239_s7 + $0x18] sm:$0xff] }
 0x5b1   : > { %3843 = vst [vmem:[#allocation1 + $0x5] ss:$9 sm:$0xff] %v3630_v6  ;;  %v3499_v6 = vadd.f32 %v6589_v34, %v3498_v4  ;;  %4478 = vmatpush.msra.mxu3 %v3690_v50 }
 0x5b2   : > { %3844 = vst [vmem:[#allocation1 + $0x6] ss:$9 sm:$0xff] %v6783_v55 }
 0x5b3   : > { %3845 = vst [vmem:[#allocation1 + $0x7] ss:$9 sm:$0xff] %v3631_v58  ;;  %v4679_v58 = vpop.permute.xlu2 %4678  ;;  %4479 = vmatpush.msra.mxu3 %v3689_v33 }
 0x5b5   : > { %4480 = vmatpush.msra.mxu3 %v3688_v38  ;;  %v3501_v11 = vpop.f32.mrf.mxu2 }
 0x5ba   : > { %v6810_v7 = vld [vmem:[#allocation1] sm:$0xff] }
 0x5bb   : > { %3847 = vst [vmem:[#allocation1] ss:$9 sm:$0xff] %v3632_v30  ;;  %v4220_v63 = vrot.slane %v6810_v7, 3  ;;  %v4108_v59 = vrot.slane %v6810_v7, 2  ;;  %v3996_v28 = vrot.slane %v6810_v7, 1  ;;  %v6873_v30 = vmax.f32 %v3499_v6, 0.0  ;;  %v6889_v39 = vpop.permute.xlu0 %4683 }
 0x5bc   : > { %3848 = vst [vmem:[#allocation1 + $0x1] ss:$9 sm:$0xff] %v3633_v45  ;;  %v4676_v45 = vunpack.i.h.bf16 %v4674_v37 }
 0x5bd   : > { %3849 = vst [vmem:[#allocation1 + $0x2] ss:$9 sm:$0xff] %v3634_v53  ;;  %v4221_v52 = vsel %vm699_vm1, %v4219_v3, %v4220_v63  ;;  %v4109_v32 = vsel %vm586_vm3, %v4107_v0, %v4108_v59  ;;  %v3997_v49 = vsel %vm473_vm2, %v3995_v18, %v3996_v28  ;;  %v4675_v53 = vunpack.i.l.bf16 %v4674_v37 }
 0x5be   : > { %3850 = vst [vmem:[#allocation1 + $0x3] ss:$9 sm:$0xff] %v3635_v46  ;;  %v3649_v33 = vrot.slane %v6873_v30, 5  ;;  %v3650_v6 = vrot.slane %v6873_v30, 6  ;;  %v3651_v37 = vrot.slane %v6873_v30, 7 }
 0x5bf   : > { %3851 = vst [vmem:[#allocation1 + $0x4] ss:$9 sm:$0xff] %v3636_v15  ;;  %v4312_v15 = vsel %vm2051_vm9, %v6596_v26, %v4671_v9 }
 0x5c0   : > { %v4336_v26 = vsel %vm2076_vm10, %v4312_v15, %v4676_v45 }
 0x5c6   : > { %v3852_v40 = vld [vmem:[#allocation1] sm:$0xff] }
 0x5c7   : > { %v6827_v5 = vsel %vm699_vm1, %v3852_v40, %v3724_v35  ;;  %3854 = vst [vmem:[#allocation1 + $0x3] ss:$9 sm:$0xff] %v6816_v61  ;;  %v4681_v35 = vunpack.i.h.bf16 %v4679_v58  ;;  %v3646_v61 = vrot.slane %v6873_v30, 2  ;;  %v6892_v40 = vpop.permute.xlu2 %4693 }
 0x5c8   : > { %v4222_v27 = vrot.slane %v6827_v5, 3  ;;  %3855 = vst [vmem:[#allocation1 + $0x4] ss:$9 sm:$0xff] %v3638_v48  ;;  %v4110_v2 = vrot.slane %v6827_v5, 2  ;;  %v3998_v22 = vrot.slane %v6827_v5, 1  ;;  %v4335_v48 = vsel %vm2076_vm10, %v4311_v17, %v4675_v53 }
 0x5c9   : > { %3856 = vst [vmem:[#allocation1 + $0x5] ss:$9 sm:$0xff] %v3639_v16  ;;  %v6887_v16 = vpop.permute.xlu1 %4688  ;;  %v4360_v0 = vsel %vm2101_vm11, %v4336_v26, %v4681_v35  ;;  %v4695_v24 = vunpack.i.l.bf16 %v6892_v40  ;;  %v3504_v35 = vpop.f32.mrf.mxu2 }
 0x5ca   : > { %v4223_v25 = vsel %vm699_vm1, %v4220_v63, %v4222_v27  ;;  %3857 = vst [vmem:[#allocation1 + $0x6] ss:$9 sm:$0xff] %v3640_v60  ;;  %v4111_v1 = vsel %vm586_vm3, %v4108_v59, %v4110_v2  ;;  %v3999_v62 = vsel %vm473_vm2, %v3996_v28, %v3998_v22  ;;  %v4680_v63 = vunpack.i.l.bf16 %v4679_v58  ;;  %v3687_v28 = vld [vmem:[%s7239_s7] sm:$0xff] }
 0x5cb   : > { %v4767_v23 = vpack.i.bf16 %v4223_v25, %v4221_v52  ;;  %3858 = vst [vmem:[#allocation1 + $0x7] ss:$9 sm:$0xff] %v3641_v12  ;;  %v4762_v44 = vpack.i.bf16 %v4111_v1, %v4109_v32  ;;  %v4757_v19 = vpack.i.bf16 %v3999_v62, %v3997_v49  ;;  %v3645_v59 = vrot.slane %v6873_v30, 1  ;;  %4481 = vmatpush.msra.mxu3 %v3687_v28 }
 0x5cc   : > { %3853 = vst [vmem:[#allocation1 + $0x2] ss:$9 sm:$0xff] %v3637_v51  ;;  %v4359_v3 = vsel %vm2101_vm11, %v4335_v48, %v4680_v63  ;;  %v4690_v18 = vunpack.i.l.bf16 %v6887_v16  ;;  %v3647_v60 = vrot.slane %v6873_v30, 3  ;;  %v4408_v52 = vrot.slane %v4360_v0, 4 }
 0x5cd   : > { %4768 = vrot.lane.b32.xlu2 %v4767_v23, %s4849_s25  ;;  %4763 = vrot.lane.b32.xlu1 %v4762_v44, %s4850_s26  ;;  %v4407_v12 = vrot.slane %v4359_v3, 4  ;;  %v4685_v32 = vunpack.i.l.bf16 %v6889_v39  ;;  %v3648_v49 = vrot.slane %v6873_v30, 4  ;;  %v3502_v23 = vadd.f32 %v6589_v34, %v3501_v11  ;;  %v6955_v3 = vld [vmem:[%s7238_s6] ss:$0 sm:$0xff] }
 0x5ce   : > { %4758 = vrot.lane.b32.xlu0 %v4757_v19, %s4851_s27  ;;  %v3709_v44 = vperm.slane %v3637_v51, 0  ;;  %v3505_v0 = vadd.f32 %v6955_v3, %v3504_v35 }
 0x5cf   : > { %v4409_v25 = vsel %vm2657_vm12, %v4407_v12, %v4408_v52  ;;  %v4313_v1 = vsel %vm2051_vm9, %v6613_v57, %v4685_v32  ;;  %v6915_v57 = vmax.f32 %v3502_v23, 0.0 }
 0x5d0   : > { %4482 = vmatmul.f32.vlgmr.msra.gmra.mxu3 %v4409_v25  ;;  %v4337_v62 = vsel %vm2076_vm10, %v4313_v1, %v4690_v18  ;;  %v4699_v25 = vpop.permute.xlu0 %4698  ;;  %v4691_v1 = vunpack.i.h.bf16 %v6887_v16 }
 0x5d1   : > { %v4361_v4 = vsel %vm2101_vm11, %v4337_v62, %v4695_v24  ;;  %v3652_v53 = vrot.slane %v6915_v57, 1  ;;  %v3654_v17 = vrot.slane %v6915_v57, 3  ;;  %v4686_v24 = vunpack.i.h.bf16 %v6889_v39  ;;  %v4704_v23 = vpop.permute.xlu1 %4703  ;;  %v4709_v39 = vpop.permute.xlu2 %4708 }
 0x5d2   : > { %v4410_v19 = vrot.slane %v4361_v4, 4  ;;  %v3531_v62 = vmax.f32 %v3505_v0, 0.0  ;;  %v4706_v16 = vunpack.i.h.bf16 %v4704_v23 }
 0x5d3   : > { %v3859_v46 = vld [vmem:[#allocation1] sm:$0xff]  ;;  %v4314_v4 = vsel %vm2051_vm9, %v6640_v21, %v4686_v24 }
 0x5d4   : > { %3860 = vst [vmem:[#allocation1] ss:$9 sm:$0xff] %v3642_v10  ;;  %v6911_v50 = vsel %vm392_vm0, %v3709_v44, %v3859_v46  ;;  %v4411_v43 = vsel %vm2657_vm12, %v4408_v52, %v4410_v19  ;;  %v3653_v52 = vrot.slane %v6915_v57, 2  ;;  %v4700_v44 = vunpack.i.l.bf16 %v4699_v25 }
 0x5d5   : > { %3861 = vst [vmem:[#allocation1 + $0x1] ss:$9 sm:$0xff] %v3643_v14  ;;  %v4224_v34 = vrot.slane %v6911_v50, 3  ;;  %v4112_v55 = vrot.slane %v6911_v50, 2  ;;  %v4000_v47 = vrot.slane %v6911_v50, 1  ;;  %v4701_v19 = vunpack.i.h.bf16 %v4699_v25 }
 0x5d6   : > { %3862 = vst [vmem:[#allocation1 + $0x2] ss:$9 sm:$0xff] %v3644_v41  ;;  %v3725_v41 = vperm.slane %v3652_v53, 0 }
 0x5d7   : > { %3863 = vst [vmem:[#allocation1 + $0x3] ss:$9 sm:$0xff] %v6873_v30  ;;  %v4316_v21 = vsel %vm2051_vm9, %v6668_v20, %v4701_v19  ;;  %v4711_v20 = vunpack.i.h.bf16 %v4709_v39 }
 0x5d8   : > { %3864 = vst [vmem:[#allocation1 + $0x4] ss:$9 sm:$0xff] %v3645_v59  ;;  %4485 = vmatmul.f32.gmra.mxu3 %v4411_v43  ;;  %v3656_v59 = vrot.slane %v6915_v57, 5  ;;  %v4705_v43 = vunpack.i.l.bf16 %v4704_v23 }
 0x5d9   : > { %3865 = vst [vmem:[#allocation1 + $0x5] ss:$9 sm:$0xff] %v3646_v61  ;;  %v3658_v61 = vrot.slane %v6915_v57, 7 }
 0x5da   : > { %3866 = vst [vmem:[#allocation1 + $0x6] ss:$9 sm:$0xff] %v3647_v60 }
 0x5db   : > { %3867 = vst [vmem:[#allocation1 + $0x7] ss:$9 sm:$0xff] %v3648_v49 }
 0x5e2   : > { %v6919_v58 = vld [vmem:[#allocation1] sm:$0xff] }
 0x5e3   : > { %v4225_v51 = vrot.slane %v6919_v58, 3  ;;  %3869 = vst [vmem:[#allocation1] ss:$9 sm:$0xff] %v3649_v33  ;;  %v4113_v9 = vrot.slane %v6919_v58, 2  ;;  %v4001_v38 = vrot.slane %v6919_v58, 1  ;;  %v4338_v33 = vsel %vm2076_vm10, %v4314_v4, %v4691_v1 }
 0x5e4   : > { %3870 = vst [vmem:[#allocation1 + $0x1] ss:$9 sm:$0xff] %v3650_v6  ;;  %v3659_v6 = vrot.slane %v3531_v62, 1 }
 0x5e5   : > { %v4226_v10 = vsel %vm699_vm1, %v4224_v34, %v4225_v51  ;;  %3871 = vst [vmem:[#allocation1 + $0x2] ss:$9 sm:$0xff] %v3651_v37  ;;  %v4114_v30 = vsel %vm586_vm3, %v4112_v55, %v4113_v9  ;;  %v4002_v45 = vsel %vm473_vm2, %v4000_v47, %v4001_v38  ;;  %v4696_v37 = vunpack.i.h.bf16 %v6892_v40 }
 0x5e6   : > { %v4782_v14 = vpack.i.bf16 %v4226_v10, %v4222_v27  ;;  %3872 = vst [vmem:[#allocation1 + $0x3] ss:$9 sm:$0xff] %v6915_v57  ;;  %v4777_v46 = vpack.i.bf16 %v4114_v30, %v4110_v2  ;;  %v4772_v15 = vpack.i.bf16 %v4002_v45, %v3998_v22  ;;  %v3655_v27 = vrot.slane %v6915_v57, 4  ;;  %v3507_v45 = vpop.f32.mrf.mxu2 }
 0x5e7   : > { %3873 = vst [vmem:[#allocation1 + $0x4] ss:$9 sm:$0xff] %v3652_v53  ;;  %v3657_v22 = vrot.slane %v6915_v57, 6  ;;  %v4315_v34 = vsel %vm2051_vm9, %v6645_v54, %v4700_v44  ;;  %v4710_v47 = vunpack.i.l.bf16 %v4709_v39  ;;  %v3662_v10 = vrot.slane %v3531_v62, 4 }
 0x5e8   : > { %4783 = vrot.lane.b32.xlu2 %v4782_v14, %s4849_s25  ;;  %4778 = vrot.lane.b32.xlu1 %v4777_v46, %s4850_s26  ;;  %v4339_v30 = vsel %vm2076_vm10, %v4315_v34, %v4705_v43  ;;  %v3663_v40 = vrot.slane %v3531_v62, 5  ;;  %v3664_v53 = vrot.slane %v3531_v62, 6 }
 0x5e9   : > { %4773 = vrot.lane.b32.xlu0 %v4772_v15, %s4851_s27  ;;  %v4363_v54 = vsel %vm2101_vm11, %v4339_v30, %v4710_v47  ;;  %v4340_v15 = vsel %vm2076_vm10, %v4316_v21, %v4706_v16 }
 0x5ea   : > { %v4413_v46 = vrot.slane %v4363_v54, 4  ;;  %v4364_v35 = vsel %vm2101_vm11, %v4340_v15, %v4711_v20 }
 0x5ee   : > { %v3874_v63 = vld [vmem:[#allocation1] sm:$0xff]  ;;  %v3510_v0 = vpop.f32.mrf.mxu2 }
 0x5ef   : > { %v6945_v2 = vsel %vm699_vm1, %v3874_v63, %v3725_v41  ;;  %3876 = vst [vmem:[#allocation1 + $0x3] ss:$9 sm:$0xff] %v3654_v17  ;;  %v3665_v17 = vrot.slane %v3531_v62, 7  ;;  %v3508_v41 = vadd.f32 %v6955_v3, %v3507_v45  ;;  %v4719_v45 = vpop.permute.xlu1 %4718 }
 0x5f0   : > { %v4227_v28 = vrot.slane %v6945_v2, 3  ;;  %3877 = vst [vmem:[#allocation1 + $0x4] ss:$9 sm:$0xff] %v3655_v27  ;;  %v4115_v48 = vrot.slane %v6945_v2, 2  ;;  %v4003_v26 = vrot.slane %v6945_v2, 1  ;;  %v4714_v16 = vpop.permute.xlu0 %4713  ;;  %v4721_v15 = vunpack.i.h.bf16 %v4719_v45 }
 0x5f1   : > { %3878 = vst [vmem:[#allocation1 + $0x5] ss:$9 sm:$0xff] %v3656_v59  ;;  %v6984_v63 = vmax.f32 %v3508_v41, 0.0  ;;  %v4415_v59 = vrot.slane %v4364_v35, 4  ;;  %v4716_v54 = vunpack.i.h.bf16 %v4714_v16 }
 0x5f2   : > { %v4228_v18 = vsel %vm699_vm1, %v4225_v51, %v4227_v28  ;;  %3879 = vst [vmem:[#allocation1 + $0x6] ss:$9 sm:$0xff] %v3657_v22  ;;  %v4116_v60 = vsel %vm586_vm3, %v4113_v9, %v4115_v48  ;;  %v4004_v12 = vsel %vm473_vm2, %v4001_v38, %v4003_v26  ;;  %v3660_v51 = vrot.slane %v3531_v62, 2 }
 0x5f3   : > { %v4797_v32 = vpack.i.bf16 %v4227_v28, %v4228_v18  ;;  %3880 = vst [vmem:[#allocation1 + $0x7] ss:$9 sm:$0xff] %v3658_v61  ;;  %v4792_v49 = vpack.i.bf16 %v4115_v48, %v4116_v60  ;;  %v4787_v11 = vpack.i.bf16 %v4003_v26, %v4004_v12  ;;  %v3661_v9 = vrot.slane %v3531_v62, 3 }
 0x5f4   : > { %3875 = vst [vmem:[#allocation1 + $0x2] ss:$9 sm:$0xff] %v3653_v52  ;;  %v4362_v38 = vsel %vm2101_vm11, %v4338_v33, %v4696_v37  ;;  %v3666_v22 = vrot.slane %v6984_v63, 1  ;;  %v4416_v48 = vsel %vm2657_vm12, %v4413_v46, %v4415_v59  ;;  %v3667_v26 = vrot.slane %v6984_v63, 2 }
 0x5f5   : > { %4798 = vrot.lane.b32.xlu2 %v4797_v32, %s4849_s25  ;;  %4793 = vrot.lane.b32.xlu1 %v4792_v49, %s4850_s26  ;;  %v4412_v14 = vrot.slane %v4362_v38, 4  ;;  %v3668_v61 = vrot.slane %v6984_v63, 3  ;;  %v3669_v18 = vrot.slane %v6984_v63, 4  ;;  %v3511_v60 = vadd.f32 %v6955_v3, %v3510_v0 }
 0x5f6   : > { %4788 = vrot.lane.b32.xlu0 %v4787_v11, %s4851_s27  ;;  %v3710_v12 = vperm.slane %v3653_v52, 0  ;;  %v3671_v11 = vrot.slane %v6984_v63, 6  ;;  %v4318_v41 = vsel %vm2051_vm9, %v6682_v13, %v4716_v54 }
 0x5f7   : > { %v4414_v27 = vsel %vm2657_vm12, %v4412_v14, %v4413_v46  ;;  %v6997_v32 = vmax.f32 %v3511_v60, 0.0  ;;  %v3726_v24 = vperm.slane %v3669_v18, 0  ;;  %v3513_v14 = vpop.f32.mrf.mxu2  ;;  %v4724_v46 = vpop.permute.xlu2 %4723 }
 0x5f8   : > { %4488 = vmatmul.f32.gmra.mxu3 %v4414_v27  ;;  %v3514_v20 = vadd.f32 %v6955_v3, %v3513_v14  ;;  %v4725_v59 = vunpack.i.l.bf16 %v4724_v46 }
 0x5f9   : > { %v3673_v57 = vrot.slane %v6997_v32, 1  ;;  %v3674_v37 = vrot.slane %v6997_v32, 2  ;;  %v3675_v35 = vrot.slane %v6997_v32, 3  ;;  %v3677_v0 = vrot.slane %v6997_v32, 5 }
 0x5fa   : > { %v7043_v3 = vmax.f32 %v3514_v20, 0.0 }
 0x5fb   : > { %v3881_v55 = vld [vmem:[#allocation1] sm:$0xff] }
 0x5fc   : > { %3882 = vst [vmem:[#allocation1] ss:$9 sm:$0xff] %v3531_v62  ;;  %v7000_v49 = vsel %vm392_vm0, %v3710_v12, %v3881_v55  ;;  %v3672_v62 = vrot.slane %v6984_v63, 7  ;;  %v3679_v12 = vrot.slane %v6997_v32, 7  ;;  %v3685_v54 = vrot.slane %v7043_v3, 6 }
 0x5fd   : > { %3883 = vst [vmem:[#allocation1 + $0x1] ss:$9 sm:$0xff] %v3659_v6  ;;  %v4229_v44 = vrot.slane %v7000_v49, 3  ;;  %v4117_v19 = vrot.slane %v7000_v49, 2  ;;  %v4005_v33 = vrot.slane %v7000_v49, 1 }
 0x5fe   : > { %3884 = vst [vmem:[#allocation1 + $0x2] ss:$9 sm:$0xff] %v3660_v51  ;;  %v3670_v51 = vrot.slane %v6984_v63, 5 }
 0x5ff   : > { %3885 = vst [vmem:[#allocation1 + $0x3] ss:$9 sm:$0xff] %v3661_v9 }
 0x600   : > { %3886 = vst [vmem:[#allocation1 + $0x4] ss:$9 sm:$0xff] %v3662_v10  ;;  %4491 = vmatmul.f32.gmra.mxu3 %v4416_v48 }
 0x601   : > { %3887 = vst [vmem:[#allocation1 + $0x5] ss:$9 sm:$0xff] %v3663_v40 }
 0x602   : > { %3888 = vst [vmem:[#allocation1 + $0x6] ss:$9 sm:$0xff] %v3664_v53  ;;  %v4715_v53 = vunpack.i.l.bf16 %v4714_v16  ;;  %v3684_v16 = vrot.slane %v7043_v3, 5 }
 0x603   : > { %3889 = vst [vmem:[#allocation1 + $0x7] ss:$9 sm:$0xff] %v3665_v17  ;;  %v4720_v17 = vunpack.i.l.bf16 %v4719_v45 }
 0x604   : > { %v4317_v27 = vsel %vm2051_vm9, %v6688_v29, %v4715_v53 }
 0x60a   : > { %v6987_v28 = vld [vmem:[#allocation1] sm:$0xff] }
 0x60b   : > { %3891 = vst [vmem:[#allocation1] ss:$9 sm:$0xff] %v6984_v63  ;;  %v4230_v25 = vrot.slane %v6987_v28, 3  ;;  %v4118_v1 = vrot.slane %v6987_v28, 2  ;;  %v4006_v23 = vrot.slane %v6987_v28, 1  ;;  %v4726_v63 = vunpack.i.h.bf16 %v4724_v46 }
 0x60c   : > { %3892 = vst [vmem:[#allocation1 + $0x1] ss:$9 sm:$0xff] %v3666_v22  ;;  %v3676_v22 = vrot.slane %v6997_v32, 4  ;;  %v3686_v46 = vrot.slane %v7043_v3, 7 }
 0x60d   : > { %3893 = vst [vmem:[#allocation1 + $0x2] ss:$9 sm:$0xff] %v3667_v26  ;;  %v4231_v34 = vsel %vm699_vm1, %v4229_v44, %v4230_v25  ;;  %v4119_v55 = vsel %vm586_vm3, %v4117_v19, %v4118_v1  ;;  %v4007_v21 = vsel %vm473_vm2, %v4005_v33, %v4006_v23  ;;  %v4341_v26 = vsel %vm2076_vm10, %v4317_v27, %v4720_v17 }
 0x60e   : > { %3894 = vst [vmem:[#allocation1 + $0x3] ss:$9 sm:$0xff] %v3668_v61  ;;  %v4342_v61 = vsel %vm2076_vm10, %v4318_v41, %v4721_v15  ;;  %v4365_v13 = vsel %vm2101_vm11, %v4341_v26, %v4725_v59 }
 0x60f   : > { %3895 = vst [vmem:[#allocation1 + $0x4] ss:$9 sm:$0xff] %v3669_v18  ;;  %v4366_v29 = vsel %vm2101_vm11, %v4342_v61, %v4726_v63  ;;  %v3678_v18 = vrot.slane %v6997_v32, 6  ;;  %v4417_v60 = vrot.slane %v4365_v13, 4 }
 0x616   : > { %v3896_v4 = vld [vmem:[#allocation1] sm:$0xff] }
 0x617   : > { %v7009_v52 = vsel %vm699_vm1, %v3896_v4, %v3726_v24  ;;  %3898 = vst [vmem:[#allocation1 + $0x3] ss:$9 sm:$0xff] %v3671_v11  ;;  %v4418_v11 = vrot.slane %v4366_v29, 4  ;;  %v3680_v24 = vrot.slane %v7043_v3, 1  ;;  %v3711_v4 = vperm.slane %v3670_v51, 0 }
 0x618   : > { %v4232_v39 = vrot.slane %v7009_v52, 3  ;;  %3899 = vst [vmem:[#allocation1 + $0x4] ss:$9 sm:$0xff] %v3672_v62  ;;  %v4120_v43 = vrot.slane %v7009_v52, 2  ;;  %v4008_v6 = vrot.slane %v7009_v52, 1  ;;  %v4739_v62 = vpop.permute.xlu2 %4738 }
 0x619   : > { %3900 = vst [vmem:[#allocation1 + $0x5] ss:$9 sm:$0xff] %v6997_v32  ;;  %v4740_v33 = vunpack.i.l.bf16 %v4739_v62  ;;  %v4741_v59 = vunpack.i.h.bf16 %v4739_v62 }
 0x61a   : > { %v4233_v9 = vsel %vm699_vm1, %v4230_v25, %v4232_v39  ;;  %3901 = vst [vmem:[#allocation1 + $0x6] ss:$9 sm:$0xff] %v3673_v57  ;;  %v4121_v47 = vsel %vm586_vm3, %v4118_v1, %v4120_v43  ;;  %v4009_v38 = vsel %vm473_vm2, %v4006_v23, %v4008_v6  ;;  %v4419_v25 = vsel %vm2657_vm12, %v4417_v60, %v4418_v11  ;;  %v4734_v23 = vpop.permute.xlu1 %4733  ;;  %v4729_v57 = vpop.permute.xlu0 %4728 }
 0x61b   : > { %v4812_v10 = vpack.i.bf16 %v4233_v9, %v4231_v34  ;;  %3902 = vst [vmem:[#allocation1 + $0x7] ss:$9 sm:$0xff] %v3674_v37  ;;  %v4807_v30 = vpack.i.bf16 %v4121_v47, %v4119_v55  ;;  %v4802_v40 = vpack.i.bf16 %v4009_v38, %v4007_v21  ;;  %v3681_v1 = vrot.slane %v7043_v3, 2  ;;  %4494 = vmatmul.f32.gmra.mxu3 %v4419_v25 }
 0x61c   : > { %3897 = vst [vmem:[#allocation1 + $0x2] ss:$9 sm:$0xff] %v3670_v51  ;;  %v4735_v32 = vunpack.i.l.bf16 %v4734_v23  ;;  %v4730_v44 = vunpack.i.l.bf16 %v4729_v57  ;;  %v3682_v34 = vrot.slane %v7043_v3, 3  ;;  %v3683_v55 = vrot.slane %v7043_v3, 4 }
 0x61d   : > { %4813 = vrot.lane.b32.xlu2 %v4812_v10, %s4849_s25  ;;  %4808 = vrot.lane.b32.xlu1 %v4807_v30, %s4850_s26  ;;  %v4736_v38 = vunpack.i.h.bf16 %v4734_v23 }
 0x61e   : > { %4803 = vrot.lane.b32.xlu0 %v4802_v40, %s4851_s27  ;;  %v4319_v37 = vsel %vm2051_vm9, %v6699_v56, %v4730_v44 }
 0x61f   : > { %v4343_v51 = vsel %vm2076_vm10, %v4319_v37, %v4735_v32 }
 0x620   : > { %v4367_v10 = vsel %vm2101_vm11, %v4343_v51, %v4740_v33  ;;  %v4754_v27 = vpop.permute.xlu2 %4753 }
 0x621   : > { %v4420_v45 = vrot.slane %v4367_v10, 4  ;;  %v4755_v61 = vunpack.i.l.bf16 %v4754_v27 }
 0x622   : > { %v4749_v17 = vpop.permute.xlu1 %4748  ;;  %v4744_v20 = vpop.permute.xlu0 %4743 }
 0x623   : > { %v3903_v48 = vld [vmem:[#allocation1] sm:$0xff]  ;;  %v4421_v15 = vsel %vm2657_vm12, %v4418_v11, %v4420_v45  ;;  %v4751_v26 = vunpack.i.h.bf16 %v4749_v17  ;;  %v3727_v11 = vperm.slane %v3686_v46, 0 }
 0x624   : > { %3904 = vst [vmem:[#allocation1] ss:$9 sm:$0xff] %v3675_v35  ;;  %v7055_v19 = vsel %vm392_vm0, %v3711_v4, %v3903_v48  ;;  %4497 = vmatmul.f32.gmra.mxu3 %v4421_v15  ;;  %v4750_v35 = vunpack.i.l.bf16 %v4749_v17  ;;  %v4745_v48 = vunpack.i.l.bf16 %v4744_v20 }
 0x625   : > { %4279 = vrot.lane.b32.xlu2 %v4232_v39, %s4849_s25  ;;  %3905 = vst [vmem:[#allocation1 + $0x1] ss:$9 sm:$0xff] %v3676_v22  ;;  %v4731_v39 = vunpack.i.h.bf16 %v4729_v57  ;;  %v4122_v47 = vrot.slane %v7055_v19, 2  ;;  %v4010_v21 = vrot.slane %v7055_v19, 1  ;;  %v4746_v22 = vunpack.i.h.bf16 %v4744_v20 }
 0x626   : > { %3906 = vst [vmem:[#allocation1 + $0x2] ss:$9 sm:$0xff] %v3677_v0 }
 0x627   : > { %3907 = vst [vmem:[#allocation1 + $0x3] ss:$9 sm:$0xff] %v3678_v18  ;;  %v4320_v40 = vsel %vm2051_vm9, %v6739_v31, %v4731_v39 }
 0x628   : > { %3908 = vst [vmem:[#allocation1 + $0x4] ss:$9 sm:$0xff] %v3679_v12  ;;  %v4344_v63 = vsel %vm2076_vm10, %v4320_v40, %v4736_v38  ;;  %v4756_v12 = vunpack.i.h.bf16 %v4754_v27  ;;  %v4769_v44 = vpop.permute.xlu2 %4768 }
 0x629   : > { %3909 = vst [vmem:[#allocation1 + $0x5] ss:$9 sm:$0xff] %v7043_v3  ;;  %v4368_v0 = vsel %vm2101_vm11, %v4344_v63, %v4741_v59  ;;  %v4771_v40 = vunpack.i.h.bf16 %v4769_v44 }
 0x62a   : > { %3910 = vst [vmem:[#allocation1 + $0x6] ss:$9 sm:$0xff] %v3680_v24  ;;  %v4422_v29 = vrot.slane %v4368_v0, 4 }
 0x62b   : > { %3911 = vst [vmem:[#allocation1 + $0x7] ss:$9 sm:$0xff] %v3681_v1 }
 0x632   : > { %v7063_v9 = vld [vmem:[#allocation1] sm:$0xff] }
 0x633   : > { %v4123_v30 = vrot.slane %v7063_v9, 2  ;;  %3913 = vst [vmem:[#allocation1] ss:$9 sm:$0xff] %v3682_v34  ;;  %v4011_v56 = vrot.slane %v7063_v9, 1  ;;  %v4235_v24 = vrot.slane %v7063_v9, 3 }
 0x634   : > { %3914 = vst [vmem:[#allocation1 + $0x1] ss:$9 sm:$0xff] %v3683_v55 }
 0x635   : > { %v4124_v53 = vsel %vm586_vm3, %v4122_v47, %v4123_v30  ;;  %3915 = vst [vmem:[#allocation1 + $0x2] ss:$9 sm:$0xff] %v3684_v16  ;;  %v4012_v14 = vsel %vm473_vm2, %v4010_v21, %v4011_v56 }
 0x636   : > { %v4822_v41 = vpack.i.bf16 %v4124_v53, %v4120_v43  ;;  %3916 = vst [vmem:[#allocation1 + $0x3] ss:$9 sm:$0xff] %v3685_v54  ;;  %v4817_v31 = vpack.i.bf16 %v4012_v14, %v4008_v6  ;;  %v4322_v43 = vsel %vm2051_vm9, %v6770_v36, %v4746_v22  ;;  %v4321_v6 = vsel %vm2051_vm9, %v6742_v42, %v4745_v48  ;;  %v7128_v48 = vld [vmem:[%s7240_s8] ss:$0 sm:$0xff] }
 0x637   : > { %3917 = vst [vmem:[#allocation1 + $0x4] ss:$9 sm:$0xff] %v3686_v46  ;;  %v4345_v3 = vsel %vm2076_vm10, %v4321_v6, %v4750_v35  ;;  %v4346_v60 = vsel %vm2076_vm10, %v4322_v43, %v4751_v26  ;;  %v4234_v42 = vrot.slane %v7055_v19, 3  ;;  %v4770_v54 = vunpack.i.l.bf16 %v4769_v44 }
 0x638   : > { %4823 = vrot.lane.b32.xlu1 %v4822_v41, %s4850_s26  ;;  %4818 = vrot.lane.b32.xlu0 %v4817_v31, %s4851_s27  ;;  %v4369_v13 = vsel %vm2101_vm11, %v4345_v3, %v4755_v61  ;;  %v4370_v62 = vsel %vm2101_vm11, %v4346_v60, %v4756_v12 }
 0x639   : > { %v4423_v18 = vrot.slane %v4369_v13, 4  ;;  %v4236_v37 = vsel %vm699_vm1, %v4234_v42, %v4235_v24  ;;  %v4425_v38 = vrot.slane %v4370_v62, 4 }
 0x63b   : > { %v4424_v36 = vsel %vm2657_vm12, %v4422_v29, %v4423_v18  ;;  %v4426_v46 = vsel %vm2657_vm12, %v4423_v18, %v4425_v38 }
 0x63c   : > { %4500 = vmatmul.f32.gmra.mxu3 %v4424_v36 }
 0x63e   : > { %v3918_v25 = vld [vmem:[#allocation1] sm:$0xff] }
 0x63f   : > { %v7095_v1 = vsel %vm699_vm1, %v3918_v25, %v3727_v11  ;;  %v4764_v4 = vpop.permute.xlu1 %4763 }
 0x640   : > { %v4125_v23 = vrot.slane %v7095_v1, 2  ;;  %v4013_v57 = vrot.slane %v7095_v1, 1  ;;  %v4237_v32 = vrot.slane %v7095_v1, 3  ;;  %v4766_v39 = vunpack.i.h.bf16 %v4764_v4  ;;  %v4759_v33 = vpop.permute.xlu0 %4758 }
 0x641   : > { %v4765_v34 = vunpack.i.l.bf16 %v4764_v4  ;;  %v4761_v55 = vunpack.i.h.bf16 %v4759_v33  ;;  %v4760_v16 = vunpack.i.l.bf16 %v4759_v33 }
 0x642   : > { %v4126_v51 = vsel %vm586_vm3, %v4123_v30, %v4125_v23  ;;  %v4014_v47 = vsel %vm473_vm2, %v4011_v56, %v4013_v57  ;;  %v4238_v21 = vsel %vm699_vm1, %v4235_v24, %v4237_v32  ;;  %v4784_v41 = vpop.permute.xlu2 %4783 }
 0x643   : > { %4171 = vrot.lane.b32.xlu1 %v4126_v51, %s4850_s26  ;;  %4059 = vrot.lane.b32.xlu0 %v4014_v47, %s4851_s27  ;;  %v4827_v10 = vpack.i.bf16 %v4238_v21, %v4236_v37  ;;  %v4324_v45 = vsel %vm2051_vm9, %v6810_v7, %v4761_v55  ;;  %v4323_v53 = vsel %vm2051_vm9, %v6819_v8, %v4760_v16  ;;  %v4785_v63 = vunpack.i.l.bf16 %v4784_v41 }
 0x644   : > { %v4348_v30 = vsel %vm2076_vm10, %v4324_v45, %v4766_v39  ;;  %v4347_v56 = vsel %vm2076_vm10, %v4323_v53, %v4765_v34  ;;  %4503 = vmatmul.f32.gmra.mxu3 %v4426_v46  ;;  %v4786_v24 = vunpack.i.h.bf16 %v4784_v41 }
 0x645   : > { %4828 = vrot.lane.b32.xlu2 %v4827_v10, %s4849_s25  ;;  %v4372_v14 = vsel %vm2101_vm11, %v4348_v30, %v4771_v40  ;;  %v4371_v15 = vsel %vm2101_vm11, %v4347_v56, %v4770_v54 }
 0x646   : > { %v4427_v17 = vrot.slane %v4371_v15, 4  ;;  %v4428_v20 = vrot.slane %v4372_v14, 4 }
 0x648   : > { %v4429_v7 = vsel %vm2657_vm12, %v4427_v17, %v4428_v20 }
 0x64b   : > { %4173 = vrot.lane.b32.xlu1 %v4125_v23, %s4850_s26  ;;  %4061 = vrot.lane.b32.xlu0 %v4013_v57, %s4851_s27 }
 0x64c   : > { %4506 = vmatmul.f32.gmra.mxu3 %v4429_v7 }
 0x64d   : > { %4285 = vrot.lane.b32.xlu2 %v4237_v32, %s4849_s25 }
 0x64f   : > { %v4799_v18 = vpop.permute.xlu2 %4798 }
 0x650   : > { %v4800_v62 = vunpack.i.l.bf16 %v4799_v18  ;;  %v4801_v37 = vunpack.i.h.bf16 %v4799_v18 }
 0x653   : > { %v4483_v26 = vpop.f32.mrf.mxu3 }
 0x65a   : > { %v4779_v8 = vpop.permute.xlu1 %4778 }
 0x65b   : > { %v4780_v31 = vunpack.i.l.bf16 %v4779_v8  ;;  %v4774_v27 = vpop.permute.xlu0 %4773  ;;  %v4781_v3 = vunpack.i.h.bf16 %v4779_v8  ;;  %v4486_v16 = vpop.f32.mrf.mxu3 }
 0x65c   : > { %v4775_v35 = vunpack.i.l.bf16 %v4774_v27  ;;  %v4776_v43 = vunpack.i.h.bf16 %v4774_v27  ;;  %v4487_v51 = vadd.f32 %v7128_v48, %v4486_v16 }
 0x65e   : > { %v4325_v59 = vsel %vm2051_vm9, %v6827_v5, %v4775_v35  ;;  %v4484_v5 = vadd.f32 %v7128_v48, %v4483_v26  ;;  %v4326_v13 = vsel %vm2051_vm9, %v6911_v50, %v4776_v43  ;;  %4532 = vst.msk [vmem:[%s7136_s28 + $0x8] sm:$0xff] %vm837_vm5, %v4487_v51 }
 0x65f   : > { %v4349_v22 = vsel %vm2076_vm10, %v4325_v59, %v4780_v31  ;;  %v4350_v11 = vsel %vm2076_vm10, %v4326_v13, %v4781_v3 }
 0x660   : > { %v4373_v61 = vsel %vm2101_vm11, %v4349_v22, %v4785_v63  ;;  %4531 = vst.msk [vmem:[%s7136_s28] sm:$0xff] %vm837_vm5, %v4484_v5  ;;  %v4374_v50 = vsel %vm2101_vm11, %v4350_v11, %v4786_v24 }
 0x661   : > { %v4430_v6 = vrot.slane %v4373_v61, 4  ;;  %v4432_v44 = vrot.slane %v4374_v50, 4 }
 0x663   : > { %v4431_v0 = vsel %vm2657_vm12, %v4428_v20, %v4430_v6 }
 0x664   : > { %4509 = vmatmul.f32.gmra.mxu3 %v4431_v0 }
 0x667   : > { %v4794_v29 = vpop.permute.xlu1 %4793 }
 0x668   : > { %v4795_v60 = vunpack.i.l.bf16 %v4794_v29  ;;  %v4789_v12 = vpop.permute.xlu0 %4788  ;;  %v4796_v42 = vunpack.i.h.bf16 %v4794_v29 }
 0x669   : > { %v4791_v25 = vunpack.i.h.bf16 %v4789_v12  ;;  %v4790_v36 = vunpack.i.l.bf16 %v4789_v12 }
 0x66b   : > { %v4328_v4 = vsel %vm2051_vm9, %v6945_v2, %v4791_v25  ;;  %v4327_v23 = vsel %vm2051_vm9, %v6919_v58, %v4790_v36 }
 0x66c   : > { %v4351_v57 = vsel %vm2076_vm10, %v4327_v23, %v4795_v60  ;;  %v4352_v33 = vsel %vm2076_vm10, %v4328_v4, %v4796_v42 }
 0x66d   : > { %v4375_v32 = vsel %vm2101_vm11, %v4351_v57, %v4800_v62  ;;  %v4376_v2 = vsel %vm2101_vm11, %v4352_v33, %v4801_v37 }
 0x66e   : > { %v4433_v39 = vrot.slane %v4375_v32, 4  ;;  %v4435_v55 = vrot.slane %v4376_v2, 4 }
 0x670   : > { %v4434_v34 = vsel %vm2657_vm12, %v4432_v44, %v4433_v39  ;;  %v4436_v58 = vsel %vm2657_vm12, %v4433_v39, %v4435_v55 }
 0x671   : > { %4512 = vmatmul.f32.gmra.mxu3 %v4434_v34 }
 0x677   : > { %v4814_v38 = vpop.permute.xlu2 %4813 }
 0x678   : > { %v4816_v56 = vunpack.i.h.bf16 %v4814_v38  ;;  %v4815_v14 = vunpack.i.l.bf16 %v4814_v38 }
 0x679   : > { %4515 = vmatmul.f32.gmra.mxu3 %v4436_v58 }
 0x67b   : > { %v4489_v21 = vpop.f32.mrf.mxu3 }
 0x67c   : > { %v4490_v54 = vadd.f32 %v7128_v48, %v4489_v21 }
 0x67e   : > { %4533 = vst.msk [vmem:[%s7136_s28 + $0x10] sm:$0xff] %vm837_vm5, %v4490_v54 }
 0x683   : > { %v4492_v27 = vpop.f32.mrf.mxu3 }
 0x684   : > { %v4493_v63 = vadd.f32 %v7128_v48, %v4492_v27 }
 0x686   : > { %4534 = vst.msk [vmem:[%s7136_s28 + $0x18] sm:$0xff] %vm837_vm5, %v4493_v63 }
 0x68f   : > { %v4809_v47 = vpop.permute.xlu1 %4808 }
 0x690   : > { %v4811_v10 = vunpack.i.h.bf16 %v4809_v47  ;;  %v4810_v40 = vunpack.i.l.bf16 %v4809_v47  ;;  %v4804_v45 = vpop.permute.xlu0 %4803 }
 0x691   : > { %v4806_v53 = vunpack.i.h.bf16 %v4804_v45  ;;  %v4805_v30 = vunpack.i.l.bf16 %v4804_v45 }
 0x693   : > { %v4330_v46 = vsel %vm2051_vm9, %v6987_v28, %v4806_v53  ;;  %v4329_v15 = vsel %vm2051_vm9, %v7000_v49, %v4805_v30  ;;  %v4280_v28 = vpop.permute.xlu2 %4279 }
 0x694   : > { %v4353_v17 = vsel %vm2076_vm10, %v4329_v15, %v4810_v40  ;;  %v4354_v20 = vsel %vm2076_vm10, %v4330_v46, %v4811_v10 }
 0x695   : > { %v4377_v7 = vsel %vm2101_vm11, %v4353_v17, %v4815_v14  ;;  %v4378_v8 = vsel %vm2101_vm11, %v4354_v20, %v4816_v56 }
 0x696   : > { %v4437_v41 = vrot.slane %v4377_v7, 4  ;;  %v4438_v31 = vrot.slane %v4378_v8, 4 }
 0x698   : > { %v4439_v35 = vsel %vm2657_vm12, %v4437_v41, %v4438_v31 }
 0x699   : > { %4518 = vmatmul.f32.gmra.mxu3 %v4439_v35 }
 0x69e   : > { %v4495_v43 = vpop.f32.mrf.mxu3 }
 0x69f   : > { %v4496_v5 = vadd.f32 %v7128_v48, %v4495_v43  ;;  %v4829_v60 = vpop.permute.xlu2 %4828 }
 0x6a0   : > { %v4830_v11 = vunpack.i.l.bf16 %v4829_v60  ;;  %v4831_v36 = vunpack.i.h.bf16 %v4829_v60 }
 0x6a1   : > { %4535 = vst.msk [vmem:[%s7136_s28 + $0x20] sm:$0xff] %vm837_vm5, %v4496_v5 }
 0x6a7   : > { %v4498_v57 = vpop.f32.mrf.mxu3  ;;  %v4286_v37 = vpop.permute.xlu2 %4285 }
 0x6a8   : > { %v4499_v32 = vadd.f32 %v7128_v48, %v4498_v57 }
 0x6aa   : > { %v4824_v49 = vpop.permute.xlu1 %4823  ;;  %v4819_v59 = vpop.permute.xlu0 %4818  ;;  %4536 = vst.msk [vmem:[%s7136_s28 + $0x28] sm:$0xff] %vm837_vm5, %v4499_v32 }
 0x6ab   : > { %v4825_v22 = vunpack.i.l.bf16 %v4824_v49  ;;  %v4820_v26 = vunpack.i.l.bf16 %v4819_v59  ;;  %v4821_v61 = vunpack.i.h.bf16 %v4819_v59  ;;  %v4826_v3 = vunpack.i.h.bf16 %v4824_v49 }
 0x6ad   : > { %v4331_v6 = vsel %vm2051_vm9, %v7009_v52, %v4820_v26  ;;  %v4332_v29 = vsel %vm2051_vm9, %v7055_v19, %v4821_v61 }
 0x6ae   : > { %v4355_v0 = vsel %vm2076_vm10, %v4331_v6, %v4825_v22  ;;  %v4356_v52 = vsel %vm2076_vm10, %v4332_v29, %v4826_v3 }
 0x6af   : > { %v4379_v13 = vsel %vm2101_vm11, %v4355_v0, %v4280_v28  ;;  %v4380_v62 = vsel %vm2101_vm11, %v4356_v52, %v4830_v11 }
 0x6b0   : > { %v4440_v18 = vrot.slane %v4379_v13, 4  ;;  %v4442_v23 = vrot.slane %v4380_v62, 4 }
 0x6b2   : > { %v4441_v12 = vsel %vm2657_vm12, %v4438_v31, %v4440_v18 }
 0x6b3   : > { %4521 = vmatmul.f32.gmra.mxu3 %v4441_v12 }
 0x6b5   : > { %v4172_v24 = vpop.permute.xlu1 %4171  ;;  %v4060_v25 = vpop.permute.xlu0 %4059 }
 0x6b6   : > { %v4333_v42 = vsel %vm2051_vm9, %v7063_v9, %v4060_v25 }
 0x6b7   : > { %v4357_v4 = vsel %vm2076_vm10, %v4333_v42, %v4172_v24 }
 0x6b8   : > { %v4381_v19 = vsel %vm2101_vm11, %v4357_v4, %v4831_v36 }
 0x6b9   : > { %v4443_v50 = vrot.slane %v4381_v19, 4 }
 0x6bb   : > { %v4444_v44 = vsel %vm2657_vm12, %v4442_v23, %v4443_v50 }
 0x6bc   : > { %4524 = vmatmul.f32.gmra.mxu3 %v4444_v44 }
 0x6bd   : > { %v4174_v39 = vpop.permute.xlu1 %4173  ;;  %v4062_v9 = vpop.permute.xlu0 %4061 }
 0x6be   : > { %v4334_v33 = vsel %vm2051_vm9, %v7095_v1, %v4062_v9 }
 0x6bf   : > { %v4358_v34 = vsel %vm2076_vm10, %v4334_v33, %v4174_v39  ;;  %v4501_v58 = vpop.f32.mrf.mxu3 }
 0x6c0   : > { %v4382_v2 = vsel %vm2101_vm11, %v4358_v34, %v4286_v37  ;;  %v4502_v51 = vadd.f32 %v7128_v48, %v4501_v58 }
 0x6c1   : > { %v4445_v55 = vrot.slane %v4382_v2, 4 }
 0x6c2   : > { %4537 = vst.msk [vmem:[%s7136_s28 + $0x30] sm:$0xff] %vm837_vm5, %v4502_v51 }
 0x6c3   : > { %v4446_v16 = vsel %vm2657_vm12, %v4443_v50, %v4445_v55 }
 0x6c4   : > { %4527 = vmatmul.f32.gmra.mxu3 %v4446_v16 }
 0x6c7   : > { %v4504_v47 = vpop.f32.mrf.mxu3 }
 0x6c8   : > { %v4505_v1 = vadd.f32 %v7128_v48, %v4504_v47 }
 0x6ca   : > { %4538 = vst.msk [vmem:[%s7136_s28 + $0x38] sm:$0xff] %vm837_vm5, %v4505_v1 }
 0x6cf   : > { %v4507_v21 = vpop.f32.mrf.mxu3 }
 0x6d0   : > { %v4508_v38 = vadd.f32 %v7128_v48, %v4507_v21 }
 0x6d2   : > { %4539 = vst.msk [vmem:[%s7136_s28 + $0x40] sm:$0xff] %vm837_vm5, %v4508_v38 }
 0x6e7   : > { %v4510_v10 = vpop.f32.mrf.mxu3 }
 0x6e8   : > { %v4511_v40 = vadd.f32 %v7128_v48, %v4510_v10 }
 0x6ea   : > { %4540 = vst.msk [vmem:[%s7136_s28 + $0x48] sm:$0xff] %vm837_vm5, %v4511_v40 }
 0x6f4   : > { %v4513_v45 = vpop.f32.mrf.mxu3 }
 0x6f5   : > { %v4514_v54 = vadd.f32 %v7128_v48, %v4513_v45 }
 0x6f7   : > { %4541 = vst.msk [vmem:[%s7136_s28 + $0x50] sm:$0xff] %vm837_vm5, %v4514_v54 }
 0x6fc   : > { %v4516_v53 = vpop.f32.mrf.mxu3 }
 0x6fd   : > { %v4517_v30 = vadd.f32 %v7128_v48, %v4516_v53 }
 0x6ff   : > { %4542 = vst.msk [vmem:[%s7136_s28 + $0x58] sm:$0xff] %vm837_vm5, %v4517_v30 }
 0x71c   : > { %v4519_v56 = vpop.f32.mrf.mxu3 }
 0x71d   : > { %v4520_v14 = vadd.f32 %v7128_v48, %v4519_v56 }
 0x71f   : > { %4543 = vst.msk [vmem:[%s7136_s28 + $0x60] sm:$0xff] %vm837_vm5, %v4520_v14 }
 0x736   : > { %v4522_v46 = vpop.f32.mrf.mxu3 }
 0x737   : > { %v4523_v15 = vadd.f32 %v7128_v48, %v4522_v46 }
 0x739   : > { %4544 = vst.msk [vmem:[%s7136_s28 + $0x68] sm:$0xff] %vm837_vm5, %v4523_v15 }
 0x73f   : > { %v4525_v17 = vpop.f32.mrf.mxu3 }
 0x740   : > { %v4526_v20 = vadd.f32 %v7128_v48, %v4525_v17 }
 0x742   : > { %4545 = vst.msk [vmem:[%s7136_s28 + $0x70] sm:$0xff] %vm837_vm5, %v4526_v20 }
 0x747   : > { %v4528_v7 = vpop.f32.mrf.mxu3 }
 0x748   : > { %v4529_v8 = vadd.f32 %v7128_v48, %v4528_v7 }
 0x74a   : > { %4546 = vst.msk [vmem:[%s7136_s28 + $0x78] sm:$0xff] %vm837_vm5, %v4529_v8 }
 0x74b PF: > { %s19_s30 = sadd.s32 1, %s4844_s30  }
 0x74c   : > { %p16_p4 = scmp.ge.s32.totalorder %s19_s30, 4  }
 0x74e   :  { %18 = sbr.rel (!%p16_p4) target bundleno = 1 (0x1), region = 128 }

</bundles_post_ra>
